<compile_context>
chip_gen: v7x
topology: tpu7x:2x2x1
jax: 0.10.0
libtpu: 0.0.40
codegen_flags: <defaults>
</compile_context>

<pallas_src>
import math

import jax
import jax.numpy as jnp
from jax.experimental import pallas as pl
from jax.experimental.pallas import tpu as pltpu


def _make_level_kernel(corr_size: int, strip_rows: int, mxu_dtype):
    P = corr_size
    Th = strip_rows
    He = Th + 2  # strip rows + one conv-halo row on each side

    def kernel(feat2_ref, feat1p_ref, hprep_ref, cpre_ref,
               w_ref, b_ref,
               h_out_ref, c_out_ref,
               pad_scratch, im2col_ref):
        _, W, C = feat2_ref.shape          # full-height (+1 row pad) block
        HW = Th * W

        s = pl.program_id(1)               # strip index (axis 0 is batch)
        row0 = s * Th                      # strip top, in +1-row-padded coords

        # ---- 1) correlation scores over P*P displacements (channel reduce),
        #         computed on the He = Th+2 extended rows (strip + conv halo) --
        f2 = feat2_ref[pl.ds(row0, He), :, :]                       # [He, W, C]
        scores = jnp.concatenate(
            [jnp.sum(f2 * feat1p_ref[pl.ds(row0 + i, He), pl.ds(j, W), :],
                     axis=-1, keepdims=True)
             for i in range(P) for j in range(P)],
            axis=-1)                                                # [He, W, P*P]

        # ---- 2) softmax over displacements ----
        m = jnp.max(scores, axis=-1, keepdims=True)
        e = jnp.exp(scores - m)                                     # [He, W, P*P]
        denom = jnp.sum(e, axis=-1, keepdims=True)                  # in [1, P*P]
        # EUP approx reciprocal + one Newton step (~1e-6 rel error); the hard
        # part runs on the otherwise-idle EUP slot instead of the VALU.
        r = pl.reciprocal(denom, approx=True)
        inv_denom = r * (2.0 - denom * r)

        # ---- 3) soft warp; inv_denom factored out; shifted feat1 windows are
        #         re-read from the resident VMEM ref (low vreg pressure) ----
        nf = jnp.zeros((He, W, C), jnp.float32)
        t = 0
        for i in range(P):
            for j in range(P):
                nf = nf + e[:, :, t:t + 1] * feat1p_ref[pl.ds(row0 + i, He),
                                                        pl.ds(j, W), :]
                t += 1
        new_feat = nf * inv_denom                                   # [He, W, C]

        # ---- padded new_feat for the 3x3 SAME conv: zero column border each
        #      step; the row halo comes from the extended rows and is zeroed
        #      only at the image top/bottom ----
        pad_scratch[:, pl.ds(0, 1), :] = jnp.zeros((He, 1, C), jnp.float32)
        pad_scratch[:, pl.ds(W + 1, 1), :] = jnp.zeros((He, 1, C), jnp.float32)
        pad_scratch[:, pl.ds(1, W), :] = new_feat

        @pl.when(s == 0)                         # halo row above image top
        def _():
            pad_scratch[pl.ds(0, 1), :, :] = jnp.zeros((1, W + 2, C), jnp.float32)

        @pl.when(s == pl.num_programs(1) - 1)    # halo row below image bottom
        def _():
            pad_scratch[pl.ds(Th + 1, 1), :, :] = jnp.zeros((1, W + 2, C),
                                                            jnp.float32)

        # ---- 4) fused conv: im2col [HW, 18C] @ w [18C, 4C]  (one MXU dot) ----
        # Per-tap columns are interleaved [x_t | h_t] so each tap issues one
        # lane-dense [Th, W, 2C] store (no per-tap reshape); w_ref rows are
        # permuted to match in the wrapper and both biases are pre-folded.
        t = 0
        for ky in range(3):
            for kx in range(3):
                xs = pad_scratch[pl.ds(ky, Th), pl.ds(kx, W), :]
                hs = hprep_ref[pl.ds(row0 + ky, Th), pl.ds(kx, W), :]
                im2col_ref[:, :, pl.ds(2 * t * C, 2 * C)] = jnp.concatenate(
                    [xs, hs], axis=-1).astype(mxu_dtype)
                t += 1

        acts = im2col_ref[...].reshape(HW, 18 * C)   # free merge when W % 8 == 0
        acc = jnp.dot(acts, w_ref[...], preferred_element_type=jnp.float32)
        acc = acc + b_ref[...]                                      # [HW, 4C] f32

        # ---- 5) ConvLSTM gates (channel order: i, f, o, g) ----
        sig = jax.nn.sigmoid(acc[:, :3 * C])         # i|f|o in one pass
        g = jnp.tanh(acc[:, 3 * C:])
        gi = sig[:, 0 * C:1 * C]
        gf = sig[:, 1 * C:2 * C]
        go = sig[:, 2 * C:3 * C]

        c_next = gf * cpre_ref[...] + gi * g                        # [HW, C]
        c_out_ref[...] = c_next
        h_out_ref[...] = go * jnp.tanh(c_next)

    return kernel


def _choose_strip_rows(H, W, C, mxu_itemsize, budget_bytes):
    """Largest divisor of H whose per-strip im2col fits the VMEM budget
    (and keeps the flattened strip block (8,128)-tileable)."""
    cands = [c for c in range(1, H + 1)
             if H % c == 0 and (c == H or (c * W) % 8 == 0)]
    fitting = [c for c in cands if c * W * 18 * C * mxu_itemsize <= budget_bytes]
    return max(fitting) if fitting else min(cands)


def conv_lstm_motion_level(feat1, feat2, h_pre, c_pre, wx, bx, wh, bh,
                           corr_size=3, mxu_dtype=jnp.bfloat16,
                           strip_rows=None, vmem_budget_bytes=None):
    """One pyramid level of ConvLSTMMotion.forward.  All tensors NHWC, f32.

    wx / wh are HWIO [3, 3, C, 4C] (output channel order i|f|o|g), bx / bh [4C].
    """
    B, H, W, C = feat2.shape
    pad = (corr_size - 1) // 2
    itemsize = jnp.dtype(mxu_dtype).itemsize

    # Per-generation strip height: bound the per-strip im2col working set by a
    # fraction of this chip's VMEM (v7x has half the VMEM of v5e/v6e).
    if strip_rows is None:
        if vmem_budget_bytes is None:
            try:
                vmem_budget_bytes = int(
                    pltpu.get_tpu_info().vmem_capacity_bytes) // 8
            except Exception:
                vmem_budget_bytes = 8 << 20
        strip_rows = _choose_strip_rows(H, W, C, itemsize, vmem_budget_bytes)
    Th = strip_rows
    assert H % Th == 0, "strip_rows must divide H"
    assert Th == H or (Th * W) % 8 == 0, "strip block must be (8,128)-tileable"
    S = H // Th

    # Glue: zero-pad the inputs whose shifted windows the kernel slices
    # (corr + conv-halo rows for feat1, conv-halo rows for feat2/h_pre), and
    # present the LSTM state in the kernel's natural flattened [H*W, C] layout.
    # TODO(synk): move these pads into VMEM inside the kernel to drop the
    #             padded-copy HBM round-trip at production sizes.
    feat1_ext = jnp.pad(feat1, ((0, 0), (1 + pad, 1 + pad), (pad, pad), (0, 0)))
    feat2_ext = jnp.pad(feat2, ((0, 0), (1, 1), (0, 0), (0, 0)))
    h_pre_ext = jnp.pad(h_pre, ((0, 0), (1, 1), (1, 1), (0, 0)))
    c_pre_f = c_pre.reshape(B, H * W, C)

    # Fuse x_conv / h_conv weights into one [18C, 4C] matrix whose row order
    # matches the kernel's interleaved [x_t | h_t] im2col columns; fold biases.
    wx9 = wx.reshape(9, C, 4 * C)
    wh9 = wh.reshape(9, C, 4 * C)
    w_fused = jnp.stack([wx9, wh9], axis=1).reshape(18 * C, 4 * C).astype(mxu_dtype)
    bias = (bx + bh).reshape(1, 4 * C).astype(jnp.float32)

    kernel = _make_level_kernel(corr_size, Th, mxu_dtype)
    bmap_full = lambda b, s: (b, 0, 0, 0)
    bmap_strip = lambda b, s: (b, s, 0)
    wmap = lambda b, s: (0, 0)

    grid_spec = pltpu.PrefetchScalarGridSpec(
        num_scalar_prefetch=0,
        grid=(B, S),
        in_specs=[
            pl.BlockSpec((None, H + 2, W, C), bmap_full),                     # feat2 (+1 row)
            pl.BlockSpec((None, H + 2 + 2 * pad, W + 2 * pad, C), bmap_full),  # feat1 (+1+pad)
            pl.BlockSpec((None, H + 2, W + 2, C), bmap_full),                 # h_pre (+1)
            pl.BlockSpec((None, Th * W, C), bmap_strip),                      # c_pre strip
            pl.BlockSpec((18 * C, 4 * C), wmap),                              # fused weight
            pl.BlockSpec((1, 4 * C), wmap),                                   # fused bias
        ],
        out_specs=[
            pl.BlockSpec((None, Th * W, C), bmap_strip),                      # h_next strip
            pl.BlockSpec((None, Th * W, C), bmap_strip),                      # c_next strip
        ],
        scratch_shapes=[
            pltpu.VMEM((Th + 2, W + 2, C), jnp.float32),     # padded new_feat strip
            pltpu.VMEM((Th, W, 18 * C), mxu_dtype),          # interleaved im2col
        ],
    )

    # Explicit VMEM limit: resident full-height inputs + double-buffered strip
    # IO + weights + scratch, with slack (default scoped limit is 16/32 MiB).
    f32b = 4
    resident_in = ((H + 2) * W * C + (H + 2 + 2 * pad) * (W + 2 * pad) * C
                   + (H + 2) * (W + 2) * C) * f32b
    strip_io = 3 * Th * W * C * f32b
    weights_b = 18 * C * 4 * C * itemsize + 4 * C * f32b
    scratch_b = (Th + 2) * (W + 2) * C * f32b + Th * W * 18 * C * itemsize
    est = 2 * (resident_in + strip_io + weights_b) + scratch_b
    vmem_limit = int(min(max(2 * est, 32 << 20), 100 << 20))

    h_flat, c_flat = pl.pallas_call(
        kernel,
        out_shape=(jax.ShapeDtypeStruct((B, H * W, C), jnp.float32),
                   jax.ShapeDtypeStruct((B, H * W, C), jnp.float32)),
        grid_spec=grid_spec,
        # c_pre is dead after the step: reuse its HBM buffer for c_next (free
        # when the caller donates under jit; a defensive copy otherwise).
        input_output_aliases={3: 1},
        compiler_params=pltpu.CompilerParams(
            dimension_semantics=("parallel", "parallel"),
            vmem_limit_bytes=vmem_limit),
    )(feat2_ext, feat1_ext, h_pre_ext, c_pre_f, w_fused, bias)

    return h_flat.reshape(B, H, W, C), c_flat.reshape(B, H, W, C)


def conv_lstm_motion_forward(pre_states, x_pre, x, params, corr_size=3,
                             mxu_dtype=jnp.bfloat16, strip_rows=None):
    """Full module forward: lists over pyramid levels, NHWC tensors."""
    next_state = []
    for (h_pre, c_pre), feat1, feat2, (wx, bx, wh, bh) in zip(
            pre_states, x_pre, x, params):
        h_next, c_next = conv_lstm_motion_level(
            feat1, feat2, h_pre, c_pre, wx, bx, wh, bh,
            corr_size, mxu_dtype=mxu_dtype, strip_rows=strip_rows)
        next_state.append((h_next, c_next))
    return next_state


# -------------------- pure-JAX reference (for verification) --------------------
def _reference_level(feat1, feat2, h_pre, c_pre, wx, bx, wh, bh, corr_size=3):
    B, H, W, C = feat2.shape
    pad = (corr_size - 1) // 2
    feat1_p = jnp.pad(feat1, ((0, 0), (pad, pad), (pad, pad), (0, 0)))
    offsets = [(i, j) for i in range(corr_size) for j in range(corr_size)]
    corr = jnp.stack(
        [jnp.sum(feat2 * feat1_p[:, i:i + H, j:j + W, :], axis=-1)
         for (i, j) in offsets], axis=-1)                           # [B,H,W,P*P]
    soft = jax.nn.softmax(corr, axis=-1)
    new_feat = jnp.zeros_like(feat2)
    for idx, (i, j) in enumerate(offsets):
        new_feat = new_feat + soft[..., idx:idx + 1] * feat1_p[:, i:i + H, j:j + W, :]

    def conv(xv, w, b):
        y = jax.lax.conv_general_dilated(
            xv, w, window_strides=(1, 1), padding="SAME",
            dimension_numbers=("NHWC", "HWIO", "NHWC"))
        return y + b

    gates = conv(new_feat, wx, bx) + conv(h_pre, wh, bh)
    cc_i, cc_f, cc_o, cc_g = jnp.split(gates, 4, axis=-1)
    gi, gf, go, gg = (jax.nn.sigmoid(cc_i), jax.nn.sigmoid(cc_f),
                      jax.nn.sigmoid(cc_o), jnp.tanh(cc_g))
    c_next = gf * c_pre + gi * gg
    h_next = go * jnp.tanh(c_next)
    return h_next, c_next


if __name__ == "__main__":
    key = jax.random.PRNGKey(0)
    in_channels = (128, 64)       # small synthetic pyramid
    B, H, W = 2, 8, 8
    corr_size = 3

    pre_states, x_pre, x, params = [], [], [], []
    for C in in_channels:
        key, k1, k2, k3, k4, k5, k6 = jax.random.split(key, 7)
        x_pre.append(jax.random.normal(k1, (B, H, W, C), jnp.float32))
        x.append(jax.random.normal(k2, (B, H, W, C), jnp.float32))
        pre_states.append((jax.random.normal(k3, (B, H, W, C), jnp.float32),
                           jax.random.normal(k4, (B, H, W, C), jnp.float32)))
        # deterministic xavier-uniform weights; forget-gate bias = 1 (init_weights)
        fan_in, fan_out = C * 9, 4 * C * 9
        bound = math.sqrt(6.0 / (fan_in + fan_out))
        wx = jax.random.uniform(k5, (3, 3, C, 4 * C), jnp.float32, -bound, bound)
        wh = jax.random.uniform(k6, (3, 3, C, 4 * C), jnp.float32, -bound, bound)
        bx = jnp.zeros((4 * C,), jnp.float32).at[C:2 * C].set(1.0)
        bh = jnp.zeros((4 * C,), jnp.float32).at[C:2 * C].set(1.0)
        params.append((wx, bx, wh, bh))

    # f32 MXU path with a forced multi-strip grid (exercises the halo logic and
    # the strip boundary zeroing); tight check (approx-recip+NR bounds ~1e-6).
    out_f32 = conv_lstm_motion_forward(pre_states, x_pre, x, params, corr_size,
                                       mxu_dtype=jnp.float32, strip_rows=2)
    out_f32 = jax.block_until_ready(out_f32)

    # bf16 MXU path (production default), auto strip height; loose sanity check
    # (bf16 operand quantization, f32 accumulation).
    out_bf16 = conv_lstm_motion_forward(pre_states, x_pre, x, params, corr_size)
    out_bf16 = jax.block_until_ready(out_bf16)

    ok = True
    for lvl, (wxp, bxp, whp, bhp) in enumerate(params):
        h_ref, c_ref = _reference_level(x_pre[lvl], x[lvl],
                                        pre_states[lvl][0], pre_states[lvl][1],
                                        wxp, bxp, whp, bhp, corr_size)
        h_k, c_k = out_f32[lvl]
        ok &= bool(jnp.allclose(h_k, h_ref, atol=5e-4, rtol=5e-4))
        ok &= bool(jnp.allclose(c_k, c_ref, atol=5e-4, rtol=5e-4))
        h_b, c_b = out_bf16[lvl]
        ok &= bool(jnp.allclose(h_b, h_ref, atol=1e-1, rtol=1e-1))
        ok &= bool(jnp.allclose(c_b, c_ref, atol=1e-1, rtol=1e-1))
    if not ok:
        raise SystemExit("MISMATCH vs pure-JAX reference")
    print("KERNEL_OK")
</pallas_src>

<mosaic_0001>
module attributes {stable_mosaic.version = 11 : i64} {
  func.func @kernel(%arg0: i32, %arg1: i32, %arg2: memref<1x10x8x128xf32, #tpu.memory_space<vmem>>, %arg3: memref<1x12x10x128xf32, #tpu.memory_space<vmem>>, %arg4: memref<1x10x10x128xf32, #tpu.memory_space<vmem>>, %arg5: memref<1x16x128xf32, #tpu.memory_space<vmem>>, %arg6: memref<2304x512xf32, #tpu.memory_space<vmem>>, %arg7: memref<1x512xf32, #tpu.memory_space<vmem>>, %arg8: memref<1x16x128xf32, #tpu.memory_space<vmem>>, %arg9: memref<1x16x128xf32, #tpu.memory_space<vmem>>, %arg10: memref<4x10x128xf32, #tpu.memory_space<vmem>>, %arg11: memref<2x8x2304xf32, #tpu.memory_space<vmem>>) attributes {dimension_semantics = [#tpu.dimension_semantics<parallel>, #tpu.dimension_semantics<parallel>], iteration_bounds = array<i64: 2, 4>, scalar_prefetch = 0 : i64, scratch_operands = 2 : i64, tpu.core_type = #tpu.core_type<tc>, window_params = [{transform_indices = @transform_0, window_bounds = array<i64: 1, 10, 8, 128>}, {transform_indices = @transform_1, window_bounds = array<i64: 1, 12, 10, 128>}, {transform_indices = @transform_2, window_bounds = array<i64: 1, 10, 10, 128>}, {transform_indices = @transform_3, window_bounds = array<i64: 1, 16, 128>}, {pipeline_mode = #tpu.pipeline_mode<synchronous>, transform_indices = @transform_4, window_bounds = array<i64: 2304, 512>}, {pipeline_mode = #tpu.pipeline_mode<synchronous>, transform_indices = @transform_5, window_bounds = array<i64: 1, 512>}, {transform_indices = @transform_6, window_bounds = array<i64: 1, 16, 128>}, {transform_indices = @transform_7, window_bounds = array<i64: 1, 16, 128>}]} {
    %c2_i32 = arith.constant 2 : i32
    %0 = arith.muli %arg1, %c2_i32 : i32
    %c0 = arith.constant 0 : index
    %1 = arith.index_cast %0 : i32 to index
    %c0_0 = arith.constant 0 : index
    %c0_1 = arith.constant 0 : index
    %2 = vector.load %arg2[%c0, %1, %c0_0, %c0_1] : memref<1x10x8x128xf32, #tpu.memory_space<vmem>>, vector<1x4x8x128xf32>
    %3 = vector.shape_cast %2 : vector<1x4x8x128xf32> to vector<4x8x128xf32>
    %c0_i32 = arith.constant 0 : i32
    %4 = arith.addi %0, %c0_i32 : i32
    %c0_2 = arith.constant 0 : index
    %5 = arith.index_cast %4 : i32 to index
    %c0_3 = arith.constant 0 : index
    %c0_4 = arith.constant 0 : index
    %6 = vector.load %arg3[%c0_2, %5, %c0_3, %c0_4] : memref<1x12x10x128xf32, #tpu.memory_space<vmem>>, vector<1x4x8x128xf32>
    %7 = vector.shape_cast %6 : vector<1x4x8x128xf32> to vector<4x8x128xf32>
    %8 = arith.mulf %3, %7 : vector<4x8x128xf32>
    %cst = arith.constant dense<0.000000e+00> : vector<4x8xf32>
    %9 = vector.multi_reduction <add>, %8, %cst [2] : vector<4x8x128xf32> to vector<4x8xf32>
    %10 = vector.shape_cast %9 : vector<4x8xf32> to vector<4x8x1xf32>
    %c0_i32_5 = arith.constant 0 : i32
    %11 = arith.addi %0, %c0_i32_5 : i32
    %c0_6 = arith.constant 0 : index
    %12 = arith.index_cast %11 : i32 to index
    %c1 = arith.constant 1 : index
    %c0_7 = arith.constant 0 : index
    %13 = vector.load %arg3[%c0_6, %12, %c1, %c0_7] : memref<1x12x10x128xf32, #tpu.memory_space<vmem>>, vector<1x4x8x128xf32>
    %14 = vector.shape_cast %13 : vector<1x4x8x128xf32> to vector<4x8x128xf32>
    %15 = arith.mulf %3, %14 : vector<4x8x128xf32>
    %cst_8 = arith.constant dense<0.000000e+00> : vector<4x8xf32>
    %16 = vector.multi_reduction <add>, %15, %cst_8 [2] : vector<4x8x128xf32> to vector<4x8xf32>
    %17 = vector.shape_cast %16 : vector<4x8xf32> to vector<4x8x1xf32>
    %c0_i32_9 = arith.constant 0 : i32
    %18 = arith.addi %0, %c0_i32_9 : i32
    %c0_10 = arith.constant 0 : index
    %19 = arith.index_cast %18 : i32 to index
    %c2 = arith.constant 2 : index
    %c0_11 = arith.constant 0 : index
    %20 = vector.load %arg3[%c0_10, %19, %c2, %c0_11] : memref<1x12x10x128xf32, #tpu.memory_space<vmem>>, vector<1x4x8x128xf32>
    %21 = vector.shape_cast %20 : vector<1x4x8x128xf32> to vector<4x8x128xf32>
    %22 = arith.mulf %3, %21 : vector<4x8x128xf32>
    %cst_12 = arith.constant dense<0.000000e+00> : vector<4x8xf32>
    %23 = vector.multi_reduction <add>, %22, %cst_12 [2] : vector<4x8x128xf32> to vector<4x8xf32>
    %24 = vector.shape_cast %23 : vector<4x8xf32> to vector<4x8x1xf32>
    %c1_i32 = arith.constant 1 : i32
    %25 = arith.addi %0, %c1_i32 : i32
    %c0_13 = arith.constant 0 : index
    %26 = arith.index_cast %25 : i32 to index
    %c0_14 = arith.constant 0 : index
    %c0_15 = arith.constant 0 : index
    %27 = vector.load %arg3[%c0_13, %26, %c0_14, %c0_15] : memref<1x12x10x128xf32, #tpu.memory_space<vmem>>, vector<1x4x8x128xf32>
    %28 = vector.shape_cast %27 : vector<1x4x8x128xf32> to vector<4x8x128xf32>
    %29 = arith.mulf %3, %28 : vector<4x8x128xf32>
    %cst_16 = arith.constant dense<0.000000e+00> : vector<4x8xf32>
    %30 = vector.multi_reduction <add>, %29, %cst_16 [2] : vector<4x8x128xf32> to vector<4x8xf32>
    %31 = vector.shape_cast %30 : vector<4x8xf32> to vector<4x8x1xf32>
    %c1_i32_17 = arith.constant 1 : i32
    %32 = arith.addi %0, %c1_i32_17 : i32
    %c0_18 = arith.constant 0 : index
    %33 = arith.index_cast %32 : i32 to index
    %c1_19 = arith.constant 1 : index
    %c0_20 = arith.constant 0 : index
    %34 = vector.load %arg3[%c0_18, %33, %c1_19, %c0_20] : memref<1x12x10x128xf32, #tpu.memory_space<vmem>>, vector<1x4x8x128xf32>
    %35 = vector.shape_cast %34 : vector<1x4x8x128xf32> to vector<4x8x128xf32>
    %36 = arith.mulf %3, %35 : vector<4x8x128xf32>
    %cst_21 = arith.constant dense<0.000000e+00> : vector<4x8xf32>
    %37 = vector.multi_reduction <add>, %36, %cst_21 [2] : vector<4x8x128xf32> to vector<4x8xf32>
    %38 = vector.shape_cast %37 : vector<4x8xf32> to vector<4x8x1xf32>
    %c1_i32_22 = arith.constant 1 : i32
    %39 = arith.addi %0, %c1_i32_22 : i32
    %c0_23 = arith.constant 0 : index
    %40 = arith.index_cast %39 : i32 to index
    %c2_24 = arith.constant 2 : index
    %c0_25 = arith.constant 0 : index
    %41 = vector.load %arg3[%c0_23, %40, %c2_24, %c0_25] : memref<1x12x10x128xf32, #tpu.memory_space<vmem>>, vector<1x4x8x128xf32>
    %42 = vector.shape_cast %41 : vector<1x4x8x128xf32> to vector<4x8x128xf32>
    %43 = arith.mulf %3, %42 : vector<4x8x128xf32>
    %cst_26 = arith.constant dense<0.000000e+00> : vector<4x8xf32>
    %44 = vector.multi_reduction <add>, %43, %cst_26 [2] : vector<4x8x128xf32> to vector<4x8xf32>
    %45 = vector.shape_cast %44 : vector<4x8xf32> to vector<4x8x1xf32>
    %c2_i32_27 = arith.constant 2 : i32
    %46 = arith.addi %0, %c2_i32_27 : i32
    %c0_28 = arith.constant 0 : index
    %47 = arith.index_cast %46 : i32 to index
    %c0_29 = arith.constant 0 : index
    %c0_30 = arith.constant 0 : index
    %48 = vector.load %arg3[%c0_28, %47, %c0_29, %c0_30] : memref<1x12x10x128xf32, #tpu.memory_space<vmem>>, vector<1x4x8x128xf32>
    %49 = vector.shape_cast %48 : vector<1x4x8x128xf32> to vector<4x8x128xf32>
    %50 = arith.mulf %3, %49 : vector<4x8x128xf32>
    %cst_31 = arith.constant dense<0.000000e+00> : vector<4x8xf32>
    %51 = vector.multi_reduction <add>, %50, %cst_31 [2] : vector<4x8x128xf32> to vector<4x8xf32>
    %52 = vector.shape_cast %51 : vector<4x8xf32> to vector<4x8x1xf32>
    %c2_i32_32 = arith.constant 2 : i32
    %53 = arith.addi %0, %c2_i32_32 : i32
    %c0_33 = arith.constant 0 : index
    %54 = arith.index_cast %53 : i32 to index
    %c1_34 = arith.constant 1 : index
    %c0_35 = arith.constant 0 : index
    %55 = vector.load %arg3[%c0_33, %54, %c1_34, %c0_35] : memref<1x12x10x128xf32, #tpu.memory_space<vmem>>, vector<1x4x8x128xf32>
    %56 = vector.shape_cast %55 : vector<1x4x8x128xf32> to vector<4x8x128xf32>
    %57 = arith.mulf %3, %56 : vector<4x8x128xf32>
    %cst_36 = arith.constant dense<0.000000e+00> : vector<4x8xf32>
    %58 = vector.multi_reduction <add>, %57, %cst_36 [2] : vector<4x8x128xf32> to vector<4x8xf32>
    %59 = vector.shape_cast %58 : vector<4x8xf32> to vector<4x8x1xf32>
    %c2_i32_37 = arith.constant 2 : i32
    %60 = arith.addi %0, %c2_i32_37 : i32
    %c0_38 = arith.constant 0 : index
    %61 = arith.index_cast %60 : i32 to index
    %c2_39 = arith.constant 2 : index
    %c0_40 = arith.constant 0 : index
    %62 = vector.load %arg3[%c0_38, %61, %c2_39, %c0_40] : memref<1x12x10x128xf32, #tpu.memory_space<vmem>>, vector<1x4x8x128xf32>
    %63 = vector.shape_cast %62 : vector<1x4x8x128xf32> to vector<4x8x128xf32>
    %64 = arith.mulf %3, %63 : vector<4x8x128xf32>
    %cst_41 = arith.constant dense<0.000000e+00> : vector<4x8xf32>
    %65 = vector.multi_reduction <add>, %64, %cst_41 [2] : vector<4x8x128xf32> to vector<4x8xf32>
    %66 = vector.shape_cast %65 : vector<4x8xf32> to vector<4x8x1xf32>
    %67 = tpu.concatenate %10, %17, %24, %31, %38, %45, %52, %59, %66 in 2 : vector<4x8x1xf32>, vector<4x8x1xf32>, vector<4x8x1xf32>, vector<4x8x1xf32>, vector<4x8x1xf32>, vector<4x8x1xf32>, vector<4x8x1xf32>, vector<4x8x1xf32>, vector<4x8x1xf32> -> vector<4x8x9xf32>
    %cst_42 = arith.constant dense<0xFF800000> : vector<4x8xf32>
    %68 = vector.multi_reduction <maximumf>, %67, %cst_42 [2] : vector<4x8x9xf32> to vector<4x8xf32>
    %69 = vector.shape_cast %68 : vector<4x8xf32> to vector<4x8x1xf32>
    %70 = vector.broadcast %69 : vector<4x8x1xf32> to vector<4x8x9xf32>
    %71 = arith.subf %67, %70 : vector<4x8x9xf32>
    %72 = math.exp %71 : vector<4x8x9xf32>
    %cst_43 = arith.constant dense<0.000000e+00> : vector<4x8xf32>
    %73 = vector.multi_reduction <add>, %72, %cst_43 [2] : vector<4x8x9xf32> to vector<4x8xf32>
    %74 = vector.shape_cast %73 : vector<4x8xf32> to vector<4x8x1xf32>
    %75 = tpu.reciprocal %74 {approx = true} : vector<4x8x1xf32> -> vector<4x8x1xf32>
    %76 = arith.mulf %74, %75 : vector<4x8x1xf32>
    %cst_44 = arith.constant 2.000000e+00 : f32
    %77 = vector.broadcast %cst_44 : f32 to vector<4x8x1xf32>
    %78 = arith.subf %77, %76 : vector<4x8x1xf32>
    %79 = arith.mulf %75, %78 : vector<4x8x1xf32>
    %cst_45 = arith.constant 0.000000e+00 : f32
    %80 = vector.broadcast %cst_45 : f32 to vector<4x8x128xf32>
    %81 = vector.extract_strided_slice %72 {offsets = [0, 0, 0], sizes = [4, 8, 1], strides = [1, 1, 1]} : vector<4x8x9xf32> to vector<4x8x1xf32>
    %c0_i32_46 = arith.constant 0 : i32
    %82 = arith.addi %0, %c0_i32_46 : i32
    %c0_47 = arith.constant 0 : index
    %83 = arith.index_cast %82 : i32 to index
    %c0_48 = arith.constant 0 : index
    %c0_49 = arith.constant 0 : index
    %84 = vector.load %arg3[%c0_47, %83, %c0_48, %c0_49] : memref<1x12x10x128xf32, #tpu.memory_space<vmem>>, vector<1x4x8x128xf32>
    %85 = vector.shape_cast %84 : vector<1x4x8x128xf32> to vector<4x8x128xf32>
    %86 = vector.broadcast %81 : vector<4x8x1xf32> to vector<4x8x128xf32>
    %87 = arith.mulf %86, %85 : vector<4x8x128xf32>
    %88 = arith.addf %80, %87 : vector<4x8x128xf32>
    %89 = vector.extract_strided_slice %72 {offsets = [0, 0, 1], sizes = [4, 8, 1], strides = [1, 1, 1]} : vector<4x8x9xf32> to vector<4x8x1xf32>
    %c0_i32_50 = arith.constant 0 : i32
    %90 = arith.addi %0, %c0_i32_50 : i32
    %c0_51 = arith.constant 0 : index
    %91 = arith.index_cast %90 : i32 to index
    %c1_52 = arith.constant 1 : index
    %c0_53 = arith.constant 0 : index
    %92 = vector.load %arg3[%c0_51, %91, %c1_52, %c0_53] : memref<1x12x10x128xf32, #tpu.memory_space<vmem>>, vector<1x4x8x128xf32>
    %93 = vector.shape_cast %92 : vector<1x4x8x128xf32> to vector<4x8x128xf32>
    %94 = vector.broadcast %89 : vector<4x8x1xf32> to vector<4x8x128xf32>
    %95 = arith.mulf %94, %93 : vector<4x8x128xf32>
    %96 = arith.addf %88, %95 : vector<4x8x128xf32>
    %97 = vector.extract_strided_slice %72 {offsets = [0, 0, 2], sizes = [4, 8, 1], strides = [1, 1, 1]} : vector<4x8x9xf32> to vector<4x8x1xf32>
    %c0_i32_54 = arith.constant 0 : i32
    %98 = arith.addi %0, %c0_i32_54 : i32
    %c0_55 = arith.constant 0 : index
    %99 = arith.index_cast %98 : i32 to index
    %c2_56 = arith.constant 2 : index
    %c0_57 = arith.constant 0 : index
    %100 = vector.load %arg3[%c0_55, %99, %c2_56, %c0_57] : memref<1x12x10x128xf32, #tpu.memory_space<vmem>>, vector<1x4x8x128xf32>
    %101 = vector.shape_cast %100 : vector<1x4x8x128xf32> to vector<4x8x128xf32>
    %102 = vector.broadcast %97 : vector<4x8x1xf32> to vector<4x8x128xf32>
    %103 = arith.mulf %102, %101 : vector<4x8x128xf32>
    %104 = arith.addf %96, %103 : vector<4x8x128xf32>
    %105 = vector.extract_strided_slice %72 {offsets = [0, 0, 3], sizes = [4, 8, 1], strides = [1, 1, 1]} : vector<4x8x9xf32> to vector<4x8x1xf32>
    %c1_i32_58 = arith.constant 1 : i32
    %106 = arith.addi %0, %c1_i32_58 : i32
    %c0_59 = arith.constant 0 : index
    %107 = arith.index_cast %106 : i32 to index
    %c0_60 = arith.constant 0 : index
    %c0_61 = arith.constant 0 : index
    %108 = vector.load %arg3[%c0_59, %107, %c0_60, %c0_61] : memref<1x12x10x128xf32, #tpu.memory_space<vmem>>, vector<1x4x8x128xf32>
    %109 = vector.shape_cast %108 : vector<1x4x8x128xf32> to vector<4x8x128xf32>
    %110 = vector.broadcast %105 : vector<4x8x1xf32> to vector<4x8x128xf32>
    %111 = arith.mulf %110, %109 : vector<4x8x128xf32>
    %112 = arith.addf %104, %111 : vector<4x8x128xf32>
    %113 = vector.extract_strided_slice %72 {offsets = [0, 0, 4], sizes = [4, 8, 1], strides = [1, 1, 1]} : vector<4x8x9xf32> to vector<4x8x1xf32>
    %c1_i32_62 = arith.constant 1 : i32
    %114 = arith.addi %0, %c1_i32_62 : i32
    %c0_63 = arith.constant 0 : index
    %115 = arith.index_cast %114 : i32 to index
    %c1_64 = arith.constant 1 : index
    %c0_65 = arith.constant 0 : index
    %116 = vector.load %arg3[%c0_63, %115, %c1_64, %c0_65] : memref<1x12x10x128xf32, #tpu.memory_space<vmem>>, vector<1x4x8x128xf32>
    %117 = vector.shape_cast %116 : vector<1x4x8x128xf32> to vector<4x8x128xf32>
    %118 = vector.broadcast %113 : vector<4x8x1xf32> to vector<4x8x128xf32>
    %119 = arith.mulf %118, %117 : vector<4x8x128xf32>
    %120 = arith.addf %112, %119 : vector<4x8x128xf32>
    %121 = vector.extract_strided_slice %72 {offsets = [0, 0, 5], sizes = [4, 8, 1], strides = [1, 1, 1]} : vector<4x8x9xf32> to vector<4x8x1xf32>
    %c1_i32_66 = arith.constant 1 : i32
    %122 = arith.addi %0, %c1_i32_66 : i32
    %c0_67 = arith.constant 0 : index
    %123 = arith.index_cast %122 : i32 to index
    %c2_68 = arith.constant 2 : index
    %c0_69 = arith.constant 0 : index
    %124 = vector.load %arg3[%c0_67, %123, %c2_68, %c0_69] : memref<1x12x10x128xf32, #tpu.memory_space<vmem>>, vector<1x4x8x128xf32>
    %125 = vector.shape_cast %124 : vector<1x4x8x128xf32> to vector<4x8x128xf32>
    %126 = vector.broadcast %121 : vector<4x8x1xf32> to vector<4x8x128xf32>
    %127 = arith.mulf %126, %125 : vector<4x8x128xf32>
    %128 = arith.addf %120, %127 : vector<4x8x128xf32>
    %129 = vector.extract_strided_slice %72 {offsets = [0, 0, 6], sizes = [4, 8, 1], strides = [1, 1, 1]} : vector<4x8x9xf32> to vector<4x8x1xf32>
    %c2_i32_70 = arith.constant 2 : i32
    %130 = arith.addi %0, %c2_i32_70 : i32
    %c0_71 = arith.constant 0 : index
    %131 = arith.index_cast %130 : i32 to index
    %c0_72 = arith.constant 0 : index
    %c0_73 = arith.constant 0 : index
    %132 = vector.load %arg3[%c0_71, %131, %c0_72, %c0_73] : memref<1x12x10x128xf32, #tpu.memory_space<vmem>>, vector<1x4x8x128xf32>
    %133 = vector.shape_cast %132 : vector<1x4x8x128xf32> to vector<4x8x128xf32>
    %134 = vector.broadcast %129 : vector<4x8x1xf32> to vector<4x8x128xf32>
    %135 = arith.mulf %134, %133 : vector<4x8x128xf32>
    %136 = arith.addf %128, %135 : vector<4x8x128xf32>
    %137 = vector.extract_strided_slice %72 {offsets = [0, 0, 7], sizes = [4, 8, 1], strides = [1, 1, 1]} : vector<4x8x9xf32> to vector<4x8x1xf32>
    %c2_i32_74 = arith.constant 2 : i32
    %138 = arith.addi %0, %c2_i32_74 : i32
    %c0_75 = arith.constant 0 : index
    %139 = arith.index_cast %138 : i32 to index
    %c1_76 = arith.constant 1 : index
    %c0_77 = arith.constant 0 : index
    %140 = vector.load %arg3[%c0_75, %139, %c1_76, %c0_77] : memref<1x12x10x128xf32, #tpu.memory_space<vmem>>, vector<1x4x8x128xf32>
    %141 = vector.shape_cast %140 : vector<1x4x8x128xf32> to vector<4x8x128xf32>
    %142 = vector.broadcast %137 : vector<4x8x1xf32> to vector<4x8x128xf32>
    %143 = arith.mulf %142, %141 : vector<4x8x128xf32>
    %144 = arith.addf %136, %143 : vector<4x8x128xf32>
    %145 = vector.extract_strided_slice %72 {offsets = [0, 0, 8], sizes = [4, 8, 1], strides = [1, 1, 1]} : vector<4x8x9xf32> to vector<4x8x1xf32>
    %c2_i32_78 = arith.constant 2 : i32
    %146 = arith.addi %0, %c2_i32_78 : i32
    %c0_79 = arith.constant 0 : index
    %147 = arith.index_cast %146 : i32 to index
    %c2_80 = arith.constant 2 : index
    %c0_81 = arith.constant 0 : index
    %148 = vector.load %arg3[%c0_79, %147, %c2_80, %c0_81] : memref<1x12x10x128xf32, #tpu.memory_space<vmem>>, vector<1x4x8x128xf32>
    %149 = vector.shape_cast %148 : vector<1x4x8x128xf32> to vector<4x8x128xf32>
    %150 = vector.broadcast %145 : vector<4x8x1xf32> to vector<4x8x128xf32>
    %151 = arith.mulf %150, %149 : vector<4x8x128xf32>
    %152 = arith.addf %144, %151 : vector<4x8x128xf32>
    %153 = vector.broadcast %79 : vector<4x8x1xf32> to vector<4x8x128xf32>
    %154 = arith.mulf %152, %153 : vector<4x8x128xf32>
    %cst_82 = arith.constant 0.000000e+00 : f32
    %155 = vector.broadcast %cst_82 : f32 to vector<4x1x128xf32>
    %c0_83 = arith.constant 0 : index
    %c0_84 = arith.constant 0 : index
    %c0_85 = arith.constant 0 : index
    %156 = vector.load %arg10[%c0_83, %c0_84, %c0_85] : memref<4x10x128xf32, #tpu.memory_space<vmem>>, vector<4x1x128xf32>
    tpu.vector_store %arg10[%c0_83, %c0_84, %c0_85], %155 {strides = array<i32>} : memref<4x10x128xf32, #tpu.memory_space<vmem>>, vector<4x1x128xf32>,
    %cst_86 = arith.constant 0.000000e+00 : f32
    %157 = vector.broadcast %cst_86 : f32 to vector<4x1x128xf32>
    %c0_87 = arith.constant 0 : index
    %c9 = arith.constant 9 : index
    %c0_88 = arith.constant 0 : index
    %158 = vector.load %arg10[%c0_87, %c9, %c0_88] : memref<4x10x128xf32, #tpu.memory_space<vmem>>, vector<4x1x128xf32>
    tpu.vector_store %arg10[%c0_87, %c9, %c0_88], %157 {strides = array<i32>} : memref<4x10x128xf32, #tpu.memory_space<vmem>>, vector<4x1x128xf32>,
    %c0_89 = arith.constant 0 : index
    %c1_90 = arith.constant 1 : index
    %c0_91 = arith.constant 0 : index
    %159 = vector.load %arg10[%c0_89, %c1_90, %c0_91] : memref<4x10x128xf32, #tpu.memory_space<vmem>>, vector<4x8x128xf32>
    tpu.vector_store %arg10[%c0_89, %c1_90, %c0_91], %154 {strides = array<i32>} : memref<4x10x128xf32, #tpu.memory_space<vmem>>, vector<4x8x128xf32>,
    %c0_i32_92 = arith.constant 0 : i32
    %160 = arith.cmpi eq, %arg1, %c0_i32_92 : i32
    %161 = arith.extui %160 : i1 to i32
    %c0_i32_93 = arith.constant 0 : i32
    %162 = arith.cmpi ne, %161, %c0_i32_93 : i32
    scf.if %162 {
      %cst_195 = arith.constant 0.000000e+00 : f32
      %260 = vector.broadcast %cst_195 : f32 to vector<1x10x128xf32>
      %c0_196 = arith.constant 0 : index
      %c0_197 = arith.constant 0 : index
      %c0_198 = arith.constant 0 : index
      %261 = vector.load %arg10[%c0_196, %c0_197, %c0_198] : memref<4x10x128xf32, #tpu.memory_space<vmem>>, vector<1x10x128xf32>
      tpu.vector_store %arg10[%c0_196, %c0_197, %c0_198], %260 {strides = array<i32>} : memref<4x10x128xf32, #tpu.memory_space<vmem>>, vector<1x10x128xf32>,
    } else {
    }
    %c3_i32 = arith.constant 3 : i32
    %163 = arith.cmpi eq, %arg1, %c3_i32 : i32
    %164 = arith.extui %163 : i1 to i32
    %c0_i32_94 = arith.constant 0 : i32
    %165 = arith.cmpi ne, %164, %c0_i32_94 : i32
    scf.if %165 {
      %cst_195 = arith.constant 0.000000e+00 : f32
      %260 = vector.broadcast %cst_195 : f32 to vector<1x10x128xf32>
      %c3 = arith.constant 3 : index
      %c0_196 = arith.constant 0 : index
      %c0_197 = arith.constant 0 : index
      %261 = vector.load %arg10[%c3, %c0_196, %c0_197] : memref<4x10x128xf32, #tpu.memory_space<vmem>>, vector<1x10x128xf32>
      tpu.vector_store %arg10[%c3, %c0_196, %c0_197], %260 {strides = array<i32>} : memref<4x10x128xf32, #tpu.memory_space<vmem>>, vector<1x10x128xf32>,
    } else {
    }
    %c0_95 = arith.constant 0 : index
    %c0_96 = arith.constant 0 : index
    %c0_97 = arith.constant 0 : index
    %166 = vector.load %arg10[%c0_95, %c0_96, %c0_97] : memref<4x10x128xf32, #tpu.memory_space<vmem>>, vector<2x8x128xf32>
    %c0_i32_98 = arith.constant 0 : i32
    %167 = arith.addi %0, %c0_i32_98 : i32
    %c0_99 = arith.constant 0 : index
    %168 = arith.index_cast %167 : i32 to index
    %c0_100 = arith.constant 0 : index
    %c0_101 = arith.constant 0 : index
    %169 = vector.load %arg4[%c0_99, %168, %c0_100, %c0_101] : memref<1x10x10x128xf32, #tpu.memory_space<vmem>>, vector<1x2x8x128xf32>
    %170 = vector.shape_cast %169 : vector<1x2x8x128xf32> to vector<2x8x128xf32>
    %171 = tpu.concatenate %166, %170 in 2 : vector<2x8x128xf32>, vector<2x8x128xf32> -> vector<2x8x256xf32>
    %c0_102 = arith.constant 0 : index
    %c0_103 = arith.constant 0 : index
    %c0_104 = arith.constant 0 : index
    %172 = vector.load %arg11[%c0_102, %c0_103, %c0_104] : memref<2x8x2304xf32, #tpu.memory_space<vmem>>, vector<2x8x256xf32>
    tpu.vector_store %arg11[%c0_102, %c0_103, %c0_104], %171 {strides = array<i32>} : memref<2x8x2304xf32, #tpu.memory_space<vmem>>, vector<2x8x256xf32>,
    %c0_105 = arith.constant 0 : index
    %c1_106 = arith.constant 1 : index
    %c0_107 = arith.constant 0 : index
    %173 = vector.load %arg10[%c0_105, %c1_106, %c0_107] : memref<4x10x128xf32, #tpu.memory_space<vmem>>, vector<2x8x128xf32>
    %c0_i32_108 = arith.constant 0 : i32
    %174 = arith.addi %0, %c0_i32_108 : i32
    %c0_109 = arith.constant 0 : index
    %175 = arith.index_cast %174 : i32 to index
    %c1_110 = arith.constant 1 : index
    %c0_111 = arith.constant 0 : index
    %176 = vector.load %arg4[%c0_109, %175, %c1_110, %c0_111] : memref<1x10x10x128xf32, #tpu.memory_space<vmem>>, vector<1x2x8x128xf32>
    %177 = vector.shape_cast %176 : vector<1x2x8x128xf32> to vector<2x8x128xf32>
    %178 = tpu.concatenate %173, %177 in 2 : vector<2x8x128xf32>, vector<2x8x128xf32> -> vector<2x8x256xf32>
    %c0_112 = arith.constant 0 : index
    %c0_113 = arith.constant 0 : index
    %c256 = arith.constant 256 : index
    %179 = vector.load %arg11[%c0_112, %c0_113, %c256] : memref<2x8x2304xf32, #tpu.memory_space<vmem>>, vector<2x8x256xf32>
    tpu.vector_store %arg11[%c0_112, %c0_113, %c256], %178 {strides = array<i32>} : memref<2x8x2304xf32, #tpu.memory_space<vmem>>, vector<2x8x256xf32>,
    %c0_114 = arith.constant 0 : index
    %c2_115 = arith.constant 2 : index
    %c0_116 = arith.constant 0 : index
    %180 = vector.load %arg10[%c0_114, %c2_115, %c0_116] : memref<4x10x128xf32, #tpu.memory_space<vmem>>, vector<2x8x128xf32>
    %c0_i32_117 = arith.constant 0 : i32
    %181 = arith.addi %0, %c0_i32_117 : i32
    %c0_118 = arith.constant 0 : index
    %182 = arith.index_cast %181 : i32 to index
    %c2_119 = arith.constant 2 : index
    %c0_120 = arith.constant 0 : index
    %183 = vector.load %arg4[%c0_118, %182, %c2_119, %c0_120] : memref<1x10x10x128xf32, #tpu.memory_space<vmem>>, vector<1x2x8x128xf32>
    %184 = vector.shape_cast %183 : vector<1x2x8x128xf32> to vector<2x8x128xf32>
    %185 = tpu.concatenate %180, %184 in 2 : vector<2x8x128xf32>, vector<2x8x128xf32> -> vector<2x8x256xf32>
    %c0_121 = arith.constant 0 : index
    %c0_122 = arith.constant 0 : index
    %c512 = arith.constant 512 : index
    %186 = vector.load %arg11[%c0_121, %c0_122, %c512] : memref<2x8x2304xf32, #tpu.memory_space<vmem>>, vector<2x8x256xf32>
    tpu.vector_store %arg11[%c0_121, %c0_122, %c512], %185 {strides = array<i32>} : memref<2x8x2304xf32, #tpu.memory_space<vmem>>, vector<2x8x256xf32>,
    %c1_123 = arith.constant 1 : index
    %c0_124 = arith.constant 0 : index
    %c0_125 = arith.constant 0 : index
    %187 = vector.load %arg10[%c1_123, %c0_124, %c0_125] : memref<4x10x128xf32, #tpu.memory_space<vmem>>, vector<2x8x128xf32>
    %c1_i32_126 = arith.constant 1 : i32
    %188 = arith.addi %0, %c1_i32_126 : i32
    %c0_127 = arith.constant 0 : index
    %189 = arith.index_cast %188 : i32 to index
    %c0_128 = arith.constant 0 : index
    %c0_129 = arith.constant 0 : index
    %190 = vector.load %arg4[%c0_127, %189, %c0_128, %c0_129] : memref<1x10x10x128xf32, #tpu.memory_space<vmem>>, vector<1x2x8x128xf32>
    %191 = vector.shape_cast %190 : vector<1x2x8x128xf32> to vector<2x8x128xf32>
    %192 = tpu.concatenate %187, %191 in 2 : vector<2x8x128xf32>, vector<2x8x128xf32> -> vector<2x8x256xf32>
    %c0_130 = arith.constant 0 : index
    %c0_131 = arith.constant 0 : index
    %c768 = arith.constant 768 : index
    %193 = vector.load %arg11[%c0_130, %c0_131, %c768] : memref<2x8x2304xf32, #tpu.memory_space<vmem>>, vector<2x8x256xf32>
    tpu.vector_store %arg11[%c0_130, %c0_131, %c768], %192 {strides = array<i32>} : memref<2x8x2304xf32, #tpu.memory_space<vmem>>, vector<2x8x256xf32>,
    %c1_132 = arith.constant 1 : index
    %c1_133 = arith.constant 1 : index
    %c0_134 = arith.constant 0 : index
    %194 = vector.load %arg10[%c1_132, %c1_133, %c0_134] : memref<4x10x128xf32, #tpu.memory_space<vmem>>, vector<2x8x128xf32>
    %c1_i32_135 = arith.constant 1 : i32
    %195 = arith.addi %0, %c1_i32_135 : i32
    %c0_136 = arith.constant 0 : index
    %196 = arith.index_cast %195 : i32 to index
    %c1_137 = arith.constant 1 : index
    %c0_138 = arith.constant 0 : index
    %197 = vector.load %arg4[%c0_136, %196, %c1_137, %c0_138] : memref<1x10x10x128xf32, #tpu.memory_space<vmem>>, vector<1x2x8x128xf32>
    %198 = vector.shape_cast %197 : vector<1x2x8x128xf32> to vector<2x8x128xf32>
    %199 = tpu.concatenate %194, %198 in 2 : vector<2x8x128xf32>, vector<2x8x128xf32> -> vector<2x8x256xf32>
    %c0_139 = arith.constant 0 : index
    %c0_140 = arith.constant 0 : index
    %c1024 = arith.constant 1024 : index
    %200 = vector.load %arg11[%c0_139, %c0_140, %c1024] : memref<2x8x2304xf32, #tpu.memory_space<vmem>>, vector<2x8x256xf32>
    tpu.vector_store %arg11[%c0_139, %c0_140, %c1024], %199 {strides = array<i32>} : memref<2x8x2304xf32, #tpu.memory_space<vmem>>, vector<2x8x256xf32>,
    %c1_141 = arith.constant 1 : index
    %c2_142 = arith.constant 2 : index
    %c0_143 = arith.constant 0 : index
    %201 = vector.load %arg10[%c1_141, %c2_142, %c0_143] : memref<4x10x128xf32, #tpu.memory_space<vmem>>, vector<2x8x128xf32>
    %c1_i32_144 = arith.constant 1 : i32
    %202 = arith.addi %0, %c1_i32_144 : i32
    %c0_145 = arith.constant 0 : index
    %203 = arith.index_cast %202 : i32 to index
    %c2_146 = arith.constant 2 : index
    %c0_147 = arith.constant 0 : index
    %204 = vector.load %arg4[%c0_145, %203, %c2_146, %c0_147] : memref<1x10x10x128xf32, #tpu.memory_space<vmem>>, vector<1x2x8x128xf32>
    %205 = vector.shape_cast %204 : vector<1x2x8x128xf32> to vector<2x8x128xf32>
    %206 = tpu.concatenate %201, %205 in 2 : vector<2x8x128xf32>, vector<2x8x128xf32> -> vector<2x8x256xf32>
    %c0_148 = arith.constant 0 : index
    %c0_149 = arith.constant 0 : index
    %c1280 = arith.constant 1280 : index
    %207 = vector.load %arg11[%c0_148, %c0_149, %c1280] : memref<2x8x2304xf32, #tpu.memory_space<vmem>>, vector<2x8x256xf32>
    tpu.vector_store %arg11[%c0_148, %c0_149, %c1280], %206 {strides = array<i32>} : memref<2x8x2304xf32, #tpu.memory_space<vmem>>, vector<2x8x256xf32>,
    %c2_150 = arith.constant 2 : index
    %c0_151 = arith.constant 0 : index
    %c0_152 = arith.constant 0 : index
    %208 = vector.load %arg10[%c2_150, %c0_151, %c0_152] : memref<4x10x128xf32, #tpu.memory_space<vmem>>, vector<2x8x128xf32>
    %c2_i32_153 = arith.constant 2 : i32
    %209 = arith.addi %0, %c2_i32_153 : i32
    %c0_154 = arith.constant 0 : index
    %210 = arith.index_cast %209 : i32 to index
    %c0_155 = arith.constant 0 : index
    %c0_156 = arith.constant 0 : index
    %211 = vector.load %arg4[%c0_154, %210, %c0_155, %c0_156] : memref<1x10x10x128xf32, #tpu.memory_space<vmem>>, vector<1x2x8x128xf32>
    %212 = vector.shape_cast %211 : vector<1x2x8x128xf32> to vector<2x8x128xf32>
    %213 = tpu.concatenate %208, %212 in 2 : vector<2x8x128xf32>, vector<2x8x128xf32> -> vector<2x8x256xf32>
    %c0_157 = arith.constant 0 : index
    %c0_158 = arith.constant 0 : index
    %c1536 = arith.constant 1536 : index
    %214 = vector.load %arg11[%c0_157, %c0_158, %c1536] : memref<2x8x2304xf32, #tpu.memory_space<vmem>>, vector<2x8x256xf32>
    tpu.vector_store %arg11[%c0_157, %c0_158, %c1536], %213 {strides = array<i32>} : memref<2x8x2304xf32, #tpu.memory_space<vmem>>, vector<2x8x256xf32>,
    %c2_159 = arith.constant 2 : index
    %c1_160 = arith.constant 1 : index
    %c0_161 = arith.constant 0 : index
    %215 = vector.load %arg10[%c2_159, %c1_160, %c0_161] : memref<4x10x128xf32, #tpu.memory_space<vmem>>, vector<2x8x128xf32>
    %c2_i32_162 = arith.constant 2 : i32
    %216 = arith.addi %0, %c2_i32_162 : i32
    %c0_163 = arith.constant 0 : index
    %217 = arith.index_cast %216 : i32 to index
    %c1_164 = arith.constant 1 : index
    %c0_165 = arith.constant 0 : index
    %218 = vector.load %arg4[%c0_163, %217, %c1_164, %c0_165] : memref<1x10x10x128xf32, #tpu.memory_space<vmem>>, vector<1x2x8x128xf32>
    %219 = vector.shape_cast %218 : vector<1x2x8x128xf32> to vector<2x8x128xf32>
    %220 = tpu.concatenate %215, %219 in 2 : vector<2x8x128xf32>, vector<2x8x128xf32> -> vector<2x8x256xf32>
    %c0_166 = arith.constant 0 : index
    %c0_167 = arith.constant 0 : index
    %c1792 = arith.constant 1792 : index
    %221 = vector.load %arg11[%c0_166, %c0_167, %c1792] : memref<2x8x2304xf32, #tpu.memory_space<vmem>>, vector<2x8x256xf32>
    tpu.vector_store %arg11[%c0_166, %c0_167, %c1792], %220 {strides = array<i32>} : memref<2x8x2304xf32, #tpu.memory_space<vmem>>, vector<2x8x256xf32>,
    %c2_168 = arith.constant 2 : index
    %c2_169 = arith.constant 2 : index
    %c0_170 = arith.constant 0 : index
    %222 = vector.load %arg10[%c2_168, %c2_169, %c0_170] : memref<4x10x128xf32, #tpu.memory_space<vmem>>, vector<2x8x128xf32>
    %c2_i32_171 = arith.constant 2 : i32
    %223 = arith.addi %0, %c2_i32_171 : i32
    %c0_172 = arith.constant 0 : index
    %224 = arith.index_cast %223 : i32 to index
    %c2_173 = arith.constant 2 : index
    %c0_174 = arith.constant 0 : index
    %225 = vector.load %arg4[%c0_172, %224, %c2_173, %c0_174] : memref<1x10x10x128xf32, #tpu.memory_space<vmem>>, vector<1x2x8x128xf32>
    %226 = vector.shape_cast %225 : vector<1x2x8x128xf32> to vector<2x8x128xf32>
    %227 = tpu.concatenate %222, %226 in 2 : vector<2x8x128xf32>, vector<2x8x128xf32> -> vector<2x8x256xf32>
    %c0_175 = arith.constant 0 : index
    %c0_176 = arith.constant 0 : index
    %c2048 = arith.constant 2048 : index
    %228 = vector.load %arg11[%c0_175, %c0_176, %c2048] : memref<2x8x2304xf32, #tpu.memory_space<vmem>>, vector<2x8x256xf32>
    tpu.vector_store %arg11[%c0_175, %c0_176, %c2048], %227 {strides = array<i32>} : memref<2x8x2304xf32, #tpu.memory_space<vmem>>, vector<2x8x256xf32>,
    %c0_177 = arith.constant 0 : index
    %c0_178 = arith.constant 0 : index
    %c0_179 = arith.constant 0 : index
    %229 = vector.load %arg11[%c0_177, %c0_178, %c0_179] : memref<2x8x2304xf32, #tpu.memory_space<vmem>>, vector<2x8x2304xf32>
    %230 = vector.shape_cast %229 : vector<2x8x2304xf32> to vector<16x2304xf32>
    %c0_180 = arith.constant 0 : index
    %c0_181 = arith.constant 0 : index
    %231 = vector.load %arg6[%c0_180, %c0_181] : memref<2304x512xf32, #tpu.memory_space<vmem>>, vector<2304x512xf32>
    %cst_182 = arith.constant dense<0.000000e+00> : vector<16x512xf32>
    %232 = tpu.matmul %230, %231, %cst_182 {dimension_numbers = #tpu.dot_dimension_numbers<[1], [0], [0], [1], [0, 0, 1, 1], [], []>} : vector<16x2304xf32>, vector<2304x512xf32>, vector<16x512xf32> -> vector<16x512xf32>
    %c0_183 = arith.constant 0 : index
    %c0_184 = arith.constant 0 : index
    %233 = vector.load %arg7[%c0_183, %c0_184] : memref<1x512xf32, #tpu.memory_space<vmem>>, vector<1x512xf32>
    %234 = vector.broadcast %233 : vector<1x512xf32> to vector<16x512xf32>
    %235 = arith.addf %232, %234 : vector<16x512xf32>
    %236 = vector.extract_strided_slice %235 {offsets = [0, 0], sizes = [16, 384], strides = [1, 1]} : vector<16x512xf32> to vector<16x384xf32>
    %237 = arith.negf %236 : vector<16x384xf32>
    %238 = math.exp %237 : vector<16x384xf32>
    %cst_185 = arith.constant 1.000000e+00 : f32
    %239 = vector.broadcast %cst_185 : f32 to vector<16x384xf32>
    %240 = arith.addf %239, %238 : vector<16x384xf32>
    %241 = arith.divf %239, %240 : vector<16x384xf32>
    %242 = vector.extract_strided_slice %235 {offsets = [0, 384], sizes = [16, 128], strides = [1, 1]} : vector<16x512xf32> to vector<16x128xf32>
    %243 = math.tanh %242 : vector<16x128xf32>
    %244 = vector.extract_strided_slice %241 {offsets = [0, 0], sizes = [16, 128], strides = [1, 1]} : vector<16x384xf32> to vector<16x128xf32>
    %245 = vector.extract_strided_slice %241 {offsets = [0, 128], sizes = [16, 128], strides = [1, 1]} : vector<16x384xf32> to vector<16x128xf32>
    %246 = vector.extract_strided_slice %241 {offsets = [0, 256], sizes = [16, 128], strides = [1, 1]} : vector<16x384xf32> to vector<16x128xf32>
    %c0_186 = arith.constant 0 : index
    %c0_187 = arith.constant 0 : index
    %c0_188 = arith.constant 0 : index
    %247 = vector.load %arg5[%c0_186, %c0_187, %c0_188] : memref<1x16x128xf32, #tpu.memory_space<vmem>>, vector<1x16x128xf32>
    %248 = vector.shape_cast %247 : vector<1x16x128xf32> to vector<16x128xf32>
    %249 = arith.mulf %245, %248 : vector<16x128xf32>
    %250 = arith.mulf %244, %243 : vector<16x128xf32>
    %251 = arith.addf %249, %250 : vector<16x128xf32>
    %c0_189 = arith.constant 0 : index
    %c0_190 = arith.constant 0 : index
    %c0_191 = arith.constant 0 : index
    %252 = vector.load %arg9[%c0_189, %c0_190, %c0_191] : memref<1x16x128xf32, #tpu.memory_space<vmem>>, vector<1x16x128xf32>
    %253 = vector.shape_cast %252 : vector<1x16x128xf32> to vector<16x128xf32>
    %254 = vector.shape_cast %251 : vector<16x128xf32> to vector<1x16x128xf32>
    tpu.vector_store %arg9[%c0_189, %c0_190, %c0_191], %254 {strides = array<i32>} : memref<1x16x128xf32, #tpu.memory_space<vmem>>, vector<1x16x128xf32>,
    %255 = math.tanh %251 : vector<16x128xf32>
    %256 = arith.mulf %246, %255 : vector<16x128xf32>
    %c0_192 = arith.constant 0 : index
    %c0_193 = arith.constant 0 : index
    %c0_194 = arith.constant 0 : index
    %257 = vector.load %arg8[%c0_192, %c0_193, %c0_194] : memref<1x16x128xf32, #tpu.memory_space<vmem>>, vector<1x16x128xf32>
    %258 = vector.shape_cast %257 : vector<1x16x128xf32> to vector<16x128xf32>
    %259 = vector.shape_cast %256 : vector<16x128xf32> to vector<1x16x128xf32>
    tpu.vector_store %arg8[%c0_192, %c0_193, %c0_194], %259 {strides = array<i32>} : memref<1x16x128xf32, #tpu.memory_space<vmem>>, vector<1x16x128xf32>,
    return
  }
  func.func @transform_0(%arg0: i32, %arg1: i32) -> (i32, i32, i32, i32) {
    %c0_i32 = arith.constant 0 : i32
    %c0_i32_0 = arith.constant 0 : i32
    %c0_i32_1 = arith.constant 0 : i32
    %c0_i32_2 = arith.constant 0 : i32
    return %arg0, %c0_i32, %c0_i32_0, %c0_i32_1 : i32, i32, i32, i32
  }
  func.func @transform_1(%arg0: i32, %arg1: i32) -> (i32, i32, i32, i32) {
    %c0_i32 = arith.constant 0 : i32
    %c0_i32_0 = arith.constant 0 : i32
    %c0_i32_1 = arith.constant 0 : i32
    %c0_i32_2 = arith.constant 0 : i32
    return %arg0, %c0_i32, %c0_i32_0, %c0_i32_1 : i32, i32, i32, i32
  }
  func.func @transform_2(%arg0: i32, %arg1: i32) -> (i32, i32, i32, i32) {
    %c0_i32 = arith.constant 0 : i32
    %c0_i32_0 = arith.constant 0 : i32
    %c0_i32_1 = arith.constant 0 : i32
    %c0_i32_2 = arith.constant 0 : i32
    return %arg0, %c0_i32, %c0_i32_0, %c0_i32_1 : i32, i32, i32, i32
  }
  func.func @transform_3(%arg0: i32, %arg1: i32) -> (i32, i32, i32) {
    %c0_i32 = arith.constant 0 : i32
    %c0_i32_0 = arith.constant 0 : i32
    return %arg0, %arg1, %c0_i32 : i32, i32, i32
  }
  func.func @transform_4(%arg0: i32, %arg1: i32) -> (i32, i32) {
    %c0_i32 = arith.constant 0 : i32
    %c0_i32_0 = arith.constant 0 : i32
    %c0_i32_1 = arith.constant 0 : i32
    return %c0_i32, %c0_i32_0 : i32, i32
  }
  func.func @transform_5(%arg0: i32, %arg1: i32) -> (i32, i32) {
    %c0_i32 = arith.constant 0 : i32
    %c0_i32_0 = arith.constant 0 : i32
    %c0_i32_1 = arith.constant 0 : i32
    return %c0_i32, %c0_i32_0 : i32, i32
  }
  func.func @transform_6(%arg0: i32, %arg1: i32) -> (i32, i32, i32) {
    %c0_i32 = arith.constant 0 : i32
    %c0_i32_0 = arith.constant 0 : i32
    return %arg0, %arg1, %c0_i32 : i32, i32, i32
  }
  func.func @transform_7(%arg0: i32, %arg1: i32) -> (i32, i32, i32) {
    %c0_i32 = arith.constant 0 : i32
    %c0_i32_0 = arith.constant 0 : i32
    return %arg0, %arg1, %c0_i32 : i32, i32, i32
  }
}

</mosaic_0001>

<bundles_post_ra>
// kernel: tpu_custom_call.1
= control target key start
LH: loop header
LB: loop body
LE: loop exit
PB: predicated region body
PF: predicated region fallthrough
CT: control target
= control target key end

     0   :  { %s6532_s0 = inlined_call_operand.hbm [shape: f32[2,10,8,128], index: 0, kind: input, shape index: {}]   ;;  %s6533_s1 = inlined_call_operand.vmem [shape: f32[2,12,10,128], index: 1, kind: input, shape index: {}]   ;;  %s6534_s2 = inlined_call_operand.vmem [shape: f32[2,10,10,128], index: 2, kind: input, shape index: {}]   ;;  %s6535_s3 = inlined_call_operand.hbm [shape: f32[2,64,128], index: 3, kind: input, shape index: {}, may-alias: {3,7}]   ;;  %s6536_s4 = inlined_call_operand.hbm [shape: f32[2304,512], index: 4, kind: input, shape index: {}]   ;;  %s6537_s5 = inlined_call_operand.hbm [shape: f32[1,512], index: 5, kind: input, shape index: {}]   ;;  %s6538_s6 = inlined_call_operand.hbm [shape: f32[2,64,128], index: 6, kind: output, shape index: {0}]   ;;  %s6539_s7 = inlined_call_operand.hbm [shape: f32[2,64,128], index: 7, kind: output, shape index: {1}, may-alias: {3,7}]  }
   0x1   :  { %6560 = sst [smem:[#allocation28_spill]] %s6532_s0 }
   0x2   :  { %6561 = sst [smem:[#allocation29_spill]] %s6533_s1 }
   0x3   :  { %6562 = sst [smem:[#allocation30_spill]] %s6534_s2 }
   0x4   :  { %6563 = sst [smem:[#allocation31_spill]] %s6536_s4 }
   0x5   :  { %6564 = sst [smem:[#allocation32_spill]] %s6537_s5 }
   0x6   :  { %6565 = sst [smem:[#allocation33_spill]] %s6538_s6 }
   0x7   :  { %6566 = sst [smem:[#allocation34_spill]] %s6539_s7 }
   0x8   :  { %13 = vsyncpa [#allocation5], 0 }
   0x9   :  { %15 = vsyncpa [#allocation5 + $0x1], 0 }
   0xa   :  { %16 = vsyncpa [#allocation8], 0 }
   0xb   :  { %18 = vsyncpa [#allocation8 + $0x1], 0 }
   0xc   :  { %19 = vsyncpa [#allocation11], 0 }
   0xd   :  { %20 = vsyncpa [#allocation6], 0 }
   0xe   :  { %22 = vsyncpa [#allocation6 + $0x1], 0 }
   0xf   :  { %23 = vsyncpa [#allocation14], 0 }
  0x10   :  { %25 = vsyncpa [#allocation14 + $0x1], 0  ;;  %s5801_s24 = smov 0   ;;  %s5803_s25 = smov 0  }
  0x11   :  { %s5805_s26 = smov 0   ;;  %s5807_s27 = smov 0  }
  0x12   :  { %s5809_s28 = smov 0   ;;  %s5811_s29 = smov 0  }
  0x13   :  { %s5813_s30 = smov 0   ;;  %s5815_s8 = smov 0  }
  0x14   :  { %s5817_s9 = smov 0   ;;  %s5819_s10 = smov 0  }
  0x15   :  { %s5821_s11 = smov 0  }
  0x16 LB: > { %6567 = sst [smem:[#allocation21_spill]] %s5695_s24  ;;  %s5855_s12 = sadd.s32 4294967295, %s5735_s11   ;;  %s5735_s11 = sphi %s5821_s11, %s31_s11   ;;  %s5731_s10 = sphi %s5819_s10, %s6621_s10   ;;  %s5727_s9 = sphi %s5817_s9, %s6620_s9   ;;  %s5723_s8 = sphi %s5815_s8, %s6619_s8   ;;  %s5719_s30 = sphi %s5813_s30, %s6618_s30   ;;  %s5715_s29 = sphi %s5811_s29, %s6617_s29   ;;  %s5711_s28 = sphi %s5809_s28, %s6616_s28   ;;  %s5707_s27 = sphi %s5807_s27, %s6615_s27   ;;  %s5703_s26 = sphi %s5805_s26, %s6614_s26   ;;  %s5699_s25 = sphi %s5803_s25, %s6613_s25   ;;  %s5695_s24 = sphi %s5801_s24, %s6612_s24  }
  0x17   : > { %6568 = sst [smem:[#allocation22_spill]] %s5719_s30  ;;  %s3919_s13 = sadd.s32 4294967294, %s5735_s11  }
  0x18   : > { %6569 = sst [smem:[#allocation23_spill]] %s5723_s8  ;;  %p63_p0 = scmp.ne.s32.totalorder %s5711_s28, %s5707_s27 }
  0x19   : > { %p6543_p1 = scmp.eq.s32.totalorder %s5855_s12, 0  ;;  %p143_p2 = scmp.ne.s32.totalorder %s5699_s25, %s5695_s24 }
  0x1a   : > { %p217_p4 = scmp.eq.s32.totalorder %s3919_s13, 7  ;;  %p3920_p6 = scmp.ge.s32.totalorder %s5735_s11, 1 }
  0x1b   : > { %p5864_p3 = por %p6543_p1, %p63_p0  ;;  %p5870_p5 = por %p143_p2, %p6543_p1 }
  0x1c   : > { %p5875_p7 = por %p217_p4, %p143_p2  ;;  %p252_p8 = scmp.lt.s32.totalorder %s5735_s11, 9 }
  0x1d   : > { %s6570_s14 = scalar_select %p5864_p3, 1, 0 }
  0x1e   : > { %s6571_s15 = scalar_select %p5870_p5, 1, 0 }
  0x1f   : > { %s6573_s16 = scalar_select %p5875_p7, 1, 0 }
  0x20   : > { %6572 = sst [smem:[#allocation24_spill]] %s6571_s15  ;;  %p5880_p9 = pnand %p3920_p6, %p252_p8 }
  0x21   : > { %6574 = sst [smem:[#allocation25_spill]] %s6573_s16  ;;  %s5737_s18 = smov [#allocation9]  }
  0x22   : > { %s6575_s17 = scalar_select %p5880_p9, 1, 0 }
  0x23   : > { %s264_s19 = sshll.u32 %s5737_s18, 4  ;;  %p5253_p10 = pneg %p5880_p9  ;;  %s265_s19 = int_to_ptr.vmem [resolvable:$true] %s264_s19 }
  0x24   : > { %s5738_s21 = smov [#allocation10]   ;;  %s6577_s4 = sld [smem:[#allocation31_spill]] }
  0x25   : > { %p5888_p11 = pnand %p5253_p10, %p6543_p1  ;;  %s278_s22 = sshll.u32 %s5738_s21, 4  ;;  %s5892_s22 = int_to_ptr.vmem [resolvable:$true] %s278_s22 }
  0x27   : > { %p5455_p13 = pneg %p5888_p11 }
  0x2a   : > { %s5453_s13 = scalar_lea.hbm %s6577_s4, 147456 }
  0x2b   : > { %p5454_p12 = scmp.ne.s32.totalorder %s6577_s4, %s5453_s13  ;;  %p5460_p4 = scmp.lt.u32.totalorder %s5453_s13, %s6577_s4 }
  0x2d   : > { %p5456_p0 = pnand %p5455_p13, %p5454_p12 }
  0x2f   : > { %p5457_p2 = pneg %p5456_p0 }
  0x31   : > { %p5462_p6 = pnand %p5460_p4, %p5457_p2 }
  0x33   : > { %5465 = shalt.err (!%p5462_p6)
}
  0x34   : > { %s5466_s21 = scalar_lea.vmem %s265_s19, 147456  ;;  %p5474_p7 = scmp.lt.s32.totalorder %s265_s19, %s265_s19 }
  0x35   : > { %p5467_p8 = scmp.ne.s32.totalorder %s265_s19, %s5466_s21  ;;  %p5475_p5 = scmp.lt.s32.totalorder %s5466_s21, %s5466_s21 }
  0x37   : > { %p5469_p10 = pnand %p5467_p8, %p5455_p13  ;;  %p5476_p3 = por %p5475_p5, %p5474_p7 }
  0x39   : > { %p5470_p1 = pneg %p5469_p10 }
  0x3b   : > { %p5477_p9 = pnand %p5476_p3, %p5470_p1 }
  0x3d   : > { %5480 = shalt.err (!%p5477_p9)
}
  0x3e   : > { %s5739_s16 = smov 512   ;;  %s5740_s23 = smov 32  }
  0x3f   : > { %5256 = dma.hbm_to_vmem [thread:$0]  (!%p5888_p11), %s6577_s4, 147456, %s265_s19, [#allocation8], %s5739_s16, %s5739_s16, %s5740_s23  }
  0x40   : > { %s6578_s5 = sld [smem:[#allocation32_spill]] }
  0x46   : > { %s5481_s18 = scalar_lea.hbm %s6578_s5, 64 }
  0x47   : > { %p5482_p12 = scmp.ne.s32.totalorder %s6578_s5, %s5481_s18  ;;  %p5488_p5 = scmp.lt.u32.totalorder %s5481_s18, %s6578_s5 }
  0x49   : > { %p5484_p1 = pnand %p5482_p12, %p5455_p13 }
  0x4b   : > { %p5485_p3 = pneg %p5484_p1 }
  0x4d   : > { %p5490_p7 = pnand %p5488_p5, %p5485_p3 }
  0x4f   : > { %5493 = shalt.err (!%p5490_p7)
}
  0x50   : > { %s5494_s19 = scalar_lea.vmem %s5892_s22, 64  ;;  %p5502_p4 = scmp.lt.s32.totalorder %s5892_s22, %s5892_s22 }
  0x51   : > { %p5495_p9 = scmp.ne.s32.totalorder %s5892_s22, %s5494_s19  ;;  %p5503_p6 = scmp.lt.s32.totalorder %s5494_s19, %s5494_s19 }
  0x53   : > { %p5497_p0 = pnand %p5495_p9, %p5455_p13  ;;  %p5504_p8 = por %p5503_p6, %p5502_p4 }
  0x55   : > { %p5498_p2 = pneg %p5497_p0 }
  0x57   : > { %p5505_p10 = pnand %p5504_p8, %p5498_p2 }
  0x59   : > { %5508 = shalt.err (!%p5505_p10)
}
  0x5a   : > { %5259 = dma.hbm_to_vmem [thread:$0]  (!%p5888_p11), %s6578_s5, 64, %s5892_s22, [#allocation11]  }
  0x5b   : > { %p211_p13 = scmp.eq.s32.totalorder %s5855_s12, 7  ;;  %s43_s7 = sadd.s32 1, %s5731_s10 }
  0x5c   : > { %p57_p12 = scmp.ne.s32.totalorder %s5715_s29, %s5711_s28  ;;  %p6549_p1 = scmp.eq.s32.totalorder %s5735_s11, 0 }
  0x5d   : > { %p6548_p3 = scmp.lt.s32.totalorder %s5735_s11, 8  ;;  %s289_s20 = sand.u32 1, %s5715_s29  }
  0x5e   : > { %p59_p5 = por %p6549_p1, %p57_p12  ;;  %s5232_s16 = smul.u32 80, %s289_s20 }
  0x5f   : > { %s5233_s23 = smul.u32 1280, %s5731_s10  ;;  %s6580_s0 = sld [smem:[#allocation28_spill]] }
  0x60   : > { %p5953_p7 = pnand %p6548_p3, %p59_p5  ;;  %s293_s13 = scalar_lea.vmem [#allocation4], %s5232_s16 }
  0x61   : > { %s300_s18 = sshll.u32 %s293_s13, 4  ;;  %s5964_s21 = scalar_lea.sflag [#allocation5], %s289_s20  ;;  %s5962_s18 = int_to_ptr.vmem [resolvable:$true] %s300_s18 }
  0x62   : > { %p5511_p9 = pneg %p5953_p7 }
  0x65   : > { %s5960_s22 = scalar_lea.hbm %s6580_s0, %s5233_s23  ;;  %s5514_s23 = scalar_lea.hbm %s6580_s0, 2560 }
  0x66   : > { %s5509_s19 = scalar_lea.hbm %s5960_s22, 1280  ;;  %p5515_p4 = scmp.lt.u32.totalorder %s5960_s22, %s6580_s0 }
  0x67   : > { %p5510_p11 = scmp.ne.s32.totalorder %s5960_s22, %s5509_s19  ;;  %p5516_p6 = scmp.lt.u32.totalorder %s5514_s23, %s5509_s19 }
  0x68   : > { %p5518_p10 = scmp.lt.u32.totalorder %s5509_s19, %s5960_s22 }
  0x69   : > { %p5512_p0 = pnand %p5511_p9, %p5510_p11  ;;  %p5517_p8 = por %p5516_p6, %p5515_p4 }
  0x6b   : > { %p5513_p2 = pneg %p5512_p0  ;;  %p5519_p12 = por %p5518_p10, %p5517_p8 }
  0x6d   : > { %p5520_p5 = pnand %p5519_p12, %p5513_p2 }
  0x6f   : > { %5523 = shalt.err (!%p5520_p5)
}
  0x70   : > { %s5524_s20 = scalar_lea.vmem %s5962_s18, 1280  ;;  %s5741_s16 = smov [#allocation4]  }
  0x71   : > { %p5525_p11 = scmp.ne.s32.totalorder %s5962_s18, %s5524_s20  ;;  %s5529_s13 = sshll.u32 %s5741_s16, 4  ;;  %s5530_s13 = int_to_ptr.vmem [resolvable:$false] %s5529_s13 }
  0x72   : > { %s5531_s1 = scalar_lea.vmem %s5530_s13, 2560  ;;  %p5532_p1 = scmp.lt.s32.totalorder %s5962_s18, %s5530_s13 }
  0x73   : > { %p5527_p0 = pnand %p5525_p11, %p5511_p9  ;;  %p5533_p4 = scmp.lt.s32.totalorder %s5531_s1, %s5524_s20 }
  0x75   : > { %p5528_p3 = pneg %p5527_p0  ;;  %p5534_p6 = por %p5533_p4, %p5532_p1 }
  0x77   : > { %p5535_p8 = pnand %p5534_p6, %p5528_p3 }
  0x79   : > { %5538 = shalt.err (!%p5535_p8)
}
  0x7a   : > { %s6550_s19 = smov 128   ;;  %s6551_s2 = smov 8  }
  0x7b   : > { %5263 = dma.hbm_to_vmem [thread:$0]  (!%p5953_p7), %s5960_s22, 1280, %s5962_s18, %s5964_s21, %s6550_s19, %s6550_s19, %s6551_s2  }
  0x7c   : > { %s50_s23 = sadd.s32 1, %s5715_s29  ;;  %s40_s24 = sadd.s32 1, %s5727_s9 }
  0x7d   : > { %p41_p1 = scmp.ge.s32.totalorder %s40_s24, 4  ;;  %s130_s27 = sadd.s32 1, %s5703_s26 }
  0x7e   : > { %p137_p3 = scmp.ne.s32.totalorder %s5703_s26, %s5699_s25  ;;  %s328_s20 = sand.u32 1, %s5703_s26  }
  0x7f   : > { %s6623_s24 = smov (%p41_p1, %s40_s24), 0  ;;  %s6625_s7 = smov (!%p41_p1, %s43_s7), %s5731_s10 }
  0x80   : > { %6581 = sst [smem:[#allocation26_spill]] %s6623_s24  ;;  %s126_s6 = ssub.s32 %s5727_s9, %s6623_s24 }
  0x81   : > { %s326_s16 = sand.u32 1, %s5735_s11   ;;  %p45_p9 = scmp.ge.s32.totalorder %s6625_s7, 2 }
  0x82   : > { %p6011_p7 = por %p211_p13, %p137_p3  ;;  %p6584_p2 = scmp.eq.s32.totalorder %s5735_s11, 0 }
  0x83   : > { %s3925_s21 = sshll.u32 %s328_s20, 4  ;;  %s6627_s7 = smov (%p45_p9, %s6625_s7), 0 }
  0x84   : > { %s6582_s22 = scalar_select %p6011_p7, 1, 0 }
  0x85   : > { %p6017_p10 = por %p137_p3, %p6584_p2  ;;  %s3926_s13 = sshll.u32 %s5727_s9, 1 }
  0x86   : > { %6583 = sst [smem:[#allocation27_spill]] %s6582_s22  ;;  %s47_s1 = ssub.s32 %s5731_s10, %s6627_s7 }
  0x87   : > { %s3927_s19 = sshll.u32 %s5731_s10, 3  ;;  %p48_p12 = scmp.eq.s32.totalorder %s47_s1, 0 }
  0x88   : > { %s127_s2 = sor.u32 %s126_s6, %s47_s1  ;;  %s336_s0 = sadd.s32 %s3927_s19, %s3926_s13 }
  0x89   : > { %p128_p13 = scmp.eq.s32.totalorder %s127_s2, 0  ;;  %s3928_s24 = sshll.u32 %s336_s0, 7 }
  0x8a   : > { %s6028_s4 = scalar_select %p48_p12, %s5715_s29, %s50_s23  }
  0x8b   : > { %s6031_s5 = scalar_select %p128_p13, %s5703_s26, %s130_s27  }
  0x8c   : > { %s330_s22 = scalar_lea.vmem [#allocation7], %s3925_s21  ;;  %s6036_s15 = scalar_lea.hbm %s6535_s3, %s3928_s24 }
  0x8d   : > { %s339_s30 = sshll.u32 %s330_s22, 4  ;;  %p6586_p5 = scmp.lt.s32.totalorder %s5735_s11, 8  ;;  %s6038_s30 = int_to_ptr.vmem [resolvable:$true] %s339_s30 }
  0x8e   : > { %s6048_s0 = scalar_lea.sflag [#allocation8], %s326_s16  ;;  %s5539_s2 = scalar_lea.hbm %s6036_s15, 256 }
  0x8f   : > { %p6044_p11 = pnand %p6586_p5, %p6017_p10  ;;  %p5540_p0 = scmp.ne.s32.totalorder %s6036_s15, %s5539_s2 }
  0x90   : > { %s5544_s24 = scalar_lea.hbm %s6535_s3, 2048  ;;  %p5545_p1 = scmp.lt.u32.totalorder %s6036_s15, %s6535_s3 }
  0x91   : > { %p5541_p4 = pneg %p6044_p11  ;;  %p5546_p3 = scmp.lt.u32.totalorder %s5544_s24, %s5539_s2 }
  0x92   : > { %p5548_p2 = scmp.lt.u32.totalorder %s5539_s2, %s6036_s15 }
  0x93   : > { %p5542_p6 = pnand %p5541_p4, %p5540_p0  ;;  %p5547_p9 = por %p5546_p3, %p5545_p1 }
  0x95   : > { %p5543_p8 = pneg %p5542_p6  ;;  %p5549_p10 = por %p5548_p2, %p5547_p9 }
  0x97   : > { %p5550_p12 = pnand %p5549_p10, %p5543_p8 }
  0x99   : > { %5553 = shalt.err (!%p5550_p12)
}
  0x9a   : > { %s5554_s16 = scalar_lea.vmem %s6038_s30, 256  ;;  %s5744_s22 = smov [#allocation7]  }
  0x9b   : > { %p5555_p13 = scmp.ne.s32.totalorder %s6038_s30, %s5554_s16  ;;  %s5559_s18 = sshll.u32 %s5744_s22, 4  ;;  %s5560_s18 = int_to_ptr.vmem [resolvable:$false] %s5559_s18 }
  0x9c   : > { %s5561_s21 = scalar_lea.vmem %s5560_s18, 512  ;;  %p5562_p6 = scmp.lt.s32.totalorder %s6038_s30, %s5560_s18 }
  0x9d   : > { %p5557_p5 = pnand %p5555_p13, %p5541_p4  ;;  %p5563_p1 = scmp.lt.s32.totalorder %s5561_s21, %s5554_s16 }
  0x9f   : > { %p5558_p0 = pneg %p5557_p5  ;;  %p5564_p3 = por %p5563_p1, %p5562_p6 }
  0xa1   : > { %p5565_p9 = pnand %p5564_p3, %p5558_p0 }
  0xa3   : > { %5568 = shalt.err (!%p5565_p9)
}
  0xa4   : > { %s6588_s13 = smov 8   ;;  %s6589_s1 = smov 128  }
  0xa5   : > { %5266 = dma.hbm_to_vmem [thread:$0]  (!%p6044_p11), %s6036_s15, 256, %s6038_s30, %s6048_s0, %s6589_s1, %s6589_s1, %s6588_s13  }
  0xa6   : > { %p6590_p4 = scmp.ne.s32.totalorder %s6575_s17, 0 }
  0xa7   : > { %s353_s20 = sand.u32 (!%p6590_p4), 1, %s5711_s28   ;;  %p6591_p8 = scmp.ne.s32.totalorder (!%p6590_p4), %s6570_s14, 0 }
  0xa8   : > { %351 = sbr.rel (%p6590_p4) target bundleno = 1803 (0x70b), region = 44  ;;  %s354_s8 = scalar_lea.sflag (!%p6590_p4), [#allocation5], %s353_s20 }
  0xa9   : > { %s6082_s2 = smul.u32 (!%p6590_p4), 80, %s353_s20 }
  0xab   : > { %s357_s23 = scalar_lea.vmem (!%p6590_p4), [#allocation4], %s6082_s2 }
  0xaf   : > { %5670 = dma.done.wait (%p6591_p8), %s354_s8, 1280  }
  0xb0   : > { %5672 = vsyncadd (%p6591_p8), %s354_s8, 4294966016  ;;  %s6592_s19 = sld [smem:[#allocation24_spill]]  ;;  %s362_s30 = sand.u32 1, %s5855_s12  }
  0xb1   : > { %s6091_s15 = sand.u32 1, %s5699_s25   ;;  %s363_s0 = scalar_lea.sflag [#allocation8], %s362_s30 }
  0xb2   : > { %s6094_s17 = sshll.u32 %s6091_s15, 4 }
  0xb3   : > { %s366_s24 = scalar_lea.vmem [#allocation7], %s6094_s17 }
  0xb6   : > { %p6593_p11 = scmp.ne.s32.totalorder %s6592_s19, 0 }
  0xb8   : > { %5674 = dma.done.wait (%p6593_p11), %s363_s0, 256  }
  0xb9   : > { %5676 = vsyncadd (%p6593_p11), %s363_s0, 4294967040  ;;  %p6594_p2 = scmp.eq.s32.totalorder %s5855_s12, 0 }
  0xbb   : > { %5678 = dma.done.wait (%p6594_p2), [#allocation8], 147456   ;;  %p6595_p10 = pmov %p6594_p2 }
  0xbc   : > { %p6596_p12 = pmov %p6594_p2 }
  0xbd   : > { %5680 = vsyncadd (%p6595_p10), [#allocation8], 4294819840 }
  0xbe   : > { %5682 = dma.done.wait (%p6596_p12), [#allocation11], 64   ;;  %p6597_p13 = pmov %p6594_p2 }
  0xbf   : > { %s6598_s14 = sld [smem:[#allocation23_spill]]  ;;  %s6599_s27 = sld [smem:[#allocation22_spill]]  ;;  %v5745_v0 = vmov 0.0   ;;  %vm597_vm0 = vcmask 7168   ;;  %vm602_vm1 = vcmask 15360   ;;  %vm607_vm2 = vcmask 23552  }
  0xc0   : > { %5684 = vsyncadd (%p6597_p13), [#allocation11], 4294967232  ;;  %914 = vst [vmem:[#allocation2] sm:$0x1] %v5745_v0  ;;  %s6600_s1 = sld [smem:[#allocation29_spill]]  ;;  %s6601_s19 = sld [smem:[#allocation30_spill]] }
  0xc1   : > { %915 = vst [vmem:[#allocation2 + $0x10] sm:$0x1] %v5745_v0  ;;  %916 = vst [vmem:[#allocation2 + $0x20] sm:$0x1] %v5745_v0  ;;  %vm612_vm3 = vcmask 31744   ;;  %vm617_vm4 = vcmask 39936  }
  0xc2   : > { %917 = vst [vmem:[#allocation2 + $0x30] sm:$0x1] %v5745_v0  ;;  %918 = vst [vmem:[#allocation2 + $0x9] sm:$0x1] %v5745_v0  ;;  %vm622_vm5 = vcmask 48128   ;;  %vm627_vm6 = vcmask 56320  }
  0xc3   : > { %919 = vst [vmem:[#allocation2 + $0x19] sm:$0x1] %v5745_v0  ;;  %920 = vst [vmem:[#allocation2 + $0x29] sm:$0x1] %v5745_v0  ;;  %vm632_vm7 = vcmask 64512   ;;  %vm637_vm8 = vcmask 72704  }
  0xc4   : > { %921 = vst [vmem:[#allocation2 + $0x39] sm:$0x1] %v5745_v0 }
  0xc5   : > { %p425_p5 = scmp.lt.s32.totalorder %s6598_s14, 1  ;;  %s4002_s6 = sshll.u32 %s6599_s27, 4 }
  0xc6   : > { %s440_s16 = scalar_lea.vmem %s357_s23, %s4002_s6 [#allocation4]  ;;  %s4003_s22 = sshll.u32 %s6599_s27, 5 }
  0xc7   : > { %s6629_s14 = smov (!%p425_p5, %s6598_s14), 1  ;;  %v6121_v1 = vld [vmem:[%s440_s16 + $0x10] sm:$0xff]  ;;  %v6127_v2 = vld [vmem:[%s440_s16] sm:$0xff]  ;;  %v6129_v3 = vld [vmem:[%s440_s16 + $0x18] sm:$0xff]  ;;  %s6378_s23 = scalar_lea.vmem [#allocation12], %s6094_s17 }
  0xc8   : > { %s5235_s12 = smul.u32 192, %s6629_s14  ;;  %v6144_v9 = vld [vmem:[%s440_s16 + $0x8] sm:$0xff]  ;;  %p3968_p0 = scmp.ne.s32.totalorder %s6599_s27, 0 }
  0xc9   : > { %s5236_s18 = smul.u32 160, %s6629_s14  ;;  %s6381_s14 = scalar_lea.vmem [#allocation13], %s6094_s17 }
  0xca   : > { %s429_s20 = scalar_lea.vmem %s6600_s1, %s5235_s12 }
  0xcb   : > { %s6119_s30 = scalar_lea.vmem %s6601_s19, %s5236_s18  ;;  %s6125_s0 = scalar_lea.vmem %s429_s20, %s4003_s22 }
  0xcc   : > { %v6132_v4 = vld [vmem:[%s6125_s0 + $0x20] sm:$0xff]  ;;  %v6138_v6 = vld [vmem:[%s6125_s0 + $0x30] sm:$0xff] }
  0xcd   : > { %v6135_v5 = vld [vmem:[%s6125_s0] sm:$0xff]  ;;  %v453_v7 = vmul.f32 %v6132_v4, %v6121_v1  ;;  %v6147_v10 = vld [vmem:[%s6125_s0 + $0x10] sm:$0xff]  ;;  %v454_v11 = vmul.f32 %v6138_v6, %v6129_v3  ;;  %v503_v29 = vmul.f32 %v6132_v4, %v6144_v9  ;;  %v504_v33 = vmul.f32 %v6138_v6, %v6121_v1 }
  0xce   : > { %v451_v8 = vmul.f32 %v6135_v5, %v6127_v2  ;;  %v452_v12 = vmul.f32 %v6147_v10, %v6144_v9  ;;  %v6154_v13 = vld [vmem:[%s6125_s0 + $0x11] sm:$0xff]  ;;  %v6157_v14 = vld [vmem:[%s6125_s0 + $0x1] sm:$0xff]  ;;  %v502_v30 = vmul.f32 %v6147_v10, %v6127_v2  ;;  %v554_v44 = vmul.f32 %v6138_v6, %v6144_v9 }
  0xcf   : > { %459 = vadd.xlane.f32.xlu1 %v453_v7  ;;  %v468_v15 = vmul.f32 %v6154_v13, %v6144_v9  ;;  %v467_v16 = vmul.f32 %v6157_v14, %v6127_v2  ;;  %v6164_v17 = vld [vmem:[%s6125_s0 + $0x31] sm:$0xff]  ;;  %v6167_v18 = vld [vmem:[%s6125_s0 + $0x21] sm:$0xff]  ;;  %v518_v35 = vmul.f32 %v6154_v13, %v6127_v2  ;;  %v553_v45 = vmul.f32 %v6132_v4, %v6127_v2 }
  0xd0   : > { %455 = vadd.xlane.f32.xlu0 %v451_v8  ;;  %v470_v19 = vmul.f32 %v6164_v17, %v6129_v3  ;;  %v469_v20 = vmul.f32 %v6167_v18, %v6121_v1  ;;  %v6174_v21 = vld [vmem:[%s6125_s0 + $0x12] sm:$0xff]  ;;  %v6177_v22 = vld [vmem:[%s6125_s0 + $0x2] sm:$0xff]  ;;  %v519_v34 = vmul.f32 %v6167_v18, %v6144_v9  ;;  %v520_v38 = vmul.f32 %v6164_v17, %v6121_v1 }
  0xd1   : > { %v484_v23 = vmul.f32 %v6174_v21, %v6144_v9  ;;  %v483_v24 = vmul.f32 %v6177_v22, %v6127_v2  ;;  %v6184_v25 = vld [vmem:[%s6125_s0 + $0x32] sm:$0xff]  ;;  %v6187_v26 = vld [vmem:[%s6125_s0 + $0x22] sm:$0xff]  ;;  %v534_v40 = vmul.f32 %v6174_v21, %v6127_v2  ;;  %v570_v49 = vmul.f32 %v6164_v17, %v6144_v9 }
  0xd2   : > { %v486_v27 = vmul.f32 %v6184_v25, %v6129_v3  ;;  %v485_v28 = vmul.f32 %v6187_v26, %v6121_v1  ;;  %v6198_v31 = vld [vmem:[%s6125_s0 + $0x40] sm:$0xff]  ;;  %v535_v39 = vmul.f32 %v6187_v26, %v6144_v9  ;;  %v536_v43 = vmul.f32 %v6184_v25, %v6121_v1  ;;  %v6231_v46 = vld [vmem:[%s6125_s0 + $0x50] sm:$0xff] }
  0xd3   : > { %461 = vadd.xlane.f32.xlu1 %v454_v11  ;;  %v505_v32 = vmul.f32 %v6198_v31, %v6129_v3  ;;  %v6209_v36 = vld [vmem:[%s6125_s0 + $0x41] sm:$0xff]  ;;  %v556_v47 = vmul.f32 %v6231_v46, %v6129_v3  ;;  %v555_v48 = vmul.f32 %v6198_v31, %v6121_v1  ;;  %v569_v50 = vmul.f32 %v6167_v18, %v6127_v2  ;;  %v6242_v51 = vld [vmem:[%s6125_s0 + $0x51] sm:$0xff] }
  0xd4   : > { %457 = vadd.xlane.f32.xlu0 %v452_v12  ;;  %v521_v37 = vmul.f32 %v6209_v36, %v6129_v3  ;;  %v6220_v41 = vld [vmem:[%s6125_s0 + $0x42] sm:$0xff]  ;;  %v572_v52 = vmul.f32 %v6242_v51, %v6129_v3  ;;  %v571_v53 = vmul.f32 %v6209_v36, %v6121_v1  ;;  %v586_v54 = vmul.f32 %v6184_v25, %v6144_v9  ;;  %v6253_v56 = vld [vmem:[%s6125_s0 + $0x52] sm:$0xff] }
  0xd5   : > { %v537_v42 = vmul.f32 %v6220_v41, %v6129_v3  ;;  %v585_v55 = vmul.f32 %v6187_v26, %v6127_v2  ;;  %v588_v57 = vmul.f32 %v6253_v56, %v6129_v3  ;;  %v587_v58 = vmul.f32 %v6220_v41, %v6121_v1 }
  0xd7   : > { %473 = vadd.xlane.f32.xlu1 %v468_v15 }
  0xd8   : > { %471 = vadd.xlane.f32.xlu0 %v467_v16 }
  0xdb   : > { %477 = vadd.xlane.f32.xlu1 %v470_v19 }
  0xdc   : > { %475 = vadd.xlane.f32.xlu0 %v469_v20 }
  0xdf   : > { %489 = vadd.xlane.f32.xlu1 %v484_v23 }
  0xe0   : > { %487 = vadd.xlane.f32.xlu0 %v483_v24 }
  0xe3   : > { %493 = vadd.xlane.f32.xlu1 %v486_v27 }
  0xe4   : > { %491 = vadd.xlane.f32.xlu0 %v485_v28 }
  0xe7   : > { %508 = vadd.xlane.f32.xlu1 %v503_v29 }
  0xe8   : > { %506 = vadd.xlane.f32.xlu0 %v502_v30 }
  0xeb   : > { %512 = vadd.xlane.f32.xlu1 %v505_v32 }
  0xec   : > { %510 = vadd.xlane.f32.xlu0 %v504_v33 }
  0xef   : > { %524 = vadd.xlane.f32.xlu1 %v519_v34 }
  0xf0   : > { %522 = vadd.xlane.f32.xlu0 %v518_v35 }
  0xf3   : > { %528 = vadd.xlane.f32.xlu1 %v521_v37 }
  0xf4   : > { %526 = vadd.xlane.f32.xlu0 %v520_v38 }
  0xf7   : > { %540 = vadd.xlane.f32.xlu1 %v535_v39 }
  0xf8   : > { %538 = vadd.xlane.f32.xlu0 %v534_v40 }
  0xfb   : > { %544 = vadd.xlane.f32.xlu1 %v537_v42 }
  0xfc   : > { %542 = vadd.xlane.f32.xlu0 %v536_v43 }
  0xff   : > { %559 = vadd.xlane.f32.xlu1 %v554_v44 }
 0x100   : > { %557 = vadd.xlane.f32.xlu0 %v553_v45 }
 0x103   : > { %563 = vadd.xlane.f32.xlu1 %v556_v47 }
 0x104   : > { %561 = vadd.xlane.f32.xlu0 %v555_v48 }
 0x107   : > { %575 = vadd.xlane.f32.xlu1 %v570_v49 }
 0x108   : > { %573 = vadd.xlane.f32.xlu0 %v569_v50 }
 0x10b   : > { %579 = vadd.xlane.f32.xlu1 %v572_v52 }
 0x10c   : > { %577 = vadd.xlane.f32.xlu0 %v571_v53 }
 0x10f   : > { %591 = vadd.xlane.f32.xlu1 %v586_v54 }
 0x110   : > { %589 = vadd.xlane.f32.xlu0 %v585_v55 }
 0x113   : > { %595 = vadd.xlane.f32.xlu1 %v588_v57 }
 0x114   : > { %593 = vadd.xlane.f32.xlu0 %v587_v58 }
 0x15c   : > { %v460_v59 = vpop.xlane.xlu1 %459 }
 0x15d   : > { %v456_v60 = vpop.xlane.xlu0 %455 }
 0x160   : > { %v462_v61 = vpop.xlane.xlu1 %461 }
 0x161   : > { %v458_v62 = vpop.xlane.xlu0 %457 }
 0x164   : > { %v474_v63 = vpop.xlane.xlu1 %473 }
 0x165   : > { %v472_v0 = vpop.xlane.xlu0 %471  ;;  %v599_v39 = vsel %vm597_vm0, %v458_v62, %v474_v63 }
 0x166   : > { %v598_v40 = vsel %vm597_vm0, %v456_v60, %v472_v0 }
 0x168   : > { %v478_v7 = vpop.xlane.xlu1 %477 }
 0x169   : > { %v476_v2 = vpop.xlane.xlu0 %475  ;;  %v601_v52 = vsel %vm597_vm0, %v462_v61, %v478_v7 }
 0x16a   : > { %v600_v53 = vsel %vm597_vm0, %v460_v59, %v476_v2 }
 0x16c   : > { %v490_v8 = vpop.xlane.xlu1 %489 }
 0x16d   : > { %v488_v9 = vpop.xlane.xlu0 %487  ;;  %v604_v42 = vsel %vm602_vm1, %v599_v39, %v490_v8 }
 0x16e   : > { %v603_v43 = vsel %vm602_vm1, %v598_v40, %v488_v9 }
 0x170   : > { %v494_v11 = vpop.xlane.xlu1 %493 }
 0x171   : > { %v492_v12 = vpop.xlane.xlu0 %491  ;;  %v606_v57 = vsel %vm602_vm1, %v601_v52, %v494_v11 }
 0x172   : > { %v605_v58 = vsel %vm602_vm1, %v600_v53, %v492_v12 }
 0x174   : > { %v509_v15 = vpop.xlane.xlu1 %508 }
 0x175   : > { %v507_v16 = vpop.xlane.xlu0 %506  ;;  %v609_v44 = vsel %vm607_vm2, %v604_v42, %v509_v15 }
 0x176   : > { %v608_v45 = vsel %vm607_vm2, %v603_v43, %v507_v16 }
 0x178   : > { %v513_v3 = vpop.xlane.xlu1 %512 }
 0x179   : > { %v511_v19 = vpop.xlane.xlu0 %510  ;;  %v611_v63 = vsel %vm607_vm2, %v606_v57, %v513_v3  ;;  %v5748_v57 = vmov 3  }
 0x17a   : > { %v610_v0 = vsel %vm607_vm2, %v605_v58, %v511_v19  ;;  %v5749_v58 = vmov 1  }
 0x17c   : > { %v525_v20 = vpop.xlane.xlu1 %524 }
 0x17d   : > { %v523_v1 = vpop.xlane.xlu0 %522  ;;  %v614_v49 = vsel %vm612_vm3, %v609_v44, %v525_v20 }
 0x17e   : > { %v613_v50 = vsel %vm612_vm3, %v608_v45, %v523_v1 }
 0x180   : > { %v529_v23 = vpop.xlane.xlu1 %528 }
 0x181   : > { %v527_v24 = vpop.xlane.xlu0 %526  ;;  %v616_v8 = vsel %vm612_vm3, %v611_v63, %v529_v23  ;;  %v5752_v63 = vmov 6  }
 0x182   : > { %v615_v9 = vsel %vm612_vm3, %v610_v0, %v527_v24  ;;  %v5753_v0 = vmov 7  }
 0x184   : > { %v541_v27 = vpop.xlane.xlu1 %540 }
 0x185   : > { %v539_v28 = vpop.xlane.xlu0 %538  ;;  %v619_v54 = vsel %vm617_vm4, %v614_v49, %v541_v27 }
 0x186   : > { %v618_v55 = vsel %vm617_vm4, %v613_v50, %v539_v28 }
 0x188   : > { %v545_v29 = vpop.xlane.xlu1 %544 }
 0x189   : > { %v543_v30 = vpop.xlane.xlu0 %542  ;;  %v621_v15 = vsel %vm617_vm4, %v616_v8, %v545_v29 }
 0x18a   : > { %v620_v16 = vsel %vm617_vm4, %v615_v9, %v543_v30 }
 0x18c   : > { %v560_v32 = vpop.xlane.xlu1 %559 }
 0x18d   : > { %v558_v33 = vpop.xlane.xlu0 %557  ;;  %v624_v60 = vsel %vm622_vm5, %v619_v54, %v560_v32  ;;  %v5747_v54 = vmov 2  }
 0x18e   : > { %v623_v62 = vsel %vm622_vm5, %v618_v55, %v558_v33 }
 0x190   : > { %v564_v34 = vpop.xlane.xlu1 %563 }
 0x191   : > { %v562_v35 = vpop.xlane.xlu0 %561  ;;  %v626_v20 = vsel %vm622_vm5, %v621_v15, %v564_v34  ;;  %v5746_v34 = vmov 0  }
 0x192   : > { %v625_v1 = vsel %vm622_vm5, %v620_v16, %v562_v35  ;;  %5389 = vset.pattern.permute.xlu1 %v5746_v34  ;;  %5388 = vset.pattern.permute.xlu0 %v5746_v34 }
 0x194   : > { %v576_v37 = vpop.xlane.xlu1 %575 }
 0x195   : > { %v574_v38 = vpop.xlane.xlu0 %573  ;;  %v629_v61 = vsel %vm627_vm6, %v624_v60, %v576_v37  ;;  %v5750_v60 = vmov 4  }
 0x196   : > { %v628_v59 = vsel %vm627_vm6, %v623_v62, %v574_v38  ;;  %v5751_v62 = vmov 5  }
 0x198   : > { %v580_v47 = vpop.xlane.xlu1 %579 }
 0x199   : > { %v578_v48 = vpop.xlane.xlu0 %577  ;;  %v631_v23 = vsel %vm627_vm6, %v626_v20, %v580_v47 }
 0x19a   : > { %v630_v24 = vsel %vm627_vm6, %v625_v1, %v578_v48 }
 0x19c   : > { %v592_v7 = vpop.xlane.xlu1 %591 }
 0x19d   : > { %v590_v2 = vpop.xlane.xlu0 %589  ;;  %v634_v11 = vsel %vm632_vm7, %v629_v61, %v592_v7  ;;  %v5754_v61 = vmov 8  }
 0x19e   : > { %v633_v12 = vsel %vm632_vm7, %v628_v59, %v590_v2  ;;  %v641_v3 = vsel %vm637_vm8, %v634_v11, -inf }
 0x19f   : > { %v638_v19 = vsel %vm637_vm8, %v633_v12, -inf  ;;  %642 = vmax.xlane.f32.xlu1 %v641_v3 }
 0x1a0   : > { %639 = vmax.xlane.f32.xlu0 %v638_v19  ;;  %v596_v27 = vpop.xlane.xlu1 %595 }
 0x1a1   : > { %v594_v28 = vpop.xlane.xlu0 %593  ;;  %v636_v29 = vsel %vm632_vm7, %v631_v23, %v596_v27 }
 0x1a2   : > { %v635_v30 = vsel %vm632_vm7, %v630_v24, %v594_v28  ;;  %v647_v32 = vsel %vm637_vm8, %v636_v29, -inf }
 0x1a3   : > { %v644_v33 = vsel %vm637_vm8, %v635_v30, -inf  ;;  %648 = vmax.xlane.f32.xlu1 %v647_v32 }
 0x1a4   : > { %645 = vmax.xlane.f32.xlu0 %v644_v33 }
 0x22c   : > { %v643_v35 = vpop.xlane.xlu1 %642 }
 0x22d   : > { %v640_v37 = vpop.xlane.xlu0 %639  ;;  %v651_v38 = vsub.f32 %v634_v11, %v643_v35 }
 0x22e   : > { %v650_v39 = vsub.f32 %v633_v12, %v640_v37 }
 0x22f   : > { %v656_v40 = vmul.f32 1.442695, %v651_v38 }
 0x230   : > { %v654_v42 = vmul.f32 1.442695, %v650_v39  ;;  %v649_v43 = vpop.xlane.xlu1 %648 }
 0x231   : > { %v646_v44 = vpop.xlane.xlu0 %645  ;;  %5405 = vpow2.f32 %v656_v40  ;;  %v653_v47 = vsub.f32 %v636_v29, %v649_v43 }
 0x232   : > { %v652_v45 = vsub.f32 %v635_v30, %v646_v44  ;;  %5407 = vpow2.f32 %v654_v42 }
 0x233   : > { %v660_v49 = vmul.f32 1.442695, %v653_v47 }
 0x234   : > { %v658_v48 = vmul.f32 1.442695, %v652_v45 }
 0x236   : > { %5409 = vpow2.f32 %v658_v48 }
 0x237   : > { %5411 = vpow2.f32 %v660_v49 }
 0x23b   : > { %v6295_v50 = vpop.eup %5405 }
 0x23c   : > { %v5408_v52 = vpop.eup %5407  ;;  %697 = vperm.xlu1 %5389, %v6295_v50   ;;  %v665_v9 = vsel %vm637_vm8, %v6295_v50, 0.0 }
 0x23d   : > { %692 = vperm.xlu0 %5388, %v5408_v52   ;;  %v662_v59 = vsel %vm637_vm8, %v5408_v52, 0.0 }
 0x240   : > { %v6298_v53 = vpop.eup %5409 }
 0x241   : > { %5392 = vset.pattern.permute.xlu0 %v5747_v54  ;;  %702 = vperm.xlu1 %5389, %v6298_v53   ;;  %v6302_v55 = vpop.eup %5411  ;;  %v668_v7 = vsel %vm637_vm8, %v6298_v53, 0.0 }
 0x242   : > { %747 = vperm.xlu0 %5392, %v6295_v50  }
 0x245   : > { %707 = vperm.xlu1 %5389, %v6302_v55  }
 0x246   : > { %5393 = vset.pattern.permute.xlu0 %v5748_v57 }
 0x247   : > { %767 = vperm.xlu0 %5393, %v5408_v52  }
 0x249   : > { %5390 = vset.pattern.permute.xlu1 %v5749_v58 }
 0x24a   : > { %719 = vperm.xlu1 %5390, %v5408_v52  }
 0x24b   : > { %779 = vperm.xlu0 %5393, %v6302_v55  }
 0x24e   : > { %723 = vperm.xlu1 %5390, %v6295_v50  }
 0x24f   : > { %5396 = vset.pattern.permute.xlu0 %v5750_v60 }
 0x250   : > { %795 = vperm.xlu0 %5396, %v6295_v50  }
 0x252   : > { %727 = vperm.xlu1 %5390, %v6298_v53  }
 0x254   : > { %5397 = vset.pattern.permute.xlu0 %v5751_v62 }
 0x255   : > { %815 = vperm.xlu0 %5397, %v5408_v52  }
 0x256   : > { %731 = vperm.xlu1 %5390, %v6302_v55  }
 0x259   : > { %827 = vperm.xlu0 %5397, %v6302_v55  }
 0x25a   : > { %5391 = vset.pattern.permute.xlu1 %v5747_v54 }
 0x25b   : > { %743 = vperm.xlu1 %5391, %v5408_v52  }
 0x25d   : > { %5400 = vset.pattern.permute.xlu0 %v5752_v63 }
 0x25e   : > { %843 = vperm.xlu0 %5400, %v6295_v50  }
 0x25f   : > { %751 = vperm.xlu1 %5391, %v6298_v53  }
 0x262   : > { %5401 = vset.pattern.permute.xlu0 %v5753_v0 }
 0x263   : > { %863 = vperm.xlu0 %5401, %v5408_v52   ;;  %755 = vperm.xlu1 %5391, %v6302_v55  }
 0x267   : > { %875 = vperm.xlu0 %5401, %v6302_v55   ;;  %5394 = vset.pattern.permute.xlu1 %v5748_v57 }
 0x268   : > { %771 = vperm.xlu1 %5394, %v6295_v50  }
 0x26b   : > { %5404 = vset.pattern.permute.xlu0 %v5754_v61 }
 0x26c   : > { %775 = vperm.xlu1 %5394, %v6298_v53  }
 0x270   : > { %5395 = vset.pattern.permute.xlu1 %v5750_v60 }
 0x271   : > { %791 = vperm.xlu1 %5395, %v5408_v52  }
 0x275   : > { %799 = vperm.xlu1 %5395, %v6298_v53  }
 0x279   : > { %803 = vperm.xlu1 %5395, %v6302_v55  }
 0x27d   : > { %5398 = vset.pattern.permute.xlu1 %v5751_v62 }
 0x27e   : > { %819 = vperm.xlu1 %5398, %v6295_v50  }
 0x282   : > { %823 = vperm.xlu1 %5398, %v6298_v53  }
 0x286   : > { %663 = vadd.xlane.f32.xlu0 %v662_v59  ;;  %5399 = vset.pattern.permute.xlu1 %v5752_v63 }
 0x287   : > { %839 = vperm.xlu1 %5399, %v5408_v52  }
 0x28a   : > { %669 = vadd.xlane.f32.xlu0 %v668_v7 }
 0x28b   : > { %847 = vperm.xlu1 %5399, %v6298_v53  }
 0x28f   : > { %851 = vperm.xlu1 %5399, %v6302_v55  }
 0x293   : > { %5402 = vset.pattern.permute.xlu1 %v5753_v0 }
 0x294   : > { %867 = vperm.xlu1 %5402, %v6295_v50  }
 0x298   : > { %871 = vperm.xlu1 %5402, %v6298_v53  }
 0x29c   : > { %5403 = vset.pattern.permute.xlu1 %v5754_v61 }
 0x29d   : > { %887 = vperm.xlu1 %5403, %v5408_v52  }
 0x2a0   : > { %891 = vperm.xlu0 %5404, %v6295_v50  }
 0x2bb   : > { %v698_v2 = vpop.permute.xlu1 %697 }
 0x2bc   : > { %v6331_v12 = vpop.permute.xlu0 %692  ;;  %v711_v19 = vmul.f32 %v698_v2, %v6147_v10  ;;  %v671_v2 = vsel %vm637_vm8, %v6302_v55, 0.0 }
 0x2c0   : > { %v703_v8 = vpop.permute.xlu1 %702 }
 0x2c1   : > { %666 = vadd.xlane.f32.xlu1 %v665_v9  ;;  %v748_v16 = vpop.permute.xlu0 %747  ;;  %v712_v27 = vmul.f32 %v703_v8, %v6132_v4 }
 0x2c2   : > { %v759_v1 = vmul.f32 %v748_v16, %v6174_v21 }
 0x2c4   : > { %v708_v11 = vpop.permute.xlu1 %707 }
 0x2c5   : > { %v713_v33 = vmul.f32 %v708_v11, %v6138_v6 }
 0x2c6   : > { %v768_v38 = vpop.permute.xlu0 %767 }
 0x2c9   : > { %v6333_v15 = vpop.permute.xlu1 %719 }
 0x2ca   : > { %v780_v42 = vpop.permute.xlu0 %779 }
 0x2cb   : > { %v785_v47 = vmul.f32 %v6198_v31, %v780_v42  ;;  %v710_v42 = vmul.f32 %v6331_v12, %v6135_v5 }
 0x2cd   : > { %v724_v3 = vpop.permute.xlu1 %723 }
 0x2ce   : > { %v735_v20 = vmul.f32 %v724_v3, %v6154_v13 }
 0x2cf   : > { %v796_v49 = vpop.permute.xlu0 %795 }
 0x2d0   : > { %v739_v23 = vadd.f32 %v735_v20, %v711_v19  ;;  %v807_v54 = vmul.f32 %v796_v49, %v6167_v18 }
 0x2d1   : > { %v728_v24 = vpop.permute.xlu1 %727 }
 0x2d2   : > { %v736_v28 = vmul.f32 %v728_v24, %v6167_v18  ;;  %895 = vperm.xlu1 %5403, %v6298_v53   ;;  %v763_v29 = vadd.f32 %v759_v1, %v739_v23 }
 0x2d4   : > { %v740_v30 = vadd.f32 %v736_v28, %v712_v27  ;;  %v816_v61 = vpop.permute.xlu0 %815 }
 0x2d5   : > { %v732_v32 = vpop.permute.xlu1 %731 }
 0x2d6   : > { %v737_v34 = vmul.f32 %v732_v32, %v6164_v17 }
 0x2d8   : > { %v741_v35 = vadd.f32 %v737_v34, %v713_v33  ;;  %v828_v8 = vpop.permute.xlu0 %827 }
 0x2d9   : > { %v833_v3 = vmul.f32 %v6220_v41, %v828_v8 }
 0x2da   : > { %v744_v37 = vpop.permute.xlu1 %743 }
 0x2dd   : > { %v844_v20 = vpop.permute.xlu0 %843 }
 0x2de   : > { %v752_v39 = vpop.permute.xlu1 %751  ;;  %v855_v27 = vmul.f32 %v844_v20, %v6138_v6 }
 0x2df   : > { %v760_v40 = vmul.f32 %v752_v39, %v6187_v26 }
 0x2e1   : > { %v764_v43 = vadd.f32 %v760_v40, %v740_v30  ;;  %v734_v40 = vmul.f32 %v6333_v15, %v6157_v14 }
 0x2e2   : > { %v756_v44 = vpop.permute.xlu1 %755 }
 0x2e3   : > { %v761_v45 = vmul.f32 %v756_v44, %v6184_v25 }
 0x2e5   : > { %v765_v48 = vadd.f32 %v761_v45, %v741_v35  ;;  %v864_v35 = vpop.permute.xlu0 %863  ;;  %v738_v45 = vadd.f32 %v734_v40, %v710_v42 }
 0x2e7   : > { %v772_v50 = vpop.permute.xlu1 %771  ;;  %v789_v52 = vadd.f32 %v785_v47, %v765_v48 }
 0x2e8   : > { %v783_v53 = vmul.f32 %v772_v50, %v6132_v4 }
 0x2ea   : > { %v787_v57 = vadd.f32 %v783_v53, %v763_v29 }
 0x2eb   : > { %v776_v58 = vpop.permute.xlu1 %775 }
 0x2ec   : > { %v784_v60 = vmul.f32 %v776_v58, %v6138_v6  ;;  %v811_v62 = vadd.f32 %v807_v54, %v787_v57  ;;  %v876_v6 = vpop.permute.xlu0 %875 }
 0x2ed   : > { %v881_v49 = vmul.f32 %v6242_v51, %v876_v6 }
 0x2ee   : > { %v788_v63 = vadd.f32 %v784_v60, %v764_v43  ;;  %v758_v43 = vmul.f32 %v744_v37, %v6177_v22 }
 0x2f0   : > { %v792_v0 = vpop.permute.xlu1 %791  ;;  %v762_v48 = vadd.f32 %v758_v43, %v738_v45 }
 0x2f4   : > { %v800_v59 = vpop.permute.xlu1 %799 }
 0x2f5   : > { %v808_v7 = vmul.f32 %v800_v59, %v6164_v17 }
 0x2f6   : > { %672 = vadd.xlane.f32.xlu1 %v671_v2 }
 0x2f7   : > { %v812_v9 = vadd.f32 %v808_v7, %v788_v63 }
 0x2f8   : > { %v804_v11 = vpop.permute.xlu1 %803 }
 0x2f9   : > { %v809_v16 = vmul.f32 %v6209_v36, %v804_v11 }
 0x2fb   : > { %v813_v19 = vadd.f32 %v809_v16, %v789_v52  ;;  %v806_v52 = vmul.f32 %v792_v0, %v6154_v13  ;;  %v878_v13 = vmul.f32 %v864_v35, %v6167_v18 }
 0x2fd   : > { %v820_v1 = vpop.permute.xlu1 %819  ;;  %v837_v23 = vadd.f32 %v833_v3, %v813_v19 }
 0x2fe   : > { %v831_v24 = vmul.f32 %v820_v1, %v6187_v26 }
 0x300   : > { %v835_v28 = vadd.f32 %v831_v24, %v811_v62 }
 0x301   : > { %v824_v29 = vpop.permute.xlu1 %823 }
 0x302   : > { %v832_v30 = vmul.f32 %v824_v29, %v6184_v25  ;;  %v859_v32 = vadd.f32 %v855_v27, %v835_v28 }
 0x304   : > { %v836_v33 = vadd.f32 %v832_v30, %v812_v9 }
 0x306   : > { %v840_v34 = vpop.permute.xlu1 %839 }
 0x307   : > { %899 = vperm.xlu1 %5403, %v6302_v55   ;;  %v782_v55 = vmul.f32 %v768_v38, %v6147_v10  ;;  %v854_v57 = vmul.f32 %v840_v34, %v6132_v4 }
 0x309   : > { %v786_v22 = vadd.f32 %v782_v55, %v762_v48 }
 0x30a   : > { %v848_v39 = vpop.permute.xlu1 %847 }
 0x30b   : > { %v810_v37 = vadd.f32 %v806_v52, %v786_v22  ;;  %v856_v4 = vmul.f32 %v6198_v31, %v848_v39 }
 0x30d   : > { %v860_v18 = vadd.f32 %v856_v4, %v836_v33 }
 0x30e   : > { %v852_v44 = vpop.permute.xlu1 %851 }
 0x30f   : > { %v857_v47 = vmul.f32 %v6231_v46, %v852_v44  ;;  %v830_v46 = vmul.f32 %v816_v61, %v6174_v21 }
 0x311   : > { %v861_v50 = vadd.f32 %v857_v47, %v837_v23  ;;  %v834_v51 = vadd.f32 %v830_v46, %v810_v37 }
 0x313   : > { %v868_v53 = vpop.permute.xlu1 %867  ;;  %v664_v14 = vpop.xlane.xlu0 %663  ;;  %v885_v15 = vadd.f32 %v881_v49, %v861_v50  ;;  %v858_v60 = vadd.f32 %v854_v57, %v834_v51 }
 0x314   : > { %v879_v5 = vmul.f32 %v868_v53, %v6164_v17  ;;  %5413 = vrcp.f32 %v664_v14 }
 0x315   : > { %v882_v17 = vadd.f32 %v878_v13, %v858_v60 }
 0x316   : > { %v883_v12 = vadd.f32 %v879_v5, %v859_v32 }
 0x317   : > { %v872_v54 = vpop.permute.xlu1 %871  ;;  %v670_v2 = vpop.xlane.xlu0 %669 }
 0x318   : > { %5415 = vrcp.f32 %v670_v2  ;;  %v880_v9 = vmul.f32 %v6209_v36, %v872_v54 }
 0x31c   : > { %v888_v58 = vpop.permute.xlu1 %887 }
 0x31d   : > { %v902_v62 = vmul.f32 %v888_v58, %v6187_v26  ;;  %v884_v26 = vadd.f32 %v880_v9, %v860_v18 }
 0x31e   : > { %v5414_v10 = vpop.eup %5413 }
 0x31f   : > { %v678_v38 = vmul.f32 %v5414_v10, %v664_v14  ;;  %v906_v59 = vadd.f32 %v902_v62, %v882_v17  ;;  %v892_v1 = vpop.permute.xlu0 %891 }
 0x320   : > { %v903_v27 = vmul.f32 %v892_v1, %v6184_v25  ;;  %v5755_v25 = vmov (!%p3968_p0), 0.0  }
 0x321   : > { %v682_v63 = vsub.f32 2.0, %v678_v38 }
 0x322   : > { %v5416_v21 = vpop.eup %5415  ;;  %v907_v29 = vadd.f32 %v903_v27, %v883_v12 }
 0x323   : > { %v686_v0 = vmul.f32 %v5414_v10, %v682_v63  ;;  %v680_v61 = vmul.f32 %v5416_v21, %v670_v2 }
 0x325   : > { %v910_v7 = vmul.f32 %v906_v59, %v686_v0  ;;  %v684_v11 = vsub.f32 2.0, %v680_v61 }
 0x327   : > { %922 = vst [vmem:[#allocation2 + $0x1] sm:$0xff] %v910_v7  ;;  %v688_v19 = vmul.f32 %v5416_v21, %v684_v11 }
 0x328   : > { %930 = vst [vmem:[#allocation2] sm:$0xff] (!%p3968_p0), %v5755_v25  ;;  %931 = vst [vmem:[#allocation2 + $0x8] sm:$0x3] (!%p3968_p0), %v5755_v25 }
 0x34e   : > { %v667_v8 = vpop.xlane.xlu1 %666 }
 0x34f   : > { %5417 = vrcp.f32 %v667_v8 }
 0x352   : > { %v896_v16 = vpop.permute.xlu1 %895 }
 0x353   : > { %v904_v3 = vmul.f32 %v6220_v41, %v896_v16 }
 0x355   : > { %v908_v20 = vadd.f32 %v904_v3, %v884_v26 }
 0x357   : > { %v912_v23 = vmul.f32 %v908_v20, %v688_v19 }
 0x359   : > { %v5418_v24 = vpop.eup %5417  ;;  %924 = vst [vmem:[#allocation2 + $0x21] sm:$0xff] %v912_v23 }
 0x35a   : > { %v679_v31 = vmul.f32 %v5418_v24, %v667_v8 }
 0x35c   : > { %v683_v28 = vsub.f32 2.0, %v679_v31 }
 0x35e   : > { %v687_v36 = vmul.f32 %v5418_v24, %v683_v28 }
 0x360   : > { %v911_v30 = vmul.f32 %v907_v29, %v687_v36 }
 0x362   : > { %923 = vst [vmem:[#allocation2 + $0x11] sm:$0xff] %v911_v30 }
 0x383   : > { %v673_v32 = vpop.xlane.xlu1 %672 }
 0x384   : > { %5419 = vrcp.f32 %v673_v32 }
 0x387   : > { %v900_v33 = vpop.permute.xlu1 %899 }
 0x388   : > { %v905_v35 = vmul.f32 %v6253_v56, %v900_v33 }
 0x38a   : > { %v909_v42 = vadd.f32 %v905_v35, %v885_v15 }
 0x38e   : > { %v5420_v41 = vpop.eup %5419 }
 0x38f   : > { %v681_v34 = vmul.f32 %v5420_v41, %v673_v32 }
 0x391   : > { %v685_v39 = vsub.f32 2.0, %v681_v34  ;;  %929 = sbr.rel (%p3968_p0) target bundleno = 920 (0x398), region = 64 }
 0x393   : > { %v689_v40 = vmul.f32 %v5420_v41, %v685_v39 }
 0x395   : > { %v913_v43 = vmul.f32 %v909_v42, %v689_v40 }
 0x397   : > { %925 = vst [vmem:[#allocation2 + $0x31] sm:$0xff] %v913_v43 }
 0x398 PF: > { %s6602_s6 = sld [smem:[#allocation22_spill]] }
 0x39e   : > { %p3969_p6 = scmp.ne.s32.totalorder %s6602_s6, 3 }
 0x39f   : > { %v5756_v56 = vmov (!%p3969_p6), 0.0  }
 0x3a0   : > { %935 = sbr.rel (%p3969_p6) target bundleno = 935 (0x3a7), region = 68  ;;  %937 = vst [vmem:[#allocation2 + $0x30] sm:$0xff] (!%p3969_p6), %v5756_v56  ;;  %938 = vst [vmem:[#allocation2 + $0x38] sm:$0x3] (!%p3969_p6), %v5756_v56 }
 0x3a7 PF: > { %v1053_v6 = vld [vmem:[#allocation9 + $0x8] sm:$0xff]  ;;  %v1055_v45 = vld [vmem:[#allocation9 + $0x18] sm:$0xff]  ;;  %v1052_v49 = vld [vmem:[#allocation9] sm:$0xff]  ;;  %s6603_s27 = sld [smem:[#allocation22_spill]]  ;;  %s6388_s16 = scalar_lea.vmem %s6119_s30, %s4003_s22 }
 0x3a8   : > { %v1057_v44 = vld [vmem:[#allocation9 + $0x28] sm:$0xff]  ;;  %v1059_v48 = vld [vmem:[#allocation9 + $0x38] sm:$0xff]  ;;  %v1056_v50 = vld [vmem:[#allocation9 + $0x20] sm:$0xff]  ;;  %s6604_s12 = sld [smem:[#allocation23_spill]]  ;;  %s3705_s20 = sshll.u32 %s6381_s14, 4  ;;  %s6426_s20 = int_to_ptr.vmem [resolvable:$true] %s3705_s20 }
 0x3a9   : > { %v4008_v47 = vpack.c.bf16 %v1057_v44, %v1053_v6  ;;  %v4584_v55 = vpack.c.bf16 %v1059_v48, %v1055_v45  ;;  %v4010_v52 = vpack.c.bf16 %v1056_v50, %v1052_v49  ;;  %v1054_v53 = vld [vmem:[#allocation9 + $0x10] sm:$0xff]  ;;  %v1061_v15 = vld [vmem:[#allocation9 + $0x48] sm:$0xff]  ;;  %v1063_v12 = vld [vmem:[#allocation9 + $0x58] sm:$0xff]  ;;  %s6606_s19 = sld [smem:[#allocation34_spill]]  ;;  %s5569_s30 = scalar_lea.vmem %s6426_s20, 256 }
 0x3aa   : > { %v1058_v14 = vld [vmem:[#allocation9 + $0x30] sm:$0xff]  ;;  %v1065_v22 = vld [vmem:[#allocation9 + $0x68] sm:$0xff]  ;;  %v1067_v37 = vld [vmem:[#allocation9 + $0x78] sm:$0xff]  ;;  %p5570_p1 = scmp.ne.s32.totalorder %s6426_s20, %s5569_s30  ;;  %s5757_s0 = smov [#allocation13]  }
 0x3ab   : > { %4009 = vmatprep.subr.bf16.mxu0 %v4008_v47  ;;  %v4586_v5 = vpack.c.bf16 %v1058_v14, %v1054_v53  ;;  %4585 = vmatprep.subr.bf16.mxu1 %v4584_v55  ;;  %v4012_v54 = vpack.c.bf16 %v1065_v22, %v1061_v15  ;;  %v4588_v46 = vpack.c.bf16 %v1067_v37, %v1063_v12  ;;  %v1060_v57 = vld [vmem:[#allocation9 + $0x40] sm:$0xff]  ;;  %v1062_v58 = vld [vmem:[#allocation9 + $0x50] sm:$0xff]  ;;  %v1069_v13 = vld [vmem:[#allocation9 + $0x88] sm:$0xff]  ;;  %s5573_s6 = sshll.u32 %s5757_s0, 4  ;;  %s5574_s6 = int_to_ptr.vmem [resolvable:$false] %s5573_s6 }
 0x3ac   : > { %4011 = vmatpush1.bf16.msra.mxu0 %v4010_v52  ;;  %v1064_v51 = vld [vmem:[#allocation9 + $0x60] sm:$0xff]  ;;  %v1066_v10 = vld [vmem:[#allocation9 + $0x70] sm:$0xff]  ;;  %v1073_v38 = vld [vmem:[#allocation9 + $0xa8] sm:$0xff]  ;;  %p5571_p3 = pnand %p5570_p1, %p6011_p7  ;;  %p5576_p4 = scmp.lt.s32.totalorder %s6426_s20, %s5574_s6 }
 0x3ad   : > { %4587 = vmatpush1.bf16.msra.mxu1 %v4586_v5  ;;  %v4014_v60 = vpack.c.bf16 %v1064_v51, %v1060_v57  ;;  %4013 = vmatprep.subr.bf16.mxu0 %v4012_v54  ;;  %v4590_v62 = vpack.c.bf16 %v1066_v10, %v1062_v58  ;;  %v4016_v63 = vpack.c.bf16 %v1073_v38, %v1069_v13  ;;  %v1071_v17 = vld [vmem:[#allocation9 + $0x98] sm:$0xff]  ;;  %v1068_v59 = vld [vmem:[#allocation9 + $0x80] sm:$0xff]  ;;  %v1070_v21 = vld [vmem:[#allocation9 + $0x90] sm:$0xff]  ;;  %s3994_s22 = sshll.u32 %s6603_s27, 1  ;;  %s5575_s27 = scalar_lea.vmem %s5574_s6, 512 }
 0x3ae   : > { %4589 = vmatprep.subr.bf16.mxu1 %v4588_v46  ;;  %v1075_v0 = vld [vmem:[#allocation9 + $0xb8] sm:$0xff]  ;;  %v1072_v2 = vld [vmem:[#allocation9 + $0xa0] sm:$0xff]  ;;  %v1074_v4 = vld [vmem:[#allocation9 + $0xb0] sm:$0xff]  ;;  %s3995_s18 = sshll.u32 %s6604_s12, 3  ;;  %p5572_p9 = pneg %p5571_p3 }
 0x3af   : > { %v4592_v7 = vpack.c.bf16 %v1075_v0, %v1071_v17  ;;  %v4018_v61 = vpack.c.bf16 %v1072_v2, %v1068_v59  ;;  %v1077_v8 = vld [vmem:[#allocation9 + $0xc8] sm:$0xff]  ;;  %v1079_v18 = vld [vmem:[#allocation9 + $0xd8] sm:$0xff]  ;;  %v4594_v11 = vpack.c.bf16 %v1074_v4, %v1070_v21  ;;  %v1076_v3 = vld [vmem:[#allocation9 + $0xc0] sm:$0xff]  ;;  %s6412_s21 = sadd.s32 %s3995_s18, %s3994_s22  ;;  %p5577_p8 = scmp.lt.s32.totalorder %s5575_s27, %s5569_s30 }
 0x3b0   : > { %4015 = vmatpush1.bf16.msra.mxu0 %v4014_v60  ;;  %v1081_v9 = vld [vmem:[#allocation9 + $0xe8] sm:$0xff]  ;;  %v1083_v26 = vld [vmem:[#allocation9 + $0xf8] sm:$0xff]  ;;  %v1080_v19 = vld [vmem:[#allocation9 + $0xe0] sm:$0xff]  ;;  %s3996_s1 = sshll.u32 %s6412_s21, 7 }
 0x3b1   : > { %4591 = vmatpush1.bf16.msra.mxu1 %v4590_v62  ;;  %4017 = vmatprep.subr.bf16.mxu0 %v4016_v63  ;;  %v4020_v16 = vpack.c.bf16 %v1081_v9, %v1077_v8  ;;  %v4596_v20 = vpack.c.bf16 %v1083_v26, %v1079_v18  ;;  %v1078_v1 = vld [vmem:[#allocation9 + $0xd0] sm:$0xff]  ;;  %v1085_v24 = vld [vmem:[#allocation9 + $0x108] sm:$0xff]  ;;  %v1087_v31 = vld [vmem:[#allocation9 + $0x118] sm:$0xff]  ;;  %v4022_v29 = vpack.c.bf16 %v1080_v19, %v1076_v3  ;;  %s6424_s17 = scalar_lea.hbm %s6606_s19, %s3996_s1  ;;  %p5578_p11 = por %p5577_p8, %p5576_p4 }
 0x3b2   : > { %4593 = vmatprep.subr.bf16.mxu1 %v4592_v7  ;;  %v1082_v23 = vld [vmem:[#allocation9 + $0xf0] sm:$0xff]  ;;  %v1089_v27 = vld [vmem:[#allocation9 + $0x128] sm:$0xff]  ;;  %v1091_v28 = vld [vmem:[#allocation9 + $0x138] sm:$0xff] }
 0x3b3   : > { %v4598_v36 = vpack.c.bf16 %v1082_v23, %v1078_v1  ;;  %v4024_v30 = vpack.c.bf16 %v1089_v27, %v1085_v24  ;;  %v1084_v32 = vld [vmem:[#allocation9 + $0x100] sm:$0xff]  ;;  %v1086_v41 = vld [vmem:[#allocation9 + $0x110] sm:$0xff]  ;;  %v4600_v34 = vpack.c.bf16 %v1091_v28, %v1087_v31  ;;  %v1093_v39 = vld [vmem:[#allocation9 + $0x148] sm:$0xff]  ;;  %p5579_p2 = pnand %p5578_p11, %p5572_p9 }
 0x3b4   : > { %4019 = vmatpush1.bf16.msra.mxu0 %v4018_v61  ;;  %v1088_v33 = vld [vmem:[#allocation9 + $0x120] sm:$0xff]  ;;  %v1090_v35 = vld [vmem:[#allocation9 + $0x130] sm:$0xff]  ;;  %v1097_v40 = vld [vmem:[#allocation9 + $0x168] sm:$0xff] }
 0x3b5   : > { %4595 = vmatpush1.bf16.msra.mxu1 %v4594_v11  ;;  %4021 = vmatprep.subr.bf16.mxu0 %v4020_v16  ;;  %v1095_v42 = vld [vmem:[#allocation9 + $0x158] sm:$0xff]  ;;  %v4026_v25 = vpack.c.bf16 %v1088_v33, %v1084_v32  ;;  %v4602_v56 = vpack.c.bf16 %v1090_v35, %v1086_v41  ;;  %v4028_v6 = vpack.c.bf16 %v1097_v40, %v1093_v39  ;;  %v1092_v44 = vld [vmem:[#allocation9 + $0x140] sm:$0xff]  ;;  %v1094_v47 = vld [vmem:[#allocation9 + $0x150] sm:$0xff] }
 0x3b6   : > { %4597 = vmatprep.subr.bf16.mxu1 %v4596_v20  ;;  %v1099_v43 = vld [vmem:[#allocation9 + $0x178] sm:$0xff]  ;;  %v1096_v45 = vld [vmem:[#allocation9 + $0x160] sm:$0xff]  ;;  %v1098_v49 = vld [vmem:[#allocation9 + $0x170] sm:$0xff] }
 0x3b7   : > { %v4604_v48 = vpack.c.bf16 %v1099_v43, %v1095_v42  ;;  %v1101_v50 = vld [vmem:[#allocation9 + $0x188] sm:$0xff]  ;;  %v1103_v52 = vld [vmem:[#allocation9 + $0x198] sm:$0xff]  ;;  %v4030_v14 = vpack.c.bf16 %v1096_v45, %v1092_v44  ;;  %v4606_v15 = vpack.c.bf16 %v1098_v49, %v1094_v47  ;;  %v1100_v22 = vld [vmem:[#allocation9 + $0x180] sm:$0xff] }
 0x3b8   : > { %4023 = vmatpush1.bf16.msra.mxu0 %v4022_v29  ;;  %v1105_v55 = vld [vmem:[#allocation9 + $0x1a8] sm:$0xff]  ;;  %v1107_v53 = vld [vmem:[#allocation9 + $0x1b8] sm:$0xff]  ;;  %v1104_v12 = vld [vmem:[#allocation9 + $0x1a0] sm:$0xff] }
 0x3b9   : > { %4599 = vmatpush1.bf16.msra.mxu1 %v4598_v36  ;;  %4025 = vmatprep.subr.bf16.mxu0 %v4024_v30  ;;  %v4032_v5 = vpack.c.bf16 %v1105_v55, %v1101_v50  ;;  %v1102_v37 = vld [vmem:[#allocation9 + $0x190] sm:$0xff]  ;;  %v4608_v54 = vpack.c.bf16 %v1107_v53, %v1103_v52  ;;  %v1109_v57 = vld [vmem:[#allocation9 + $0x1c8] sm:$0xff]  ;;  %v1111_v58 = vld [vmem:[#allocation9 + $0x1d8] sm:$0xff]  ;;  %v4034_v10 = vpack.c.bf16 %v1104_v12, %v1100_v22 }
 0x3ba   : > { %4601 = vmatprep.subr.bf16.mxu1 %v4600_v34  ;;  %v1106_v46 = vld [vmem:[#allocation9 + $0x1b0] sm:$0xff]  ;;  %v1113_v51 = vld [vmem:[#allocation9 + $0x1e8] sm:$0xff]  ;;  %v1115_v60 = vld [vmem:[#allocation9 + $0x1f8] sm:$0xff] }
 0x3bb   : > { %v4610_v13 = vpack.c.bf16 %v1106_v46, %v1102_v37  ;;  %v4036_v38 = vpack.c.bf16 %v1113_v51, %v1109_v57  ;;  %v1108_v62 = vld [vmem:[#allocation9 + $0x1c0] sm:$0xff]  ;;  %v1110_v17 = vld [vmem:[#allocation9 + $0x1d0] sm:$0xff]  ;;  %v4612_v0 = vpack.c.bf16 %v1115_v60, %v1111_v58  ;;  %v1117_v7 = vld [vmem:[#allocation9 + $0x208] sm:$0xff] }
 0x3bc   : > { %4027 = vmatpush1.bf16.msra.mxu0 %v4026_v25  ;;  %v1112_v63 = vld [vmem:[#allocation9 + $0x1e0] sm:$0xff]  ;;  %v1114_v59 = vld [vmem:[#allocation9 + $0x1f0] sm:$0xff]  ;;  %v1121_v2 = vld [vmem:[#allocation9 + $0x228] sm:$0xff] }
 0x3bd   : > { %4603 = vmatpush1.bf16.msra.mxu1 %v4602_v56  ;;  %4029 = vmatprep.subr.bf16.mxu0 %v4028_v6  ;;  %v1119_v21 = vld [vmem:[#allocation9 + $0x218] sm:$0xff]  ;;  %v4038_v61 = vpack.c.bf16 %v1112_v63, %v1108_v62  ;;  %v4614_v8 = vpack.c.bf16 %v1114_v59, %v1110_v17  ;;  %v4040_v9 = vpack.c.bf16 %v1121_v2, %v1117_v7  ;;  %v1116_v18 = vld [vmem:[#allocation9 + $0x200] sm:$0xff]  ;;  %v1118_v16 = vld [vmem:[#allocation9 + $0x210] sm:$0xff] }
 0x3be   : > { %4605 = vmatprep.subr.bf16.mxu1 %v4604_v48  ;;  %v1123_v4 = vld [vmem:[#allocation9 + $0x238] sm:$0xff]  ;;  %v1120_v11 = vld [vmem:[#allocation9 + $0x220] sm:$0xff]  ;;  %v1122_v3 = vld [vmem:[#allocation9 + $0x230] sm:$0xff] }
 0x3bf   : > { %v4616_v26 = vpack.c.bf16 %v1123_v4, %v1119_v21  ;;  %v1125_v19 = vld [vmem:[#allocation9 + $0x248] sm:$0xff]  ;;  %v1127_v1 = vld [vmem:[#allocation9 + $0x258] sm:$0xff]  ;;  %v4042_v24 = vpack.c.bf16 %v1120_v11, %v1116_v18  ;;  %v4618_v27 = vpack.c.bf16 %v1122_v3, %v1118_v16  ;;  %v1124_v28 = vld [vmem:[#allocation9 + $0x240] sm:$0xff] }
 0x3c0   : > { %4031 = vmatpush1.bf16.msra.mxu0 %v4030_v14  ;;  %v1129_v20 = vld [vmem:[#allocation9 + $0x268] sm:$0xff]  ;;  %v1131_v23 = vld [vmem:[#allocation9 + $0x278] sm:$0xff]  ;;  %v1128_v29 = vld [vmem:[#allocation9 + $0x260] sm:$0xff] }
 0x3c1   : > { %4607 = vmatpush1.bf16.msra.mxu1 %v4606_v15  ;;  %4033 = vmatprep.subr.bf16.mxu0 %v4032_v5  ;;  %v4044_v31 = vpack.c.bf16 %v1129_v20, %v1125_v19  ;;  %v1126_v36 = vld [vmem:[#allocation9 + $0x250] sm:$0xff]  ;;  %v4620_v30 = vpack.c.bf16 %v1131_v23, %v1127_v1  ;;  %v1133_v33 = vld [vmem:[#allocation9 + $0x288] sm:$0xff]  ;;  %v1135_v34 = vld [vmem:[#allocation9 + $0x298] sm:$0xff]  ;;  %v4046_v39 = vpack.c.bf16 %v1128_v29, %v1124_v28 }
 0x3c2   : > { %4609 = vmatprep.subr.bf16.mxu1 %v4608_v54  ;;  %v1130_v32 = vld [vmem:[#allocation9 + $0x270] sm:$0xff]  ;;  %v1137_v41 = vld [vmem:[#allocation9 + $0x2a8] sm:$0xff]  ;;  %v1139_v35 = vld [vmem:[#allocation9 + $0x2b8] sm:$0xff] }
 0x3c3   : > { %v4622_v40 = vpack.c.bf16 %v1130_v32, %v1126_v36  ;;  %v4048_v42 = vpack.c.bf16 %v1137_v41, %v1133_v33  ;;  %v1132_v43 = vld [vmem:[#allocation9 + $0x280] sm:$0xff]  ;;  %v1134_v56 = vld [vmem:[#allocation9 + $0x290] sm:$0xff]  ;;  %v4624_v6 = vpack.c.bf16 %v1139_v35, %v1135_v34  ;;  %v1141_v45 = vld [vmem:[#allocation9 + $0x2c8] sm:$0xff] }
 0x3c4   : > { %4035 = vmatpush1.bf16.msra.mxu0 %v4034_v10  ;;  %v1136_v25 = vld [vmem:[#allocation9 + $0x2a0] sm:$0xff]  ;;  %v1138_v44 = vld [vmem:[#allocation9 + $0x2b0] sm:$0xff]  ;;  %v1145_v47 = vld [vmem:[#allocation9 + $0x2e8] sm:$0xff] }
 0x3c5   : > { %4611 = vmatpush1.bf16.msra.mxu1 %v4610_v13  ;;  %4037 = vmatprep.subr.bf16.mxu0 %v4036_v38  ;;  %v1143_v48 = vld [vmem:[#allocation9 + $0x2d8] sm:$0xff]  ;;  %v4050_v50 = vpack.c.bf16 %v1136_v25, %v1132_v43  ;;  %v1140_v55 = vld [vmem:[#allocation9 + $0x2c0] sm:$0xff]  ;;  %v4626_v52 = vpack.c.bf16 %v1138_v44, %v1134_v56  ;;  %v4052_v53 = vpack.c.bf16 %v1145_v47, %v1141_v45  ;;  %v1142_v15 = vld [vmem:[#allocation9 + $0x2d0] sm:$0xff] }
 0x3c6   : > { %4613 = vmatprep.subr.bf16.mxu1 %v4612_v0  ;;  %v1147_v49 = vld [vmem:[#allocation9 + $0x2f8] sm:$0xff]  ;;  %v1144_v14 = vld [vmem:[#allocation9 + $0x2e0] sm:$0xff]  ;;  %v1146_v5 = vld [vmem:[#allocation9 + $0x2f0] sm:$0xff] }
 0x3c7   : > { %v4628_v22 = vpack.c.bf16 %v1147_v49, %v1143_v48  ;;  %v1149_v12 = vld [vmem:[#allocation9 + $0x308] sm:$0xff]  ;;  %v942_v54 = vld [vmem:[%s6388_s16] sm:$0xff]  ;;  %v1151_v46 = vld [vmem:[#allocation9 + $0x318] sm:$0xff]  ;;  %v4054_v51 = vpack.c.bf16 %v1144_v14, %v1140_v55  ;;  %v4630_v58 = vpack.c.bf16 %v1146_v5, %v1142_v15 }
 0x3c8   : > { %4039 = vmatpush1.bf16.msra.mxu0 %v4038_v61  ;;  %v1153_v37 = vld [vmem:[#allocation9 + $0x328] sm:$0xff]  ;;  %v1155_v57 = vld [vmem:[#allocation9 + $0x338] sm:$0xff]  ;;  %2290 = vmatprep.mubr.f32.mxu0 %v942_v54  ;;  %v1148_v10 = vld [vmem:[#allocation9 + $0x300] sm:$0xff] }
 0x3c9   : > { %4615 = vmatpush1.bf16.msra.mxu1 %v4614_v8  ;;  %4041 = vmatprep.subr.bf16.mxu0 %v4040_v9  ;;  %v4056_v60 = vpack.c.bf16 %v1153_v37, %v1149_v12  ;;  %v1152_v13 = vld [vmem:[#allocation9 + $0x320] sm:$0xff]  ;;  %v1150_v38 = vld [vmem:[#allocation9 + $0x310] sm:$0xff]  ;;  %v4632_v62 = vpack.c.bf16 %v1155_v57, %v1151_v46  ;;  %v1157_v17 = vld [vmem:[#allocation9 + $0x348] sm:$0xff] }
 0x3ca   : > { %4617 = vmatprep.subr.bf16.mxu1 %v4616_v26  ;;  %2983 = vmatprep.mubr.f32.mxu1 %v942_v54  ;;  %v1154_v63 = vld [vmem:[#allocation9 + $0x330] sm:$0xff]  ;;  %v1161_v0 = vld [vmem:[#allocation9 + $0x368] sm:$0xff]  ;;  %v1159_v59 = vld [vmem:[#allocation9 + $0x358] sm:$0xff]  ;;  %v4058_v2 = vpack.c.bf16 %v1152_v13, %v1148_v10 }
 0x3cb   : > { %v1163_v7 = vld [vmem:[#allocation9 + $0x378] sm:$0xff]  ;;  %v4634_v21 = vpack.c.bf16 %v1154_v63, %v1150_v38  ;;  %v4060_v4 = vpack.c.bf16 %v1161_v0, %v1157_v17  ;;  %v1156_v61 = vld [vmem:[#allocation9 + $0x340] sm:$0xff]  ;;  %v1158_v9 = vld [vmem:[#allocation9 + $0x350] sm:$0xff] }
 0x3cc   : > { %4043 = vmatpush1.bf16.msra.mxu0 %v4042_v24  ;;  %v1160_v8 = vld [vmem:[#allocation9 + $0x360] sm:$0xff]  ;;  %v4636_v18 = vpack.c.bf16 %v1163_v7, %v1159_v59  ;;  %v1162_v11 = vld [vmem:[#allocation9 + $0x370] sm:$0xff]  ;;  %v1165_v16 = vld [vmem:[#allocation9 + $0x388] sm:$0xff] }
 0x3cd   : > { %4619 = vmatpush1.bf16.msra.mxu1 %v4618_v27  ;;  %4045 = vmatprep.subr.bf16.mxu0 %v4044_v31  ;;  %v1169_v26 = vld [vmem:[#allocation9 + $0x3a8] sm:$0xff]  ;;  %v1167_v3 = vld [vmem:[#allocation9 + $0x398] sm:$0xff]  ;;  %v4062_v20 = vpack.c.bf16 %v1160_v8, %v1156_v61  ;;  %v4638_v1 = vpack.c.bf16 %v1162_v11, %v1158_v9  ;;  %v1164_v24 = vld [vmem:[#allocation9 + $0x380] sm:$0xff] }
 0x3ce   : > { %4621 = vmatprep.subr.bf16.mxu1 %v4620_v30  ;;  %v1171_v19 = vld [vmem:[#allocation9 + $0x3b8] sm:$0xff]  ;;  %v4064_v23 = vpack.c.bf16 %v1169_v26, %v1165_v16  ;;  %v1168_v27 = vld [vmem:[#allocation9 + $0x3a0] sm:$0xff]  ;;  %v1166_v31 = vld [vmem:[#allocation9 + $0x390] sm:$0xff] }
 0x3cf   : > { %v4640_v28 = vpack.c.bf16 %v1171_v19, %v1167_v3  ;;  %v1170_v29 = vld [vmem:[#allocation9 + $0x3b0] sm:$0xff]  ;;  %v1173_v36 = vld [vmem:[#allocation9 + $0x3c8] sm:$0xff]  ;;  %v1175_v32 = vld [vmem:[#allocation9 + $0x3d8] sm:$0xff]  ;;  %v4066_v41 = vpack.c.bf16 %v1168_v27, %v1164_v24 }
 0x3d0   : > { %4047 = vmatpush1.bf16.msra.mxu0 %v4046_v39  ;;  %v1177_v30 = vld [vmem:[#allocation9 + $0x3e8] sm:$0xff]  ;;  %v1179_v33 = vld [vmem:[#allocation9 + $0x3f8] sm:$0xff]  ;;  %v4642_v34 = vpack.c.bf16 %v1170_v29, %v1166_v31  ;;  %v1172_v39 = vld [vmem:[#allocation9 + $0x3c0] sm:$0xff] }
 0x3d1   : > { %4623 = vmatpush1.bf16.msra.mxu1 %v4622_v40  ;;  %4049 = vmatprep.subr.bf16.mxu0 %v4048_v42  ;;  %v4068_v35 = vpack.c.bf16 %v1177_v30, %v1173_v36  ;;  %v1176_v40 = vld [vmem:[#allocation9 + $0x3e0] sm:$0xff]  ;;  %v1174_v42 = vld [vmem:[#allocation9 + $0x3d0] sm:$0xff]  ;;  %v4644_v43 = vpack.c.bf16 %v1179_v33, %v1175_v32  ;;  %v1181_v56 = vld [vmem:[#allocation9 + $0x408] sm:$0xff] }
 0x3d2   : > { %4625 = vmatprep.subr.bf16.mxu1 %v4624_v6  ;;  %v1178_v25 = vld [vmem:[#allocation9 + $0x3f0] sm:$0xff]  ;;  %v1185_v6 = vld [vmem:[#allocation9 + $0x428] sm:$0xff]  ;;  %v1183_v44 = vld [vmem:[#allocation9 + $0x418] sm:$0xff]  ;;  %v4070_v47 = vpack.c.bf16 %v1176_v40, %v1172_v39 }
 0x3d3   : > { %v1187_v45 = vld [vmem:[#allocation9 + $0x438] sm:$0xff]  ;;  %v4646_v48 = vpack.c.bf16 %v1178_v25, %v1174_v42  ;;  %v4072_v49 = vpack.c.bf16 %v1185_v6, %v1181_v56  ;;  %v1184_v55 = vld [vmem:[#allocation9 + $0x420] sm:$0xff]  ;;  %v1186_v14 = vld [vmem:[#allocation9 + $0x430] sm:$0xff] }
 0x3d4   : > { %4051 = vmatpush1.bf16.msra.mxu0 %v4050_v50  ;;  %v1180_v50 = vld [vmem:[#allocation9 + $0x400] sm:$0xff]  ;;  %v1189_v15 = vld [vmem:[#allocation9 + $0x448] sm:$0xff]  ;;  %v1195_v12 = vld [vmem:[#allocation9 + $0x478] sm:$0xff] }
 0x3d5   : > { %4627 = vmatpush1.bf16.msra.mxu1 %v4626_v52  ;;  %4053 = vmatprep.subr.bf16.mxu0 %v4052_v53  ;;  %v1182_v52 = vld [vmem:[#allocation9 + $0x410] sm:$0xff]  ;;  %v4648_v53 = vpack.c.bf16 %v1187_v45, %v1183_v44  ;;  %v1193_v5 = vld [vmem:[#allocation9 + $0x468] sm:$0xff]  ;;  %v939_v37 = vld [vmem:[#allocation2] sm:$0xff]  ;;  %v4074_v54 = vpack.c.bf16 %v1184_v55, %v1180_v50 }
 0x3d6   : > { %4629 = vmatprep.subr.bf16.mxu1 %v4628_v22  ;;  %v1191_v22 = vld [vmem:[#allocation9 + $0x458] sm:$0xff]  ;;  %v4650_v46 = vpack.c.bf16 %v1186_v14, %v1182_v52  ;;  %v4076_v57 = vpack.c.bf16 %v1193_v5, %v1189_v15  ;;  %v1194_v13 = vld [vmem:[#allocation9 + $0x470] sm:$0xff]  ;;  %v1197_v38 = vld [vmem:[#allocation9 + $0x488] sm:$0xff] }
 0x3d7   : > { %v4652_v10 = vpack.c.bf16 %v1195_v12, %v1191_v22  ;;  %v1199_v63 = vld [vmem:[#allocation9 + $0x498] sm:$0xff]  ;;  %v1202_v8 = vld [vmem:[#allocation9 + $0x4b0] sm:$0xff]  ;;  %v1205_v9 = vld [vmem:[#allocation9 + $0x4c8] sm:$0xff] }
 0x3d8   : > { %4055 = vmatpush1.bf16.msra.mxu0 %v4054_v51  ;;  %v1188_v51 = vld [vmem:[#allocation9 + $0x440] sm:$0xff]  ;;  %v1203_v17 = vld [vmem:[#allocation9 + $0x4b8] sm:$0xff]  ;;  %v1210_v27 = vld [vmem:[#allocation9 + $0x4f0] sm:$0xff] }
 0x3d9   : > { %4631 = vmatpush1.bf16.msra.mxu1 %v4630_v58  ;;  %4057 = vmatprep.subr.bf16.mxu0 %v4056_v60  ;;  %v1192_v58 = vld [vmem:[#allocation9 + $0x460] sm:$0xff]  ;;  %v1190_v60 = vld [vmem:[#allocation9 + $0x450] sm:$0xff]  ;;  %v4656_v61 = vpack.c.bf16 %v1203_v17, %v1199_v63  ;;  %v1207_v11 = vld [vmem:[#allocation9 + $0x4d8] sm:$0xff] }
 0x3da   : > { %4633 = vmatprep.subr.bf16.mxu1 %v4632_v62  ;;  %v1201_v62 = vld [vmem:[#allocation9 + $0x4a8] sm:$0xff]  ;;  %v4078_v0 = vpack.c.bf16 %v1192_v58, %v1188_v51  ;;  %v4654_v59 = vpack.c.bf16 %v1194_v13, %v1190_v60  ;;  %v1211_v16 = vld [vmem:[#allocation9 + $0x4f8] sm:$0xff]  ;;  %v1218_v40 = vld [vmem:[#allocation9 + $0x530] sm:$0xff] }
 0x3db   : > { %v4080_v7 = vpack.c.bf16 %v1201_v62, %v1197_v38  ;;  %v4660_v24 = vpack.c.bf16 %v1211_v16, %v1207_v11  ;;  %v1213_v31 = vld [vmem:[#allocation9 + $0x508] sm:$0xff]  ;;  %v1215_v29 = vld [vmem:[#allocation9 + $0x518] sm:$0xff]  ;;  %v1226_v55 = vld [vmem:[#allocation9 + $0x570] sm:$0xff] }
 0x3dc   : > { %4059 = vmatpush1.bf16.msra.mxu0 %v4058_v2  ;;  %v1196_v2 = vld [vmem:[#allocation9 + $0x480] sm:$0xff]  ;;  %v1219_v36 = vld [vmem:[#allocation9 + $0x538] sm:$0xff]  ;;  %v1221_v42 = vld [vmem:[#allocation9 + $0x548] sm:$0xff] }
 0x3dd   : > { %4635 = vmatpush1.bf16.msra.mxu1 %v4634_v21  ;;  %4061 = vmatprep.subr.bf16.mxu0 %v4060_v4  ;;  %v1200_v21 = vld [vmem:[#allocation9 + $0x4a0] sm:$0xff]  ;;  %v1198_v4 = vld [vmem:[#allocation9 + $0x490] sm:$0xff]  ;;  %v4664_v39 = vpack.c.bf16 %v1219_v36, %v1215_v29  ;;  %v1223_v25 = vld [vmem:[#allocation9 + $0x558] sm:$0xff] }
 0x3de   : > { %4637 = vmatprep.subr.bf16.mxu1 %v4636_v18  ;;  %v1209_v18 = vld [vmem:[#allocation9 + $0x4e8] sm:$0xff]  ;;  %v4082_v26 = vpack.c.bf16 %v1200_v21, %v1196_v2  ;;  %v4658_v3 = vpack.c.bf16 %v1202_v8, %v1198_v4  ;;  %v1227_v56 = vld [vmem:[#allocation9 + $0x578] sm:$0xff]  ;;  %v943_v5 = vld [vmem:[%s6388_s16 + $0x10] sm:$0xff] }
 0x3df   : > { %v4084_v19 = vpack.c.bf16 %v1209_v18, %v1205_v9  ;;  %v4668_v50 = vpack.c.bf16 %v1227_v56, %v1223_v25  ;;  %v1229_v52 = vld [vmem:[#allocation9 + $0x588] sm:$0xff]  ;;  %v1231_v14 = vld [vmem:[#allocation9 + $0x598] sm:$0xff]  ;;  %v1228_v12 = vld [vmem:[#allocation9 + $0x580] sm:$0xff] }
 0x3e0   : > { %4063 = vmatpush1.bf16.msra.mxu0 %v4062_v20  ;;  %v1204_v20 = vld [vmem:[#allocation9 + $0x4c0] sm:$0xff]  ;;  %v1235_v15 = vld [vmem:[#allocation9 + $0x5b8] sm:$0xff]  ;;  %v1234_v51 = vld [vmem:[#allocation9 + $0x5b0] sm:$0xff] }
 0x3e1   : > { %4639 = vmatpush1.bf16.msra.mxu1 %v4638_v1  ;;  %4065 = vmatprep.subr.bf16.mxu0 %v4064_v23  ;;  %v1208_v1 = vld [vmem:[#allocation9 + $0x4e0] sm:$0xff]  ;;  %v1206_v23 = vld [vmem:[#allocation9 + $0x4d0] sm:$0xff]  ;;  %v4672_v60 = vpack.c.bf16 %v1235_v15, %v1231_v14  ;;  %v1241_v13 = vld [vmem:[#allocation9 + $0x5e8] sm:$0xff] }
 0x3e2   : > { %4641 = vmatprep.subr.bf16.mxu1 %v4640_v28  ;;  %v1217_v28 = vld [vmem:[#allocation9 + $0x528] sm:$0xff]  ;;  %v4086_v30 = vpack.c.bf16 %v1208_v1, %v1204_v20  ;;  %v4662_v32 = vpack.c.bf16 %v1210_v27, %v1206_v23  ;;  %v940_v58 = vld [vmem:[#allocation2 + $0x10] sm:$0xff]  ;;  %v1239_v62 = vld [vmem:[#allocation9 + $0x5d8] sm:$0xff] }
 0x3e3   : > { %v4088_v33 = vpack.c.bf16 %v1217_v28, %v1213_v31  ;;  %v950_v38 = vld [vmem:[%s6388_s16 + $0x1] sm:$0xff]  ;;  %v1243_v63 = vld [vmem:[#allocation9 + $0x5f8] sm:$0xff]  ;;  %v1238_v21 = vld [vmem:[#allocation9 + $0x5d0] sm:$0xff] }
 0x3e4   : > { %4067 = vmatpush1.bf16.msra.mxu0 %v4066_v41  ;;  %v1212_v41 = vld [vmem:[#allocation9 + $0x500] sm:$0xff]  ;;  %v4676_v4 = vpack.c.bf16 %v1243_v63, %v1239_v62  ;;  %v1245_v8 = vld [vmem:[#allocation9 + $0x608] sm:$0xff]  ;;  %v1247_v18 = vld [vmem:[#allocation9 + $0x618] sm:$0xff] }
 0x3e5   : > { %4643 = vmatpush1.bf16.msra.mxu1 %v4642_v34  ;;  %4069 = vmatprep.subr.bf16.mxu0 %v4068_v35  ;;  %v1216_v34 = vld [vmem:[#allocation9 + $0x520] sm:$0xff]  ;;  %v1214_v35 = vld [vmem:[#allocation9 + $0x510] sm:$0xff]  ;;  %v1249_v9 = vld [vmem:[#allocation9 + $0x628] sm:$0xff] }
 0x3e6   : > { %4645 = vmatprep.subr.bf16.mxu1 %v4644_v43  ;;  %v1225_v43 = vld [vmem:[#allocation9 + $0x568] sm:$0xff]  ;;  %v4090_v6 = vpack.c.bf16 %v1216_v34, %v1212_v41  ;;  %v4666_v44 = vpack.c.bf16 %v1218_v40, %v1214_v35  ;;  %v1240_v2 = vld [vmem:[#allocation9 + $0x5e0] sm:$0xff]  ;;  %v1251_v11 = vld [vmem:[#allocation9 + $0x638] sm:$0xff] }
 0x3e7   : > { %v4092_v45 = vpack.c.bf16 %v1225_v43, %v1221_v42  ;;  %v1248_v20 = vld [vmem:[#allocation9 + $0x620] sm:$0xff]  ;;  %v1246_v1 = vld [vmem:[#allocation9 + $0x610] sm:$0xff]  ;;  %v4680_v23 = vpack.c.bf16 %v1251_v11, %v1247_v18  ;;  %v1253_v27 = vld [vmem:[#allocation9 + $0x648] sm:$0xff] }
 0x3e8   : > { %4071 = vmatpush1.bf16.msra.mxu0 %v4070_v47  ;;  %v1220_v47 = vld [vmem:[#allocation9 + $0x540] sm:$0xff]  ;;  %v1257_v31 = vld [vmem:[#allocation9 + $0x668] sm:$0xff]  ;;  %v1255_v28 = vld [vmem:[#allocation9 + $0x658] sm:$0xff] }
 0x3e9   : > { %4647 = vmatpush1.bf16.msra.mxu1 %v4646_v48  ;;  %4073 = vmatprep.subr.bf16.mxu0 %v4072_v49  ;;  %v1224_v48 = vld [vmem:[#allocation9 + $0x560] sm:$0xff]  ;;  %v1222_v49 = vld [vmem:[#allocation9 + $0x550] sm:$0xff]  ;;  %v1259_v29 = vld [vmem:[#allocation9 + $0x678] sm:$0xff] }
 0x3ea   : > { %4649 = vmatprep.subr.bf16.mxu1 %v4648_v53  ;;  %v1233_v53 = vld [vmem:[#allocation9 + $0x5a8] sm:$0xff]  ;;  %v4094_v22 = vpack.c.bf16 %v1224_v48, %v1220_v47  ;;  %v1256_v41 = vld [vmem:[#allocation9 + $0x660] sm:$0xff]  ;;  %v1254_v34 = vld [vmem:[#allocation9 + $0x650] sm:$0xff]  ;;  %v4684_v35 = vpack.c.bf16 %v1259_v29, %v1255_v28 }
 0x3eb   : > { %2291 = vmatmul.mubr.f32.vlgmr.msra.gmra.mrb[0].mxu0 %v939_v37  ;;  %v1261_v40 = vld [vmem:[#allocation9 + $0x688] sm:$0xff]  ;;  %v1263_v43 = vld [vmem:[#allocation9 + $0x698] sm:$0xff]  ;;  %v1264_v47 = vld [vmem:[#allocation9 + $0x6a0] sm:$0xff] }
 0x3ec   : > { %4075 = vmatpush1.bf16.msra.mxu0 %v4074_v54  ;;  %2984 = vmatmul.mubr.f32.vlgmr.msra.gmra.mrb[0].mxu1 %v939_v37  ;;  %v1232_v37 = vld [vmem:[#allocation9 + $0x5a0] sm:$0xff]  ;;  %v4670_v54 = vpack.c.bf16 %v1226_v55, %v1222_v49  ;;  %v1265_v42 = vld [vmem:[#allocation9 + $0x6a8] sm:$0xff]  ;;  %v1267_v25 = vld [vmem:[#allocation9 + $0x6b8] sm:$0xff] }
 0x3ed   : > { %4651 = vmatpush1.bf16.msra.mxu1 %v4650_v46  ;;  %4077 = vmatprep.subr.bf16.mxu0 %v4076_v57  ;;  %v4096_v46 = vpack.c.bf16 %v1233_v53, %v1229_v52  ;;  %v1230_v57 = vld [vmem:[#allocation9 + $0x590] sm:$0xff]  ;;  %v4098_v17 = vpack.c.bf16 %v1232_v37, %v1228_v12  ;;  %v4688_v49 = vpack.c.bf16 %v1267_v25, %v1263_v43  ;;  %v1269_v55 = vld [vmem:[#allocation9 + $0x6c8] sm:$0xff]  ;;  %v1271_v53 = vld [vmem:[#allocation9 + $0x6d8] sm:$0xff] }
 0x3ee   : > { %4653 = vmatprep.subr.bf16.mxu1 %v4652_v10  ;;  %2296 = vmatprep.mubr.f32.mxu0 %v943_v5  ;;  %v1237_v10 = vld [vmem:[#allocation9 + $0x5c8] sm:$0xff]  ;;  %v1262_v48 = vld [vmem:[#allocation9 + $0x690] sm:$0xff]  ;;  %v1275_v14 = vld [vmem:[#allocation9 + $0x6f8] sm:$0xff] }
 0x3ef   : > { %2989 = vmatprep.mubr.f32.mxu1 %v943_v5  ;;  %2297 = vmatmul.mubr.f32.gmra.mrb[2].mxu0 %v940_v58  ;;  %v1273_v52 = vld [vmem:[#allocation9 + $0x6e8] sm:$0xff]  ;;  %v1268_v12 = vld [vmem:[#allocation9 + $0x6c0] sm:$0xff] }
 0x3f0   : > { %4079 = vmatpush1.bf16.msra.mxu0 %v4078_v0  ;;  %2990 = vmatmul.mubr.f32.gmra.mrb[2].mxu1 %v940_v58  ;;  %v4674_v0 = vpack.c.bf16 %v1234_v51, %v1230_v57  ;;  %v1272_v37 = vld [vmem:[#allocation9 + $0x6e0] sm:$0xff]  ;;  %v1274_v57 = vld [vmem:[#allocation9 + $0x6f0] sm:$0xff]  ;;  %v1277_v51 = vld [vmem:[#allocation9 + $0x708] sm:$0xff] }
 0x3f1   : > { %4655 = vmatpush1.bf16.msra.mxu1 %v4654_v59  ;;  %4081 = vmatprep.subr.bf16.mxu0 %v4080_v7  ;;  %v4100_v59 = vpack.c.bf16 %v1241_v13, %v1237_v10  ;;  %v1236_v7 = vld [vmem:[#allocation9 + $0x5c0] sm:$0xff]  ;;  %v1281_v58 = vld [vmem:[#allocation9 + $0x728] sm:$0xff]  ;;  %v1283_v10 = vld [vmem:[#allocation9 + $0x738] sm:$0xff]  ;;  %v4118_v13 = vpack.c.bf16 %v1272_v37, %v1268_v12 }
 0x3f2   : > { %4657 = vmatprep.subr.bf16.mxu1 %v4656_v61  ;;  %2367 = vmatprep.mubr.f32.mxu0 %v950_v38  ;;  %v1242_v61 = vld [vmem:[#allocation9 + $0x5f0] sm:$0xff]  ;;  %v4102_v16 = vpack.c.bf16 %v1240_v2, %v1236_v7  ;;  %v4120_v62 = vpack.c.bf16 %v1281_v58, %v1277_v51  ;;  %v1276_v63 = vld [vmem:[#allocation9 + $0x700] sm:$0xff]  ;;  %v1285_v2 = vld [vmem:[#allocation9 + $0x748] sm:$0xff] }
 0x3f3   : > { %3060 = vmatprep.mubr.f32.mxu1 %v950_v38  ;;  %v1282_v7 = vld [vmem:[#allocation9 + $0x730] sm:$0xff]  ;;  %v1284_v11 = vld [vmem:[#allocation9 + $0x740] sm:$0xff]  ;;  %v1317_v37 = vld [vmem:[#allocation9 + $0x848] sm:$0xff] }
 0x3f4   : > { %4083 = vmatpush1.bf16.msra.mxu0 %v4082_v26  ;;  %v4678_v26 = vpack.c.bf16 %v1242_v61, %v1238_v21  ;;  %v1289_v21 = vld [vmem:[#allocation9 + $0x768] sm:$0xff]  ;;  %v1291_v61 = vld [vmem:[#allocation9 + $0x778] sm:$0xff]  ;;  %v1292_v29 = vld [vmem:[#allocation9 + $0x780] sm:$0xff] }
 0x3f5   : > { %4659 = vmatpush1.bf16.msra.mxu1 %v4658_v3  ;;  %4085 = vmatprep.subr.bf16.mxu0 %v4084_v19  ;;  %v4104_v3 = vpack.c.bf16 %v1249_v9, %v1245_v8  ;;  %v1244_v19 = vld [vmem:[#allocation9 + $0x600] sm:$0xff]  ;;  %v4124_v18 = vpack.c.bf16 %v1289_v21, %v1285_v2  ;;  %v1314_v12 = vld [vmem:[#allocation9 + $0x830] sm:$0xff]  ;;  %v1331_v2 = vld [vmem:[#allocation9 + $0x8b8] sm:$0xff] }
 0x3f6   : > { %4661 = vmatprep.subr.bf16.mxu1 %v4660_v24  ;;  %v1250_v24 = vld [vmem:[#allocation9 + $0x630] sm:$0xff]  ;;  %v4106_v36 = vpack.c.bf16 %v1248_v20, %v1244_v19  ;;  %v1293_v20 = vld [vmem:[#allocation9 + $0x788] sm:$0xff]  ;;  %v1300_v25 = vld [vmem:[#allocation9 + $0x7c0] sm:$0xff] }
 0x3f7   : > { %v1290_v19 = vld [vmem:[#allocation9 + $0x770] sm:$0xff]  ;;  %v948_v51 = vld [vmem:[#allocation2 + $0x1] sm:$0xff] }
 0x3f8   : > { %4087 = vmatpush1.bf16.msra.mxu0 %v4086_v30  ;;  %v4682_v30 = vpack.c.bf16 %v1250_v24, %v1246_v1  ;;  %v1297_v1 = vld [vmem:[#allocation9 + $0x7a8] sm:$0xff]  ;;  %v1299_v24 = vld [vmem:[#allocation9 + $0x7b8] sm:$0xff] }
 0x3f9   : > { %4663 = vmatpush1.bf16.msra.mxu1 %v4662_v32  ;;  %4089 = vmatprep.subr.bf16.mxu0 %v4088_v33  ;;  %v4108_v32 = vpack.c.bf16 %v1257_v31, %v1253_v27  ;;  %v1252_v33 = vld [vmem:[#allocation9 + $0x640] sm:$0xff]  ;;  %v4128_v28 = vpack.c.bf16 %v1297_v1, %v1293_v20  ;;  %v951_v21 = vld [vmem:[%s6388_s16 + $0x11] sm:$0xff]  ;;  %v1337_v20 = vld [vmem:[#allocation9 + $0x8e8] sm:$0xff] }
 0x3fa   : > { %4665 = vmatprep.subr.bf16.mxu1 %v4664_v39  ;;  %v1258_v39 = vld [vmem:[#allocation9 + $0x670] sm:$0xff]  ;;  %v4110_v56 = vpack.c.bf16 %v1256_v41, %v1252_v33  ;;  %v1301_v41 = vld [vmem:[#allocation9 + $0x7c8] sm:$0xff]  ;;  %v1335_v1 = vld [vmem:[#allocation9 + $0x8d8] sm:$0xff] }
 0x3fb   : > { %v1298_v33 = vld [vmem:[#allocation9 + $0x7b0] sm:$0xff] }
 0x3fc   : > { %4091 = vmatpush1.bf16.msra.mxu0 %v4090_v6  ;;  %v4686_v6 = vpack.c.bf16 %v1258_v39, %v1254_v34  ;;  %v1305_v34 = vld [vmem:[#allocation9 + $0x7e8] sm:$0xff]  ;;  %v1307_v39 = vld [vmem:[#allocation9 + $0x7f8] sm:$0xff] }
 0x3fd   : > { %4667 = vmatpush1.bf16.msra.mxu1 %v4666_v44  ;;  %4093 = vmatprep.subr.bf16.mxu0 %v4092_v45  ;;  %v4112_v44 = vpack.c.bf16 %v1265_v42, %v1261_v40  ;;  %v1260_v45 = vld [vmem:[#allocation9 + $0x680] sm:$0xff]  ;;  %v4132_v43 = vpack.c.bf16 %v1305_v34, %v1301_v41  ;;  %v1341_v41 = vld [vmem:[#allocation9 + $0x908] sm:$0xff] }
 0x3fe   : > { %4669 = vmatprep.subr.bf16.mxu1 %v4668_v50  ;;  %v1266_v50 = vld [vmem:[#allocation9 + $0x6b0] sm:$0xff]  ;;  %v4114_v15 = vpack.c.bf16 %v1264_v47, %v1260_v45  ;;  %v1309_v47 = vld [vmem:[#allocation9 + $0x808] sm:$0xff] }
 0x3ff   : > { %v4690_v5 = vpack.c.bf16 %v1266_v50, %v1262_v48  ;;  %v1306_v45 = vld [vmem:[#allocation9 + $0x7f0] sm:$0xff]  ;;  %v1313_v48 = vld [vmem:[#allocation9 + $0x828] sm:$0xff]  ;;  %v1315_v50 = vld [vmem:[#allocation9 + $0x838] sm:$0xff] }
 0x400   : > { %4095 = vmatpush1.bf16.msra.mxu0 %v4094_v22  ;;  %v4116_v22 = vpack.c.bf16 %v1273_v52, %v1269_v55  ;;  %v1345_v34 = vld [vmem:[#allocation9 + $0x928] sm:$0xff] }
 0x401   : > { %4671 = vmatpush1.bf16.msra.mxu1 %v4670_v54  ;;  %4097 = vmatprep.subr.bf16.mxu0 %v4096_v46  ;;  %v1270_v54 = vld [vmem:[#allocation9 + $0x6d0] sm:$0xff]  ;;  %v4692_v46 = vpack.c.bf16 %v1275_v14, %v1271_v53  ;;  %v4136_v53 = vpack.c.bf16 %v1313_v48, %v1309_v47  ;;  %v1308_v14 = vld [vmem:[#allocation9 + $0x800] sm:$0xff]  ;;  %v1349_v47 = vld [vmem:[#allocation9 + $0x948] sm:$0xff] }
 0x402   : > { %4673 = vmatprep.subr.bf16.mxu1 %v4672_v60  ;;  %v1279_v60 = vld [vmem:[#allocation9 + $0x718] sm:$0xff]  ;;  %v4694_v38 = vpack.c.bf16 %v1274_v57, %v1270_v54  ;;  %v1321_v54 = vld [vmem:[#allocation9 + $0x868] sm:$0xff] }
 0x403   : > { %v1323_v57 = vld [vmem:[#allocation9 + $0x878] sm:$0xff]  ;;  %v1353_v48 = vld [vmem:[#allocation9 + $0x968] sm:$0xff] }
 0x404   : > { %4099 = vmatpush1.bf16.msra.mxu0 %v4098_v17  ;;  %v1280_v17 = vld [vmem:[#allocation9 + $0x720] sm:$0xff] }
 0x405   : > { %4675 = vmatpush1.bf16.msra.mxu1 %v4674_v0  ;;  %4101 = vmatprep.subr.bf16.mxu0 %v4100_v59  ;;  %v1278_v0 = vld [vmem:[#allocation9 + $0x710] sm:$0xff]  ;;  %v4696_v59 = vpack.c.bf16 %v1283_v10, %v1279_v60  ;;  %v4122_v8 = vpack.c.bf16 %v1280_v17, %v1276_v63  ;;  %v4140_v10 = vpack.c.bf16 %v1321_v54, %v1317_v37  ;;  %v1357_v37 = vld [vmem:[#allocation9 + $0x988] sm:$0xff] }
 0x406   : > { %4677 = vmatprep.subr.bf16.mxu1 %v4676_v4  ;;  %v1287_v4 = vld [vmem:[#allocation9 + $0x758] sm:$0xff]  ;;  %v4698_v9 = vpack.c.bf16 %v1282_v7, %v1278_v0  ;;  %v1322_v17 = vld [vmem:[#allocation9 + $0x870] sm:$0xff]  ;;  %v1325_v0 = vld [vmem:[#allocation9 + $0x888] sm:$0xff] }
 0x407   : > { %v1327_v7 = vld [vmem:[#allocation9 + $0x898] sm:$0xff]  ;;  %v1361_v54 = vld [vmem:[#allocation9 + $0x9a8] sm:$0xff] }
 0x408   : > { %4103 = vmatpush1.bf16.msra.mxu0 %v4102_v16  ;;  %v1288_v16 = vld [vmem:[#allocation9 + $0x760] sm:$0xff] }
 0x409   : > { %4679 = vmatpush1.bf16.msra.mxu1 %v4678_v26  ;;  %4105 = vmatprep.subr.bf16.mxu0 %v4104_v3  ;;  %v1286_v26 = vld [vmem:[#allocation9 + $0x750] sm:$0xff]  ;;  %v4700_v3 = vpack.c.bf16 %v1291_v61, %v1287_v4  ;;  %v4126_v27 = vpack.c.bf16 %v1288_v16, %v1284_v11  ;;  %v1328_v11 = vld [vmem:[#allocation9 + $0x8a0] sm:$0xff] }
 0x40a   : > { %4681 = vmatprep.subr.bf16.mxu1 %v4680_v23  ;;  %v1295_v23 = vld [vmem:[#allocation9 + $0x798] sm:$0xff]  ;;  %v4702_v31 = vpack.c.bf16 %v1290_v19, %v1286_v26  ;;  %v1326_v16 = vld [vmem:[#allocation9 + $0x890] sm:$0xff]  ;;  %v4720_v26 = vpack.c.bf16 %v1331_v2, %v1327_v7  ;;  %v1333_v19 = vld [vmem:[#allocation9 + $0x8c8] sm:$0xff] }
 0x40b   : > { %v949_v61 = vld [vmem:[#allocation2 + $0x11] sm:$0xff] }
 0x40c   : > { %4107 = vmatpush1.bf16.msra.mxu0 %v4106_v36  ;;  %v1296_v36 = vld [vmem:[#allocation9 + $0x7a0] sm:$0xff]  ;;  %v1371_v7 = vld [vmem:[#allocation9 + $0x9f8] sm:$0xff] }
 0x40d   : > { %4683 = vmatpush1.bf16.msra.mxu1 %v4682_v30  ;;  %4109 = vmatprep.subr.bf16.mxu0 %v4108_v32  ;;  %v1294_v30 = vld [vmem:[#allocation9 + $0x790] sm:$0xff]  ;;  %v4704_v32 = vpack.c.bf16 %v1299_v24, %v1295_v23  ;;  %v4130_v40 = vpack.c.bf16 %v1296_v36, %v1292_v29  ;;  %v1339_v23 = vld [vmem:[#allocation9 + $0x8f8] sm:$0xff]  ;;  %v958_v24 = vld [vmem:[%s6388_s16 + $0x2] sm:$0xff] }
 0x40e   : > { %4685 = vmatprep.subr.bf16.mxu1 %v4684_v35  ;;  %v1303_v35 = vld [vmem:[#allocation9 + $0x7d8] sm:$0xff]  ;;  %v4706_v42 = vpack.c.bf16 %v1298_v33, %v1294_v30  ;;  %v1332_v29 = vld [vmem:[#allocation9 + $0x8c0] sm:$0xff]  ;;  %v1334_v30 = vld [vmem:[#allocation9 + $0x8d0] sm:$0xff] }
 0x40f   : > { %v1336_v36 = vld [vmem:[#allocation9 + $0x8e0] sm:$0xff]  ;;  %v1338_v33 = vld [vmem:[#allocation9 + $0x8f0] sm:$0xff] }
 0x410   : > { %4111 = vmatpush1.bf16.msra.mxu0 %v4110_v56  ;;  %v1304_v56 = vld [vmem:[#allocation9 + $0x7e0] sm:$0xff] }
 0x411   : > { %4687 = vmatpush1.bf16.msra.mxu1 %v4686_v6  ;;  %4113 = vmatprep.subr.bf16.mxu0 %v4112_v44  ;;  %v1302_v6 = vld [vmem:[#allocation9 + $0x7d0] sm:$0xff]  ;;  %v4708_v44 = vpack.c.bf16 %v1307_v39, %v1303_v35  ;;  %v4134_v55 = vpack.c.bf16 %v1304_v56, %v1300_v25  ;;  %v1343_v35 = vld [vmem:[#allocation9 + $0x918] sm:$0xff]  ;;  %v1340_v25 = vld [vmem:[#allocation9 + $0x900] sm:$0xff] }
 0x412   : > { %4689 = vmatprep.subr.bf16.mxu1 %v4688_v49  ;;  %v1311_v49 = vld [vmem:[#allocation9 + $0x818] sm:$0xff]  ;;  %v4710_v52 = vpack.c.bf16 %v1306_v45, %v1302_v6  ;;  %v1344_v56 = vld [vmem:[#allocation9 + $0x920] sm:$0xff]  ;;  %v1342_v6 = vld [vmem:[#allocation9 + $0x910] sm:$0xff] }
 0x413   : > { %v1347_v39 = vld [vmem:[#allocation9 + $0x938] sm:$0xff]  ;;  %v1346_v45 = vld [vmem:[#allocation9 + $0x930] sm:$0xff] }
 0x414   : > { %4115 = vmatpush1.bf16.msra.mxu0 %v4114_v15  ;;  %v1312_v15 = vld [vmem:[#allocation9 + $0x820] sm:$0xff] }
 0x415   : > { %4691 = vmatpush1.bf16.msra.mxu1 %v4690_v5  ;;  %4117 = vmatprep.subr.bf16.mxu0 %v4116_v22  ;;  %v1310_v5 = vld [vmem:[#allocation9 + $0x810] sm:$0xff]  ;;  %v4712_v22 = vpack.c.bf16 %v1315_v50, %v1311_v49  ;;  %v4138_v58 = vpack.c.bf16 %v1312_v15, %v1308_v14  ;;  %v1351_v49 = vld [vmem:[#allocation9 + $0x958] sm:$0xff]  ;;  %v1348_v14 = vld [vmem:[#allocation9 + $0x940] sm:$0xff] }
 0x416   : > { %4693 = vmatprep.subr.bf16.mxu1 %v4692_v46  ;;  %v1319_v46 = vld [vmem:[#allocation9 + $0x858] sm:$0xff]  ;;  %v4714_v60 = vpack.c.bf16 %v1314_v12, %v1310_v5  ;;  %v1352_v15 = vld [vmem:[#allocation9 + $0x960] sm:$0xff]  ;;  %v1350_v5 = vld [vmem:[#allocation9 + $0x950] sm:$0xff] }
 0x417   : > { %v4716_v63 = vpack.c.bf16 %v1323_v57, %v1319_v46  ;;  %v1355_v50 = vld [vmem:[#allocation9 + $0x978] sm:$0xff]  ;;  %v1354_v12 = vld [vmem:[#allocation9 + $0x970] sm:$0xff] }
 0x418   : > { %4119 = vmatpush1.bf16.msra.mxu0 %v4118_v13  ;;  %v1316_v13 = vld [vmem:[#allocation9 + $0x840] sm:$0xff]  ;;  %v1359_v46 = vld [vmem:[#allocation9 + $0x998] sm:$0xff] }
 0x419   : > { %4695 = vmatpush1.bf16.msra.mxu1 %v4694_v38  ;;  %4121 = vmatprep.subr.bf16.mxu0 %v4120_v62  ;;  %v1320_v38 = vld [vmem:[#allocation9 + $0x860] sm:$0xff]  ;;  %v1318_v62 = vld [vmem:[#allocation9 + $0x850] sm:$0xff]  ;;  %v1363_v57 = vld [vmem:[#allocation9 + $0x9b8] sm:$0xff] }
 0x41a   : > { %4697 = vmatprep.subr.bf16.mxu1 %v4696_v59  ;;  %v1329_v59 = vld [vmem:[#allocation9 + $0x8a8] sm:$0xff]  ;;  %v4142_v4 = vpack.c.bf16 %v1320_v38, %v1316_v13  ;;  %v1360_v13 = vld [vmem:[#allocation9 + $0x9a0] sm:$0xff]  ;;  %v1358_v38 = vld [vmem:[#allocation9 + $0x990] sm:$0xff] }
 0x41c   : > { %4123 = vmatpush1.bf16.msra.mxu0 %v4122_v8  ;;  %v4718_v8 = vpack.c.bf16 %v1322_v17, %v1318_v62  ;;  %v4736_v62 = vpack.c.bf16 %v1363_v57, %v1359_v46  ;;  %v1365_v17 = vld [vmem:[#allocation9 + $0x9c8] sm:$0xff]  ;;  %v1396_v57 = vld [vmem:[#allocation9 + $0xac0] sm:$0xff] }
 0x41d   : > { %4699 = vmatpush1.bf16.msra.mxu1 %v4698_v9  ;;  %4125 = vmatprep.subr.bf16.mxu0 %v4124_v18  ;;  %v4144_v9 = vpack.c.bf16 %v1329_v59, %v1325_v0  ;;  %v1324_v18 = vld [vmem:[#allocation9 + $0x880] sm:$0xff]  ;;  %v1369_v0 = vld [vmem:[#allocation9 + $0x9e8] sm:$0xff]  ;;  %v1367_v59 = vld [vmem:[#allocation9 + $0x9d8] sm:$0xff] }
 0x41e   : > { %4701 = vmatprep.subr.bf16.mxu1 %v4700_v3  ;;  %v1330_v3 = vld [vmem:[#allocation9 + $0x8b0] sm:$0xff] }
 0x420   : > { %4127 = vmatpush1.bf16.msra.mxu0 %v4126_v27  ;;  %v4146_v27 = vpack.c.bf16 %v1328_v11, %v1324_v18  ;;  %v4740_v18 = vpack.c.bf16 %v1371_v7, %v1367_v59  ;;  %v1370_v11 = vld [vmem:[#allocation9 + $0x9f0] sm:$0xff]  ;;  %v1404_v7 = vld [vmem:[#allocation9 + $0xb00] sm:$0xff] }
 0x421   : > { %4703 = vmatpush1.bf16.msra.mxu1 %v4702_v31  ;;  %4129 = vmatprep.subr.bf16.mxu0 %v4128_v28  ;;  %v4722_v31 = vpack.c.bf16 %v1330_v3, %v1326_v16  ;;  %v4148_v28 = vpack.c.bf16 %v1337_v20, %v1333_v19  ;;  %v1373_v16 = vld [vmem:[#allocation9 + $0xa08] sm:$0xff]  ;;  %v1375_v3 = vld [vmem:[#allocation9 + $0xa18] sm:$0xff] }
 0x422   : > { %4705 = vmatprep.subr.bf16.mxu1 %v4704_v32  ;;  %v4724_v32 = vpack.c.bf16 %v1339_v23, %v1335_v1  ;;  %v1379_v19 = vld [vmem:[#allocation9 + $0xa38] sm:$0xff] }
 0x424   : > { %4131 = vmatpush1.bf16.msra.mxu0 %v4130_v40  ;;  %v4150_v40 = vpack.c.bf16 %v1336_v36, %v1332_v29  ;;  %v1378_v29 = vld [vmem:[#allocation9 + $0xa30] sm:$0xff]  ;;  %v1381_v36 = vld [vmem:[#allocation9 + $0xa48] sm:$0xff] }
 0x425   : > { %4707 = vmatpush1.bf16.msra.mxu1 %v4706_v42  ;;  %4133 = vmatprep.subr.bf16.mxu0 %v4132_v43  ;;  %v4726_v42 = vpack.c.bf16 %v1338_v33, %v1334_v30  ;;  %v4152_v43 = vpack.c.bf16 %v1345_v34, %v1341_v41  ;;  %v1385_v30 = vld [vmem:[#allocation9 + $0xa68] sm:$0xff]  ;;  %v1387_v33 = vld [vmem:[#allocation9 + $0xa78] sm:$0xff] }
 0x426   : > { %4709 = vmatprep.subr.bf16.mxu1 %v4708_v44  ;;  %v4728_v44 = vpack.c.bf16 %v1347_v39, %v1343_v35  ;;  %v4172_v35 = vpack.c.bf16 %v1385_v30, %v1381_v36  ;;  %v1380_v39 = vld [vmem:[#allocation9 + $0xa40] sm:$0xff] }
 0x428   : > { %4135 = vmatpush1.bf16.msra.mxu0 %v4134_v55  ;;  %v4154_v55 = vpack.c.bf16 %v1344_v56, %v1340_v25  ;;  %v1386_v25 = vld [vmem:[#allocation9 + $0xa70] sm:$0xff]  ;;  %v1389_v56 = vld [vmem:[#allocation9 + $0xa88] sm:$0xff] }
 0x429   : > { %4711 = vmatpush1.bf16.msra.mxu1 %v4710_v52  ;;  %4137 = vmatprep.subr.bf16.mxu0 %v4136_v53  ;;  %v4730_v52 = vpack.c.bf16 %v1346_v45, %v1342_v6  ;;  %v4156_v53 = vpack.c.bf16 %v1353_v48, %v1349_v47  ;;  %v1393_v6 = vld [vmem:[#allocation9 + $0xaa8] sm:$0xff]  ;;  %v1395_v45 = vld [vmem:[#allocation9 + $0xab8] sm:$0xff] }
 0x42a   : > { %4713 = vmatprep.subr.bf16.mxu1 %v4712_v22  ;;  %v4732_v22 = vpack.c.bf16 %v1355_v50, %v1351_v49  ;;  %v4176_v49 = vpack.c.bf16 %v1393_v6, %v1389_v56  ;;  %v1388_v50 = vld [vmem:[#allocation9 + $0xa80] sm:$0xff] }
 0x42b   : > { %2368 = vmatmul.mubr.f32.vlgmr.msra.gmra.mrb[0].mxu0 %v948_v51 }
 0x42c   : > { %4139 = vmatpush1.bf16.msra.mxu0 %v4138_v58  ;;  %3061 = vmatmul.mubr.f32.vlgmr.msra.gmra.mrb[0].mxu1 %v948_v51  ;;  %v4158_v51 = vpack.c.bf16 %v1352_v15, %v1348_v14  ;;  %v4734_v58 = vpack.c.bf16 %v1354_v12, %v1350_v5  ;;  %v1394_v14 = vld [vmem:[#allocation9 + $0xab0] sm:$0xff]  ;;  %v1397_v15 = vld [vmem:[#allocation9 + $0xac8] sm:$0xff]  ;;  %v1403_v12 = vld [vmem:[#allocation9 + $0xaf8] sm:$0xff] }
 0x42d   : > { %4715 = vmatpush1.bf16.msra.mxu1 %v4714_v60  ;;  %4141 = vmatprep.subr.bf16.mxu0 %v4140_v10  ;;  %v4160_v60 = vpack.c.bf16 %v1361_v54, %v1357_v37  ;;  %v1356_v10 = vld [vmem:[#allocation9 + $0x980] sm:$0xff]  ;;  %v1401_v5 = vld [vmem:[#allocation9 + $0xae8] sm:$0xff] }
 0x42e   : > { %4717 = vmatprep.subr.bf16.mxu1 %v4716_v63  ;;  %2373 = vmatprep.mubr.f32.mxu0 %v951_v21  ;;  %v1362_v63 = vld [vmem:[#allocation9 + $0x9b0] sm:$0xff]  ;;  %v4162_v2 = vpack.c.bf16 %v1360_v13, %v1356_v10  ;;  %v4180_v46 = vpack.c.bf16 %v1401_v5, %v1397_v15  ;;  %v1405_v13 = vld [vmem:[#allocation9 + $0xb08] sm:$0xff] }
 0x42f   : > { %3066 = vmatprep.mubr.f32.mxu1 %v951_v21  ;;  %2374 = vmatmul.mubr.f32.gmra.mrb[2].mxu0 %v949_v61  ;;  %v4738_v21 = vpack.c.bf16 %v1362_v63, %v1358_v38  ;;  %v1402_v10 = vld [vmem:[#allocation9 + $0xaf0] sm:$0xff]  ;;  %v1409_v38 = vld [vmem:[#allocation9 + $0xb28] sm:$0xff]  ;;  %v1411_v63 = vld [vmem:[#allocation9 + $0xb38] sm:$0xff] }
 0x430   : > { %4143 = vmatpush1.bf16.msra.mxu0 %v4142_v4  ;;  %3067 = vmatmul.mubr.f32.gmra.mrb[2].mxu1 %v949_v61  ;;  %v4164_v4 = vpack.c.bf16 %v1369_v0, %v1365_v17  ;;  %v1364_v61 = vld [vmem:[#allocation9 + $0x9c0] sm:$0xff]  ;;  %v4184_v59 = vpack.c.bf16 %v1409_v38, %v1405_v13 }
 0x431   : > { %4719 = vmatpush1.bf16.msra.mxu1 %v4718_v8  ;;  %4145 = vmatprep.subr.bf16.mxu0 %v4144_v9  ;;  %v1368_v8 = vld [vmem:[#allocation9 + $0x9e0] sm:$0xff]  ;;  %v1366_v9 = vld [vmem:[#allocation9 + $0x9d0] sm:$0xff] }
 0x432   : > { %4721 = vmatprep.subr.bf16.mxu1 %v4720_v26  ;;  %2444 = vmatprep.mubr.f32.mxu0 %v958_v24  ;;  %v1377_v26 = vld [vmem:[#allocation9 + $0xa28] sm:$0xff]  ;;  %v4166_v20 = vpack.c.bf16 %v1368_v8, %v1364_v61  ;;  %v4742_v1 = vpack.c.bf16 %v1370_v11, %v1366_v9  ;;  %v1410_v61 = vld [vmem:[#allocation9 + $0xb30] sm:$0xff]  ;;  %v1419_v11 = vld [vmem:[#allocation9 + $0xb78] sm:$0xff] }
 0x433   : > { %3137 = vmatprep.mubr.f32.mxu1 %v958_v24  ;;  %v4168_v23 = vpack.c.bf16 %v1377_v26, %v1373_v16  ;;  %v1372_v24 = vld [vmem:[#allocation9 + $0xa00] sm:$0xff]  ;;  %v1413_v8 = vld [vmem:[#allocation9 + $0xb48] sm:$0xff] }
 0x434   : > { %4147 = vmatpush1.bf16.msra.mxu0 %v4146_v27  ;;  %v1376_v27 = vld [vmem:[#allocation9 + $0xa20] sm:$0xff]  ;;  %v1417_v9 = vld [vmem:[#allocation9 + $0xb68] sm:$0xff] }
 0x435   : > { %4723 = vmatpush1.bf16.msra.mxu1 %v4722_v31  ;;  %4149 = vmatprep.subr.bf16.mxu0 %v4148_v28  ;;  %v1374_v31 = vld [vmem:[#allocation9 + $0xa10] sm:$0xff]  ;;  %v4744_v28 = vpack.c.bf16 %v1379_v19, %v1375_v3  ;;  %v4170_v41 = vpack.c.bf16 %v1376_v27, %v1372_v24  ;;  %v4188_v3 = vpack.c.bf16 %v1417_v9, %v1413_v8  ;;  %v1412_v19 = vld [vmem:[#allocation9 + $0xb40] sm:$0xff]  ;;  %v1421_v27 = vld [vmem:[#allocation9 + $0xb88] sm:$0xff] }
 0x436   : > { %4725 = vmatprep.subr.bf16.mxu1 %v4724_v32  ;;  %v1383_v32 = vld [vmem:[#allocation9 + $0xa58] sm:$0xff]  ;;  %v4746_v34 = vpack.c.bf16 %v1378_v29, %v1374_v31  ;;  %v1418_v24 = vld [vmem:[#allocation9 + $0xb70] sm:$0xff]  ;;  %v1425_v31 = vld [vmem:[#allocation9 + $0xba8] sm:$0xff] }
 0x437   : > { %v1427_v29 = vld [vmem:[#allocation9 + $0xbb8] sm:$0xff]  ;;  %v956_v13 = vld [vmem:[#allocation2 + $0x2] sm:$0xff] }
 0x438   : > { %4151 = vmatpush1.bf16.msra.mxu0 %v4150_v40  ;;  %v1384_v40 = vld [vmem:[#allocation9 + $0xa60] sm:$0xff]  ;;  %v1459_v8 = vld [vmem:[#allocation9 + $0xcb8] sm:$0xff] }
 0x439   : > { %4727 = vmatpush1.bf16.msra.mxu1 %v4726_v42  ;;  %4153 = vmatprep.subr.bf16.mxu0 %v4152_v43  ;;  %v1382_v42 = vld [vmem:[#allocation9 + $0xa50] sm:$0xff]  ;;  %v4748_v43 = vpack.c.bf16 %v1387_v33, %v1383_v32  ;;  %v4174_v47 = vpack.c.bf16 %v1384_v40, %v1380_v39  ;;  %v4192_v32 = vpack.c.bf16 %v1425_v31, %v1421_v27  ;;  %v1420_v33 = vld [vmem:[#allocation9 + $0xb80] sm:$0xff]  ;;  %v1429_v40 = vld [vmem:[#allocation9 + $0xbc8] sm:$0xff] }
 0x43a   : > { %4729 = vmatprep.subr.bf16.mxu1 %v4728_v44  ;;  %v1391_v44 = vld [vmem:[#allocation9 + $0xa98] sm:$0xff]  ;;  %v4750_v48 = vpack.c.bf16 %v1386_v25, %v1382_v42  ;;  %v1426_v39 = vld [vmem:[#allocation9 + $0xbb0] sm:$0xff]  ;;  %v1433_v42 = vld [vmem:[#allocation9 + $0xbe8] sm:$0xff] }
 0x43b   : > { %v1435_v25 = vld [vmem:[#allocation9 + $0xbf8] sm:$0xff]  ;;  %v1465_v27 = vld [vmem:[#allocation9 + $0xce8] sm:$0xff] }
 0x43c   : > { %4155 = vmatpush1.bf16.msra.mxu0 %v4154_v55  ;;  %v1392_v55 = vld [vmem:[#allocation9 + $0xaa0] sm:$0xff]  ;;  %v959_v9 = vld [vmem:[%s6388_s16 + $0x12] sm:$0xff] }
 0x43d   : > { %4731 = vmatpush1.bf16.msra.mxu1 %v4730_v52  ;;  %4157 = vmatprep.subr.bf16.mxu0 %v4156_v53  ;;  %v1390_v52 = vld [vmem:[#allocation9 + $0xa90] sm:$0xff]  ;;  %v4752_v53 = vpack.c.bf16 %v1395_v45, %v1391_v44  ;;  %v4178_v37 = vpack.c.bf16 %v1392_v55, %v1388_v50  ;;  %v4196_v44 = vpack.c.bf16 %v1433_v42, %v1429_v40  ;;  %v1428_v45 = vld [vmem:[#allocation9 + $0xbc0] sm:$0xff]  ;;  %v1437_v55 = vld [vmem:[#allocation9 + $0xc08] sm:$0xff] }
 0x43e   : > { %4733 = vmatprep.subr.bf16.mxu1 %v4732_v22  ;;  %v1399_v22 = vld [vmem:[#allocation9 + $0xad8] sm:$0xff]  ;;  %v4754_v54 = vpack.c.bf16 %v1394_v14, %v1390_v52  ;;  %v1434_v50 = vld [vmem:[#allocation9 + $0xbf0] sm:$0xff]  ;;  %v1441_v52 = vld [vmem:[#allocation9 + $0xc28] sm:$0xff] }
 0x43f   : > { %v1443_v14 = vld [vmem:[#allocation9 + $0xc38] sm:$0xff]  ;;  %v1469_v40 = vld [vmem:[#allocation9 + $0xd08] sm:$0xff] }
 0x440   : > { %4159 = vmatpush1.bf16.msra.mxu0 %v4158_v51  ;;  %v1400_v51 = vld [vmem:[#allocation9 + $0xae0] sm:$0xff]  ;;  %v1463_v31 = vld [vmem:[#allocation9 + $0xcd8] sm:$0xff]  ;;  %v1473_v42 = vld [vmem:[#allocation9 + $0xd28] sm:$0xff] }
 0x441   : > { %4735 = vmatpush1.bf16.msra.mxu1 %v4734_v58  ;;  %4161 = vmatprep.subr.bf16.mxu0 %v4160_v60  ;;  %v1398_v58 = vld [vmem:[#allocation9 + $0xad0] sm:$0xff]  ;;  %v4756_v60 = vpack.c.bf16 %v1403_v12, %v1399_v22  ;;  %v4182_v17 = vpack.c.bf16 %v1400_v51, %v1396_v57  ;;  %v4200_v22 = vpack.c.bf16 %v1441_v52, %v1437_v55  ;;  %v1436_v12 = vld [vmem:[#allocation9 + $0xc00] sm:$0xff]  ;;  %v1445_v51 = vld [vmem:[#allocation9 + $0xc48] sm:$0xff] }
 0x442   : > { %4737 = vmatprep.subr.bf16.mxu1 %v4736_v62  ;;  %v1407_v62 = vld [vmem:[#allocation9 + $0xb18] sm:$0xff]  ;;  %v4758_v0 = vpack.c.bf16 %v1402_v10, %v1398_v58  ;;  %v1442_v57 = vld [vmem:[#allocation9 + $0xc30] sm:$0xff]  ;;  %v1449_v58 = vld [vmem:[#allocation9 + $0xc68] sm:$0xff] }
 0x443   : > { %v1451_v10 = vld [vmem:[#allocation9 + $0xc78] sm:$0xff]  ;;  %v1477_v55 = vld [vmem:[#allocation9 + $0xd48] sm:$0xff] }
 0x444   : > { %4163 = vmatpush1.bf16.msra.mxu0 %v4162_v2  ;;  %v1408_v2 = vld [vmem:[#allocation9 + $0xb20] sm:$0xff]  ;;  %v1481_v52 = vld [vmem:[#allocation9 + $0xd68] sm:$0xff] }
 0x445   : > { %4739 = vmatpush1.bf16.msra.mxu1 %v4738_v21  ;;  %4165 = vmatprep.subr.bf16.mxu0 %v4164_v4  ;;  %v1406_v21 = vld [vmem:[#allocation9 + $0xb10] sm:$0xff]  ;;  %v4760_v4 = vpack.c.bf16 %v1411_v63, %v1407_v62  ;;  %v4186_v16 = vpack.c.bf16 %v1408_v2, %v1404_v7  ;;  %v4204_v63 = vpack.c.bf16 %v1449_v58, %v1445_v51  ;;  %v1485_v51 = vld [vmem:[#allocation9 + $0xd88] sm:$0xff] }
 0x446   : > { %4741 = vmatprep.subr.bf16.mxu1 %v4740_v18  ;;  %v1415_v18 = vld [vmem:[#allocation9 + $0xb58] sm:$0xff]  ;;  %v4762_v26 = vpack.c.bf16 %v1410_v61, %v1406_v21  ;;  %v1450_v2 = vld [vmem:[#allocation9 + $0xc70] sm:$0xff]  ;;  %v1453_v21 = vld [vmem:[#allocation9 + $0xc88] sm:$0xff] }
 0x447   : > { %v1455_v61 = vld [vmem:[#allocation9 + $0xc98] sm:$0xff]  ;;  %v1489_v58 = vld [vmem:[#allocation9 + $0xda8] sm:$0xff] }
 0x448   : > { %4167 = vmatpush1.bf16.msra.mxu0 %v4166_v20  ;;  %v1416_v20 = vld [vmem:[#allocation9 + $0xb60] sm:$0xff] }
 0x449   : > { %4743 = vmatpush1.bf16.msra.mxu1 %v4742_v1  ;;  %4169 = vmatprep.subr.bf16.mxu0 %v4168_v23  ;;  %v1414_v1 = vld [vmem:[#allocation9 + $0xb50] sm:$0xff]  ;;  %v4764_v23 = vpack.c.bf16 %v1419_v11, %v1415_v18  ;;  %v4190_v36 = vpack.c.bf16 %v1416_v20, %v1412_v19  ;;  %v1456_v19 = vld [vmem:[#allocation9 + $0xca0] sm:$0xff] }
 0x44a   : > { %4745 = vmatprep.subr.bf16.mxu1 %v4744_v28  ;;  %v1423_v28 = vld [vmem:[#allocation9 + $0xb98] sm:$0xff]  ;;  %v4766_v30 = vpack.c.bf16 %v1418_v24, %v1414_v1  ;;  %v1454_v20 = vld [vmem:[#allocation9 + $0xc90] sm:$0xff]  ;;  %v4784_v1 = vpack.c.bf16 %v1459_v8, %v1455_v61  ;;  %v1461_v24 = vld [vmem:[#allocation9 + $0xcc8] sm:$0xff] }
 0x44b   : > { %v957_v11 = vld [vmem:[#allocation2 + $0x12] sm:$0xff] }
 0x44c   : > { %4171 = vmatpush1.bf16.msra.mxu0 %v4170_v41  ;;  %v1424_v41 = vld [vmem:[#allocation9 + $0xba0] sm:$0xff]  ;;  %v1499_v61 = vld [vmem:[#allocation9 + $0xdf8] sm:$0xff] }
 0x44d   : > { %4747 = vmatpush1.bf16.msra.mxu1 %v4746_v34  ;;  %4173 = vmatprep.subr.bf16.mxu0 %v4172_v35  ;;  %v1422_v34 = vld [vmem:[#allocation9 + $0xb90] sm:$0xff]  ;;  %v4768_v35 = vpack.c.bf16 %v1427_v29, %v1423_v28  ;;  %v4194_v56 = vpack.c.bf16 %v1424_v41, %v1420_v33  ;;  %v1467_v28 = vld [vmem:[#allocation9 + $0xcf8] sm:$0xff]  ;;  %v1460_v33 = vld [vmem:[#allocation9 + $0xcc0] sm:$0xff] }
 0x44e   : > { %4749 = vmatprep.subr.bf16.mxu1 %v4748_v43  ;;  %v1431_v43 = vld [vmem:[#allocation9 + $0xbd8] sm:$0xff]  ;;  %v4770_v6 = vpack.c.bf16 %v1426_v39, %v1422_v34  ;;  %v3972_v29 = vld [vmem:[%s6388_s16 + $0x10] sm:$0xff]  ;;  %v1464_v41 = vld [vmem:[#allocation9 + $0xce0] sm:$0xff] }
 0x44f   : > { %v1462_v34 = vld [vmem:[#allocation9 + $0xcd0] sm:$0xff] }
 0x450   : > { %4175 = vmatpush1.bf16.msra.mxu0 %v4174_v47  ;;  %v1432_v47 = vld [vmem:[#allocation9 + $0xbe0] sm:$0xff]  ;;  %v1466_v39 = vld [vmem:[#allocation9 + $0xcf0] sm:$0xff] }
 0x451   : > { %4751 = vmatpush1.bf16.msra.mxu1 %v4750_v48  ;;  %4177 = vmatprep.subr.bf16.mxu0 %v4176_v49  ;;  %v1430_v48 = vld [vmem:[#allocation9 + $0xbd0] sm:$0xff]  ;;  %v4772_v49 = vpack.c.bf16 %v1435_v25, %v1431_v43  ;;  %v4198_v15 = vpack.c.bf16 %v1432_v47, %v1428_v45  ;;  %v1471_v43 = vld [vmem:[#allocation9 + $0xd18] sm:$0xff]  ;;  %v1468_v45 = vld [vmem:[#allocation9 + $0xd00] sm:$0xff] }
 0x452   : > { %4753 = vmatprep.subr.bf16.mxu1 %v4752_v53  ;;  %v1439_v53 = vld [vmem:[#allocation9 + $0xc18] sm:$0xff]  ;;  %v4774_v5 = vpack.c.bf16 %v1434_v50, %v1430_v48  ;;  %v1472_v47 = vld [vmem:[#allocation9 + $0xd20] sm:$0xff]  ;;  %v1470_v48 = vld [vmem:[#allocation9 + $0xd10] sm:$0xff] }
 0x453   : > { %v1475_v25 = vld [vmem:[#allocation9 + $0xd38] sm:$0xff]  ;;  %v1474_v50 = vld [vmem:[#allocation9 + $0xd30] sm:$0xff] }
 0x454   : > { %4179 = vmatpush1.bf16.msra.mxu0 %v4178_v37  ;;  %v1440_v37 = vld [vmem:[#allocation9 + $0xc20] sm:$0xff] }
 0x455   : > { %4755 = vmatpush1.bf16.msra.mxu1 %v4754_v54  ;;  %4181 = vmatprep.subr.bf16.mxu0 %v4180_v46  ;;  %v1438_v54 = vld [vmem:[#allocation9 + $0xc10] sm:$0xff]  ;;  %v4776_v46 = vpack.c.bf16 %v1443_v14, %v1439_v53  ;;  %v4202_v38 = vpack.c.bf16 %v1440_v37, %v1436_v12  ;;  %v1479_v53 = vld [vmem:[#allocation9 + $0xd58] sm:$0xff]  ;;  %v1476_v12 = vld [vmem:[#allocation9 + $0xd40] sm:$0xff] }
 0x456   : > { %4757 = vmatprep.subr.bf16.mxu1 %v4756_v60  ;;  %v1447_v60 = vld [vmem:[#allocation9 + $0xc58] sm:$0xff]  ;;  %v4778_v62 = vpack.c.bf16 %v1442_v57, %v1438_v54  ;;  %v1480_v37 = vld [vmem:[#allocation9 + $0xd60] sm:$0xff]  ;;  %v1478_v54 = vld [vmem:[#allocation9 + $0xd50] sm:$0xff] }
 0x457   : > { %v4780_v7 = vpack.c.bf16 %v1451_v10, %v1447_v60  ;;  %v1483_v14 = vld [vmem:[#allocation9 + $0xd78] sm:$0xff]  ;;  %v1482_v57 = vld [vmem:[#allocation9 + $0xd70] sm:$0xff] }
 0x458   : > { %4183 = vmatpush1.bf16.msra.mxu0 %v4182_v17  ;;  %v1444_v17 = vld [vmem:[#allocation9 + $0xc40] sm:$0xff]  ;;  %v1487_v60 = vld [vmem:[#allocation9 + $0xd98] sm:$0xff] }
 0x459   : > { %4759 = vmatpush1.bf16.msra.mxu1 %v4758_v0  ;;  %4185 = vmatprep.subr.bf16.mxu0 %v4184_v59  ;;  %v1448_v0 = vld [vmem:[#allocation9 + $0xc60] sm:$0xff]  ;;  %v1446_v59 = vld [vmem:[#allocation9 + $0xc50] sm:$0xff]  ;;  %v1491_v10 = vld [vmem:[#allocation9 + $0xdb8] sm:$0xff] }
 0x45a   : > { %4761 = vmatprep.subr.bf16.mxu1 %v4760_v4  ;;  %v1457_v4 = vld [vmem:[#allocation9 + $0xca8] sm:$0xff]  ;;  %v4206_v18 = vpack.c.bf16 %v1448_v0, %v1444_v17  ;;  %v1488_v17 = vld [vmem:[#allocation9 + $0xda0] sm:$0xff]  ;;  %v1486_v0 = vld [vmem:[#allocation9 + $0xd90] sm:$0xff] }
 0x45c   : > { %4187 = vmatpush1.bf16.msra.mxu0 %v4186_v16  ;;  %v4782_v16 = vpack.c.bf16 %v1450_v2, %v1446_v59  ;;  %v4800_v59 = vpack.c.bf16 %v1491_v10, %v1487_v60  ;;  %v1493_v2 = vld [vmem:[#allocation9 + $0xdc8] sm:$0xff]  ;;  %v1524_v10 = vld [vmem:[#allocation9 + $0xec0] sm:$0xff] }
 0x45d   : > { %4763 = vmatpush1.bf16.msra.mxu1 %v4762_v26  ;;  %4189 = vmatprep.subr.bf16.mxu0 %v4188_v3  ;;  %v4208_v26 = vpack.c.bf16 %v1457_v4, %v1453_v21  ;;  %v1452_v3 = vld [vmem:[#allocation9 + $0xc80] sm:$0xff]  ;;  %v1497_v21 = vld [vmem:[#allocation9 + $0xde8] sm:$0xff]  ;;  %v1495_v4 = vld [vmem:[#allocation9 + $0xdd8] sm:$0xff] }
 0x45e   : > { %4765 = vmatprep.subr.bf16.mxu1 %v4764_v23  ;;  %v1458_v23 = vld [vmem:[#allocation9 + $0xcb0] sm:$0xff] }
 0x460   : > { %4191 = vmatpush1.bf16.msra.mxu0 %v4190_v36  ;;  %v4210_v36 = vpack.c.bf16 %v1456_v19, %v1452_v3  ;;  %v4804_v3 = vpack.c.bf16 %v1499_v61, %v1495_v4  ;;  %v1498_v19 = vld [vmem:[#allocation9 + $0xdf0] sm:$0xff]  ;;  %v1532_v61 = vld [vmem:[#allocation9 + $0xf00] sm:$0xff] }
 0x461   : > { %4767 = vmatpush1.bf16.msra.mxu1 %v4766_v30  ;;  %4193 = vmatprep.subr.bf16.mxu0 %v4192_v32  ;;  %v4786_v30 = vpack.c.bf16 %v1458_v23, %v1454_v20  ;;  %v4212_v32 = vpack.c.bf16 %v1465_v27, %v1461_v24  ;;  %v1501_v20 = vld [vmem:[#allocation9 + $0xe08] sm:$0xff]  ;;  %v1503_v23 = vld [vmem:[#allocation9 + $0xe18] sm:$0xff] }
 0x462   : > { %4769 = vmatprep.subr.bf16.mxu1 %v4768_v35  ;;  %v4788_v35 = vpack.c.bf16 %v1467_v28, %v1463_v31  ;;  %v1507_v24 = vld [vmem:[#allocation9 + $0xe38] sm:$0xff] }
 0x464   : > { %4195 = vmatpush1.bf16.msra.mxu0 %v4194_v56  ;;  %v4214_v56 = vpack.c.bf16 %v1464_v41, %v1460_v33  ;;  %v1506_v33 = vld [vmem:[#allocation9 + $0xe30] sm:$0xff]  ;;  %v1509_v41 = vld [vmem:[#allocation9 + $0xe48] sm:$0xff] }
 0x465   : > { %4771 = vmatpush1.bf16.msra.mxu1 %v4770_v6  ;;  %4197 = vmatprep.subr.bf16.mxu0 %v4196_v44  ;;  %v4790_v6 = vpack.c.bf16 %v1466_v39, %v1462_v34  ;;  %v4216_v44 = vpack.c.bf16 %v1473_v42, %v1469_v40  ;;  %v1513_v34 = vld [vmem:[#allocation9 + $0xe68] sm:$0xff]  ;;  %v1515_v39 = vld [vmem:[#allocation9 + $0xe78] sm:$0xff] }
 0x466   : > { %4773 = vmatprep.subr.bf16.mxu1 %v4772_v49  ;;  %v4792_v49 = vpack.c.bf16 %v1475_v25, %v1471_v43  ;;  %v4236_v43 = vpack.c.bf16 %v1513_v34, %v1509_v41  ;;  %v1508_v25 = vld [vmem:[#allocation9 + $0xe40] sm:$0xff] }
 0x468   : > { %4199 = vmatpush1.bf16.msra.mxu0 %v4198_v15  ;;  %v4218_v15 = vpack.c.bf16 %v1472_v47, %v1468_v45  ;;  %v1514_v45 = vld [vmem:[#allocation9 + $0xe70] sm:$0xff]  ;;  %v1517_v47 = vld [vmem:[#allocation9 + $0xe88] sm:$0xff] }
 0x469   : > { %4775 = vmatpush1.bf16.msra.mxu1 %v4774_v5  ;;  %4201 = vmatprep.subr.bf16.mxu0 %v4200_v22  ;;  %v4794_v5 = vpack.c.bf16 %v1474_v50, %v1470_v48  ;;  %v4220_v22 = vpack.c.bf16 %v1481_v52, %v1477_v55  ;;  %v1521_v48 = vld [vmem:[#allocation9 + $0xea8] sm:$0xff]  ;;  %v1523_v50 = vld [vmem:[#allocation9 + $0xeb8] sm:$0xff] }
 0x46a   : > { %4777 = vmatprep.subr.bf16.mxu1 %v4776_v46  ;;  %v4796_v46 = vpack.c.bf16 %v1483_v14, %v1479_v53  ;;  %v4240_v53 = vpack.c.bf16 %v1521_v48, %v1517_v47  ;;  %v1516_v14 = vld [vmem:[#allocation9 + $0xe80] sm:$0xff] }
 0x46b   : > { %2445 = vmatmul.mubr.f32.vlgmr.msra.gmra.mrb[0].mxu0 %v956_v13 }
 0x46c   : > { %4203 = vmatpush1.bf16.msra.mxu0 %v4202_v38  ;;  %3138 = vmatmul.mubr.f32.vlgmr.msra.gmra.mrb[0].mxu1 %v956_v13  ;;  %v4222_v13 = vpack.c.bf16 %v1480_v37, %v1476_v12  ;;  %v4798_v38 = vpack.c.bf16 %v1482_v57, %v1478_v54  ;;  %v1522_v12 = vld [vmem:[#allocation9 + $0xeb0] sm:$0xff]  ;;  %v1525_v37 = vld [vmem:[#allocation9 + $0xec8] sm:$0xff]  ;;  %v1531_v57 = vld [vmem:[#allocation9 + $0xef8] sm:$0xff] }
 0x46d   : > { %4779 = vmatpush1.bf16.msra.mxu1 %v4778_v62  ;;  %4205 = vmatprep.subr.bf16.mxu0 %v4204_v63  ;;  %v4224_v62 = vpack.c.bf16 %v1489_v58, %v1485_v51  ;;  %v1484_v63 = vld [vmem:[#allocation9 + $0xd80] sm:$0xff]  ;;  %v1529_v54 = vld [vmem:[#allocation9 + $0xee8] sm:$0xff] }
 0x46e   : > { %4781 = vmatprep.subr.bf16.mxu1 %v4780_v7  ;;  %2450 = vmatprep.mubr.f32.mxu0 %v959_v9  ;;  %v1490_v7 = vld [vmem:[#allocation9 + $0xdb0] sm:$0xff]  ;;  %v4226_v8 = vpack.c.bf16 %v1488_v17, %v1484_v63  ;;  %v4244_v60 = vpack.c.bf16 %v1529_v54, %v1525_v37  ;;  %v1533_v17 = vld [vmem:[#allocation9 + $0xf08] sm:$0xff] }
 0x46f   : > { %3143 = vmatprep.mubr.f32.mxu1 %v959_v9  ;;  %2451 = vmatmul.mubr.f32.gmra.mrb[2].mxu0 %v957_v11  ;;  %v4802_v9 = vpack.c.bf16 %v1490_v7, %v1486_v0  ;;  %v1530_v63 = vld [vmem:[#allocation9 + $0xef0] sm:$0xff]  ;;  %v1537_v0 = vld [vmem:[#allocation9 + $0xf28] sm:$0xff]  ;;  %v1539_v7 = vld [vmem:[#allocation9 + $0xf38] sm:$0xff] }
 0x470   : > { %4207 = vmatpush1.bf16.msra.mxu0 %v4206_v18  ;;  %3144 = vmatmul.mubr.f32.gmra.mrb[2].mxu1 %v957_v11  ;;  %v4228_v18 = vpack.c.bf16 %v1497_v21, %v1493_v2  ;;  %v1492_v11 = vld [vmem:[#allocation9 + $0xdc0] sm:$0xff]  ;;  %v4248_v4 = vpack.c.bf16 %v1537_v0, %v1533_v17  ;;  %v965_v17 = vld [vmem:[#allocation2 + $0x10] sm:$0xff] }
 0x471   : > { %4783 = vmatpush1.bf16.msra.mxu1 %v4782_v16  ;;  %4209 = vmatprep.subr.bf16.mxu0 %v4208_v26  ;;  %v1496_v16 = vld [vmem:[#allocation9 + $0xde0] sm:$0xff]  ;;  %v1494_v26 = vld [vmem:[#allocation9 + $0xdd0] sm:$0xff] }
 0x472   : > { %4785 = vmatprep.subr.bf16.mxu1 %v4784_v1  ;;  %2521 = vmatprep.mubr.f32.mxu0 %v3972_v29  ;;  %v1505_v1 = vld [vmem:[#allocation9 + $0xe28] sm:$0xff]  ;;  %v4230_v27 = vpack.c.bf16 %v1496_v16, %v1492_v11  ;;  %v4806_v31 = vpack.c.bf16 %v1498_v19, %v1494_v26  ;;  %v1538_v11 = vld [vmem:[#allocation9 + $0xf30] sm:$0xff]  ;;  %v1547_v19 = vld [vmem:[#allocation9 + $0xf78] sm:$0xff] }
 0x473   : > { %3214 = vmatprep.mubr.f32.mxu1 %v3972_v29  ;;  %v4232_v28 = vpack.c.bf16 %v1505_v1, %v1501_v20  ;;  %v1500_v29 = vld [vmem:[#allocation9 + $0xe00] sm:$0xff]  ;;  %v1541_v16 = vld [vmem:[#allocation9 + $0xf48] sm:$0xff] }
 0x474   : > { %4211 = vmatpush1.bf16.msra.mxu0 %v4210_v36  ;;  %v1504_v36 = vld [vmem:[#allocation9 + $0xe20] sm:$0xff]  ;;  %v1545_v26 = vld [vmem:[#allocation9 + $0xf68] sm:$0xff] }
 0x475   : > { %4787 = vmatpush1.bf16.msra.mxu1 %v4786_v30  ;;  %4213 = vmatprep.subr.bf16.mxu0 %v4212_v32  ;;  %v1502_v30 = vld [vmem:[#allocation9 + $0xe10] sm:$0xff]  ;;  %v4808_v32 = vpack.c.bf16 %v1507_v24, %v1503_v23  ;;  %v4234_v40 = vpack.c.bf16 %v1504_v36, %v1500_v29  ;;  %v4252_v23 = vpack.c.bf16 %v1545_v26, %v1541_v16  ;;  %v1540_v24 = vld [vmem:[#allocation9 + $0xf40] sm:$0xff]  ;;  %v1549_v36 = vld [vmem:[#allocation9 + $0xf88] sm:$0xff] }
 0x476   : > { %4789 = vmatprep.subr.bf16.mxu1 %v4788_v35  ;;  %v1511_v35 = vld [vmem:[#allocation9 + $0xe58] sm:$0xff]  ;;  %v4810_v42 = vpack.c.bf16 %v1506_v33, %v1502_v30  ;;  %v1546_v29 = vld [vmem:[#allocation9 + $0xf70] sm:$0xff]  ;;  %v1553_v30 = vld [vmem:[#allocation9 + $0xfa8] sm:$0xff] }
 0x477   : > { %v1555_v33 = vld [vmem:[#allocation9 + $0xfb8] sm:$0xff]  ;;  %v3973_v26 = vld [vmem:[%s6388_s16 + $0x20] sm:$0xff] }
 0x478   : > { %4215 = vmatpush1.bf16.msra.mxu0 %v4214_v56  ;;  %v1512_v56 = vld [vmem:[#allocation9 + $0xe60] sm:$0xff]  ;;  %v1587_v16 = vld [vmem:[#allocation9 + $0x10b8] sm:$0xff] }
 0x479   : > { %4791 = vmatpush1.bf16.msra.mxu1 %v4790_v6  ;;  %4217 = vmatprep.subr.bf16.mxu0 %v4216_v44  ;;  %v1510_v6 = vld [vmem:[#allocation9 + $0xe50] sm:$0xff]  ;;  %v4812_v44 = vpack.c.bf16 %v1515_v39, %v1511_v35  ;;  %v4238_v55 = vpack.c.bf16 %v1512_v56, %v1508_v25  ;;  %v4256_v35 = vpack.c.bf16 %v1553_v30, %v1549_v36  ;;  %v1548_v39 = vld [vmem:[#allocation9 + $0xf80] sm:$0xff]  ;;  %v1557_v56 = vld [vmem:[#allocation9 + $0xfc8] sm:$0xff] }
 0x47a   : > { %4793 = vmatprep.subr.bf16.mxu1 %v4792_v49  ;;  %v1519_v49 = vld [vmem:[#allocation9 + $0xe98] sm:$0xff]  ;;  %v4814_v52 = vpack.c.bf16 %v1514_v45, %v1510_v6  ;;  %v1554_v25 = vld [vmem:[#allocation9 + $0xfb0] sm:$0xff]  ;;  %v1561_v6 = vld [vmem:[#allocation9 + $0xfe8] sm:$0xff] }
 0x47b   : > { %v1563_v45 = vld [vmem:[#allocation9 + $0xff8] sm:$0xff]  ;;  %v1593_v36 = vld [vmem:[#allocation9 + $0x10e8] sm:$0xff] }
 0x47c   : > { %4219 = vmatpush1.bf16.msra.mxu0 %v4218_v15  ;;  %v1520_v15 = vld [vmem:[#allocation9 + $0xea0] sm:$0xff]  ;;  %v1591_v30 = vld [vmem:[#allocation9 + $0x10d8] sm:$0xff] }
 0x47d   : > { %4795 = vmatpush1.bf16.msra.mxu1 %v4794_v5  ;;  %4221 = vmatprep.subr.bf16.mxu0 %v4220_v22  ;;  %v1518_v5 = vld [vmem:[#allocation9 + $0xe90] sm:$0xff]  ;;  %v4816_v22 = vpack.c.bf16 %v1523_v50, %v1519_v49  ;;  %v4242_v51 = vpack.c.bf16 %v1520_v15, %v1516_v14  ;;  %v4260_v49 = vpack.c.bf16 %v1561_v6, %v1557_v56  ;;  %v1556_v50 = vld [vmem:[#allocation9 + $0xfc0] sm:$0xff]  ;;  %v1565_v15 = vld [vmem:[#allocation9 + $0x1008] sm:$0xff] }
 0x47e   : > { %4797 = vmatprep.subr.bf16.mxu1 %v4796_v46  ;;  %v1527_v46 = vld [vmem:[#allocation9 + $0xed8] sm:$0xff]  ;;  %v4818_v58 = vpack.c.bf16 %v1522_v12, %v1518_v5  ;;  %v1562_v14 = vld [vmem:[#allocation9 + $0xff0] sm:$0xff]  ;;  %v1569_v5 = vld [vmem:[#allocation9 + $0x1028] sm:$0xff] }
 0x47f   : > { %v1571_v12 = vld [vmem:[#allocation9 + $0x1038] sm:$0xff]  ;;  %v1597_v56 = vld [vmem:[#allocation9 + $0x1108] sm:$0xff] }
 0x480   : > { %4223 = vmatpush1.bf16.msra.mxu0 %v4222_v13  ;;  %v1528_v13 = vld [vmem:[#allocation9 + $0xee0] sm:$0xff]  ;;  %v1601_v6 = vld [vmem:[#allocation9 + $0x1128] sm:$0xff] }
 0x481   : > { %4799 = vmatpush1.bf16.msra.mxu1 %v4798_v38  ;;  %4225 = vmatprep.subr.bf16.mxu0 %v4224_v62  ;;  %v1526_v38 = vld [vmem:[#allocation9 + $0xed0] sm:$0xff]  ;;  %v4820_v62 = vpack.c.bf16 %v1531_v57, %v1527_v46  ;;  %v4246_v2 = vpack.c.bf16 %v1528_v13, %v1524_v10  ;;  %v4264_v46 = vpack.c.bf16 %v1569_v5, %v1565_v15  ;;  %v1564_v57 = vld [vmem:[#allocation9 + $0x1000] sm:$0xff]  ;;  %v1573_v13 = vld [vmem:[#allocation9 + $0x1048] sm:$0xff] }
 0x482   : > { %4801 = vmatprep.subr.bf16.mxu1 %v4800_v59  ;;  %v1535_v59 = vld [vmem:[#allocation9 + $0xf18] sm:$0xff]  ;;  %v4822_v21 = vpack.c.bf16 %v1530_v63, %v1526_v38  ;;  %v1570_v10 = vld [vmem:[#allocation9 + $0x1030] sm:$0xff]  ;;  %v1577_v38 = vld [vmem:[#allocation9 + $0x1068] sm:$0xff] }
 0x483   : > { %v1579_v63 = vld [vmem:[#allocation9 + $0x1078] sm:$0xff]  ;;  %v1605_v15 = vld [vmem:[#allocation9 + $0x1148] sm:$0xff] }
 0x484   : > { %4227 = vmatpush1.bf16.msra.mxu0 %v4226_v8  ;;  %v1536_v8 = vld [vmem:[#allocation9 + $0xf20] sm:$0xff]  ;;  %v1609_v5 = vld [vmem:[#allocation9 + $0x1168] sm:$0xff] }
 0x485   : > { %4803 = vmatpush1.bf16.msra.mxu1 %v4802_v9  ;;  %4229 = vmatprep.subr.bf16.mxu0 %v4228_v18  ;;  %v1534_v9 = vld [vmem:[#allocation9 + $0xf10] sm:$0xff]  ;;  %v4824_v18 = vpack.c.bf16 %v1539_v7, %v1535_v59  ;;  %v4250_v20 = vpack.c.bf16 %v1536_v8, %v1532_v61  ;;  %v4268_v7 = vpack.c.bf16 %v1577_v38, %v1573_v13  ;;  %v1613_v13 = vld [vmem:[#allocation9 + $0x1188] sm:$0xff] }
 0x486   : > { %4805 = vmatprep.subr.bf16.mxu1 %v4804_v3  ;;  %v1543_v3 = vld [vmem:[#allocation9 + $0xf58] sm:$0xff]  ;;  %v4826_v1 = vpack.c.bf16 %v1538_v11, %v1534_v9  ;;  %v1578_v8 = vld [vmem:[#allocation9 + $0x1070] sm:$0xff]  ;;  %v1581_v9 = vld [vmem:[#allocation9 + $0x1088] sm:$0xff] }
 0x487   : > { %v1583_v11 = vld [vmem:[#allocation9 + $0x1098] sm:$0xff]  ;;  %v1617_v38 = vld [vmem:[#allocation9 + $0x11a8] sm:$0xff] }
 0x488   : > { %4231 = vmatpush1.bf16.msra.mxu0 %v4230_v27  ;;  %v1544_v27 = vld [vmem:[#allocation9 + $0xf60] sm:$0xff] }
 0x489   : > { %4807 = vmatpush1.bf16.msra.mxu1 %v4806_v31  ;;  %4233 = vmatprep.subr.bf16.mxu0 %v4232_v28  ;;  %v1542_v31 = vld [vmem:[#allocation9 + $0xf50] sm:$0xff]  ;;  %v4828_v28 = vpack.c.bf16 %v1547_v19, %v1543_v3  ;;  %v4254_v41 = vpack.c.bf16 %v1544_v27, %v1540_v24  ;;  %v966_v19 = vld [vmem:[#allocation2 + $0x20] sm:$0xff] }
 0x48a   : > { %4809 = vmatprep.subr.bf16.mxu1 %v4808_v32  ;;  %v1551_v32 = vld [vmem:[#allocation9 + $0xf98] sm:$0xff]  ;;  %v4830_v34 = vpack.c.bf16 %v1546_v29, %v1542_v31  ;;  %v1584_v24 = vld [vmem:[#allocation9 + $0x10a0] sm:$0xff]  ;;  %v1582_v27 = vld [vmem:[#allocation9 + $0x1090] sm:$0xff]  ;;  %v4848_v31 = vpack.c.bf16 %v1587_v16, %v1583_v11 }
 0x48b   : > { %v1589_v29 = vld [vmem:[#allocation9 + $0x10c8] sm:$0xff]  ;;  %v1627_v11 = vld [vmem:[#allocation9 + $0x11f8] sm:$0xff] }
 0x48c   : > { %4235 = vmatpush1.bf16.msra.mxu0 %v4234_v40  ;;  %v1552_v40 = vld [vmem:[#allocation9 + $0xfa0] sm:$0xff] }
 0x48d   : > { %4811 = vmatpush1.bf16.msra.mxu1 %v4810_v42  ;;  %4237 = vmatprep.subr.bf16.mxu0 %v4236_v43  ;;  %v1550_v42 = vld [vmem:[#allocation9 + $0xf90] sm:$0xff]  ;;  %v4832_v43 = vpack.c.bf16 %v1555_v33, %v1551_v32  ;;  %v4258_v47 = vpack.c.bf16 %v1552_v40, %v1548_v39  ;;  %v1595_v32 = vld [vmem:[#allocation9 + $0x10f8] sm:$0xff]  ;;  %v1588_v39 = vld [vmem:[#allocation9 + $0x10c0] sm:$0xff] }
 0x48e   : > { %4813 = vmatprep.subr.bf16.mxu1 %v4812_v44  ;;  %v1559_v44 = vld [vmem:[#allocation9 + $0xfd8] sm:$0xff]  ;;  %v4834_v48 = vpack.c.bf16 %v1554_v25, %v1550_v42  ;;  %v1592_v40 = vld [vmem:[#allocation9 + $0x10e0] sm:$0xff]  ;;  %v1590_v42 = vld [vmem:[#allocation9 + $0x10d0] sm:$0xff] }
 0x48f   : > { %v3974_v33 = vld [vmem:[%s6388_s16 + $0x11] sm:$0xff] }
 0x490   : > { %4239 = vmatpush1.bf16.msra.mxu0 %v4238_v55  ;;  %v1560_v55 = vld [vmem:[#allocation9 + $0xfe0] sm:$0xff]  ;;  %v1594_v25 = vld [vmem:[#allocation9 + $0x10f0] sm:$0xff] }
 0x491   : > { %4815 = vmatpush1.bf16.msra.mxu1 %v4814_v52  ;;  %4241 = vmatprep.subr.bf16.mxu0 %v4240_v53  ;;  %v1558_v52 = vld [vmem:[#allocation9 + $0xfd0] sm:$0xff]  ;;  %v4836_v53 = vpack.c.bf16 %v1563_v45, %v1559_v44  ;;  %v4262_v37 = vpack.c.bf16 %v1560_v55, %v1556_v50  ;;  %v1599_v44 = vld [vmem:[#allocation9 + $0x1118] sm:$0xff]  ;;  %v1596_v50 = vld [vmem:[#allocation9 + $0x1100] sm:$0xff] }
 0x492   : > { %4817 = vmatprep.subr.bf16.mxu1 %v4816_v22  ;;  %v1567_v22 = vld [vmem:[#allocation9 + $0x1018] sm:$0xff]  ;;  %v4838_v54 = vpack.c.bf16 %v1562_v14, %v1558_v52  ;;  %v1600_v55 = vld [vmem:[#allocation9 + $0x1120] sm:$0xff]  ;;  %v1598_v52 = vld [vmem:[#allocation9 + $0x1110] sm:$0xff] }
 0x493   : > { %v1603_v45 = vld [vmem:[#allocation9 + $0x1138] sm:$0xff]  ;;  %v1602_v14 = vld [vmem:[#allocation9 + $0x1130] sm:$0xff] }
 0x494   : > { %4243 = vmatpush1.bf16.msra.mxu0 %v4242_v51  ;;  %v1568_v51 = vld [vmem:[#allocation9 + $0x1020] sm:$0xff] }
 0x495   : > { %4819 = vmatpush1.bf16.msra.mxu1 %v4818_v58  ;;  %4245 = vmatprep.subr.bf16.mxu0 %v4244_v60  ;;  %v1566_v58 = vld [vmem:[#allocation9 + $0x1010] sm:$0xff]  ;;  %v4840_v60 = vpack.c.bf16 %v1571_v12, %v1567_v22  ;;  %v4266_v0 = vpack.c.bf16 %v1568_v51, %v1564_v57  ;;  %v1607_v22 = vld [vmem:[#allocation9 + $0x1158] sm:$0xff]  ;;  %v1604_v57 = vld [vmem:[#allocation9 + $0x1140] sm:$0xff] }
 0x496   : > { %4821 = vmatprep.subr.bf16.mxu1 %v4820_v62  ;;  %v1575_v62 = vld [vmem:[#allocation9 + $0x1058] sm:$0xff]  ;;  %v4842_v59 = vpack.c.bf16 %v1570_v10, %v1566_v58  ;;  %v1608_v51 = vld [vmem:[#allocation9 + $0x1160] sm:$0xff]  ;;  %v1606_v58 = vld [vmem:[#allocation9 + $0x1150] sm:$0xff] }
 0x497   : > { %v4844_v61 = vpack.c.bf16 %v1579_v63, %v1575_v62  ;;  %v1611_v12 = vld [vmem:[#allocation9 + $0x1178] sm:$0xff]  ;;  %v1610_v10 = vld [vmem:[#allocation9 + $0x1170] sm:$0xff] }
 0x498   : > { %4247 = vmatpush1.bf16.msra.mxu0 %v4246_v2  ;;  %v1572_v2 = vld [vmem:[#allocation9 + $0x1040] sm:$0xff]  ;;  %v1615_v62 = vld [vmem:[#allocation9 + $0x1198] sm:$0xff] }
 0x499   : > { %4823 = vmatpush1.bf16.msra.mxu1 %v4822_v21  ;;  %4249 = vmatprep.subr.bf16.mxu0 %v4248_v4  ;;  %v1576_v21 = vld [vmem:[#allocation9 + $0x1060] sm:$0xff]  ;;  %v1574_v4 = vld [vmem:[#allocation9 + $0x1050] sm:$0xff]  ;;  %v1619_v63 = vld [vmem:[#allocation9 + $0x11b8] sm:$0xff] }
 0x49a   : > { %4825 = vmatprep.subr.bf16.mxu1 %v4824_v18  ;;  %v1585_v18 = vld [vmem:[#allocation9 + $0x10a8] sm:$0xff]  ;;  %v4270_v3 = vpack.c.bf16 %v1576_v21, %v1572_v2  ;;  %v1616_v2 = vld [vmem:[#allocation9 + $0x11a0] sm:$0xff]  ;;  %v1614_v21 = vld [vmem:[#allocation9 + $0x1190] sm:$0xff] }
 0x49c   : > { %4251 = vmatpush1.bf16.msra.mxu0 %v4250_v20  ;;  %v4846_v20 = vpack.c.bf16 %v1578_v8, %v1574_v4  ;;  %v4864_v4 = vpack.c.bf16 %v1619_v63, %v1615_v62  ;;  %v1621_v8 = vld [vmem:[#allocation9 + $0x11c8] sm:$0xff]  ;;  %v1652_v63 = vld [vmem:[#allocation9 + $0x12c0] sm:$0xff] }
 0x49d   : > { %4827 = vmatpush1.bf16.msra.mxu1 %v4826_v1  ;;  %4253 = vmatprep.subr.bf16.mxu0 %v4252_v23  ;;  %v4272_v1 = vpack.c.bf16 %v1585_v18, %v1581_v9  ;;  %v1580_v23 = vld [vmem:[#allocation9 + $0x1080] sm:$0xff]  ;;  %v1625_v9 = vld [vmem:[#allocation9 + $0x11e8] sm:$0xff]  ;;  %v1623_v18 = vld [vmem:[#allocation9 + $0x11d8] sm:$0xff] }
 0x49e   : > { %4829 = vmatprep.subr.bf16.mxu1 %v4828_v28  ;;  %v1586_v28 = vld [vmem:[#allocation9 + $0x10b0] sm:$0xff] }
 0x4a0   : > { %4255 = vmatpush1.bf16.msra.mxu0 %v4254_v41  ;;  %v4274_v41 = vpack.c.bf16 %v1584_v24, %v1580_v23  ;;  %v4868_v23 = vpack.c.bf16 %v1627_v11, %v1623_v18  ;;  %v1626_v24 = vld [vmem:[#allocation9 + $0x11f0] sm:$0xff]  ;;  %v1660_v11 = vld [vmem:[#allocation9 + $0x1300] sm:$0xff] }
 0x4a1   : > { %4831 = vmatpush1.bf16.msra.mxu1 %v4830_v34  ;;  %4257 = vmatprep.subr.bf16.mxu0 %v4256_v35  ;;  %v4850_v34 = vpack.c.bf16 %v1586_v28, %v1582_v27  ;;  %v4276_v35 = vpack.c.bf16 %v1593_v36, %v1589_v29  ;;  %v1629_v27 = vld [vmem:[#allocation9 + $0x1208] sm:$0xff]  ;;  %v1631_v28 = vld [vmem:[#allocation9 + $0x1218] sm:$0xff] }
 0x4a2   : > { %4833 = vmatprep.subr.bf16.mxu1 %v4832_v43  ;;  %v4852_v43 = vpack.c.bf16 %v1595_v32, %v1591_v30  ;;  %v1635_v29 = vld [vmem:[#allocation9 + $0x1238] sm:$0xff] }
 0x4a4   : > { %4259 = vmatpush1.bf16.msra.mxu0 %v4258_v47  ;;  %v4278_v47 = vpack.c.bf16 %v1592_v40, %v1588_v39  ;;  %v1634_v39 = vld [vmem:[#allocation9 + $0x1230] sm:$0xff]  ;;  %v1637_v40 = vld [vmem:[#allocation9 + $0x1248] sm:$0xff] }
 0x4a5   : > { %4835 = vmatpush1.bf16.msra.mxu1 %v4834_v48  ;;  %4261 = vmatprep.subr.bf16.mxu0 %v4260_v49  ;;  %v4854_v48 = vpack.c.bf16 %v1594_v25, %v1590_v42  ;;  %v4280_v49 = vpack.c.bf16 %v1601_v6, %v1597_v56  ;;  %v1641_v42 = vld [vmem:[#allocation9 + $0x1268] sm:$0xff]  ;;  %v1643_v25 = vld [vmem:[#allocation9 + $0x1278] sm:$0xff] }
 0x4a6   : > { %4837 = vmatprep.subr.bf16.mxu1 %v4836_v53  ;;  %v4856_v53 = vpack.c.bf16 %v1603_v45, %v1599_v44  ;;  %v4300_v44 = vpack.c.bf16 %v1641_v42, %v1637_v40  ;;  %v1636_v45 = vld [vmem:[#allocation9 + $0x1240] sm:$0xff] }
 0x4a8   : > { %4263 = vmatpush1.bf16.msra.mxu0 %v4262_v37  ;;  %v4282_v37 = vpack.c.bf16 %v1600_v55, %v1596_v50  ;;  %v1642_v50 = vld [vmem:[#allocation9 + $0x1270] sm:$0xff]  ;;  %v1645_v55 = vld [vmem:[#allocation9 + $0x1288] sm:$0xff] }
 0x4a9   : > { %4839 = vmatpush1.bf16.msra.mxu1 %v4838_v54  ;;  %4265 = vmatprep.subr.bf16.mxu0 %v4264_v46  ;;  %v4858_v54 = vpack.c.bf16 %v1602_v14, %v1598_v52  ;;  %v4284_v46 = vpack.c.bf16 %v1609_v5, %v1605_v15  ;;  %v1649_v52 = vld [vmem:[#allocation9 + $0x12a8] sm:$0xff]  ;;  %v1651_v14 = vld [vmem:[#allocation9 + $0x12b8] sm:$0xff] }
 0x4aa   : > { %4841 = vmatprep.subr.bf16.mxu1 %v4840_v60  ;;  %v4860_v60 = vpack.c.bf16 %v1611_v12, %v1607_v22  ;;  %v4304_v22 = vpack.c.bf16 %v1649_v52, %v1645_v55  ;;  %v1644_v12 = vld [vmem:[#allocation9 + $0x1280] sm:$0xff] }
 0x4ab   : > { %2522 = vmatmul.mubr.f32.vlgmr.msra.gmra.mrb[0].mxu0 %v965_v17 }
 0x4ac   : > { %4267 = vmatpush1.bf16.msra.mxu0 %v4266_v0  ;;  %3215 = vmatmul.mubr.f32.vlgmr.msra.gmra.mrb[0].mxu1 %v965_v17  ;;  %v4286_v17 = vpack.c.bf16 %v1608_v51, %v1604_v57  ;;  %v4862_v0 = vpack.c.bf16 %v1610_v10, %v1606_v58  ;;  %v1650_v57 = vld [vmem:[#allocation9 + $0x12b0] sm:$0xff]  ;;  %v1653_v51 = vld [vmem:[#allocation9 + $0x12c8] sm:$0xff]  ;;  %v1659_v10 = vld [vmem:[#allocation9 + $0x12f8] sm:$0xff] }
 0x4ad   : > { %4843 = vmatpush1.bf16.msra.mxu1 %v4842_v59  ;;  %4269 = vmatprep.subr.bf16.mxu0 %v4268_v7  ;;  %v4288_v59 = vpack.c.bf16 %v1617_v38, %v1613_v13  ;;  %v1612_v7 = vld [vmem:[#allocation9 + $0x1180] sm:$0xff]  ;;  %v1657_v58 = vld [vmem:[#allocation9 + $0x12e8] sm:$0xff] }
 0x4ae   : > { %4845 = vmatprep.subr.bf16.mxu1 %v4844_v61  ;;  %2527 = vmatprep.mubr.f32.mxu0 %v3973_v26  ;;  %v1618_v61 = vld [vmem:[#allocation9 + $0x11b0] sm:$0xff]  ;;  %v4290_v16 = vpack.c.bf16 %v1616_v2, %v1612_v7  ;;  %v4308_v62 = vpack.c.bf16 %v1657_v58, %v1653_v51  ;;  %v1661_v2 = vld [vmem:[#allocation9 + $0x1308] sm:$0xff] }
 0x4af   : > { %3220 = vmatprep.mubr.f32.mxu1 %v3973_v26  ;;  %2528 = vmatmul.mubr.f32.gmra.mrb[2].mxu0 %v966_v19  ;;  %v4866_v26 = vpack.c.bf16 %v1618_v61, %v1614_v21  ;;  %v1658_v7 = vld [vmem:[#allocation9 + $0x12f0] sm:$0xff]  ;;  %v1665_v21 = vld [vmem:[#allocation9 + $0x1328] sm:$0xff]  ;;  %v1667_v61 = vld [vmem:[#allocation9 + $0x1338] sm:$0xff] }
 0x4b0   : > { %4271 = vmatpush1.bf16.msra.mxu0 %v4270_v3  ;;  %3221 = vmatmul.mubr.f32.gmra.mrb[2].mxu1 %v966_v19  ;;  %v4292_v3 = vpack.c.bf16 %v1625_v9, %v1621_v8  ;;  %v1620_v19 = vld [vmem:[#allocation9 + $0x11c0] sm:$0xff]  ;;  %v4312_v18 = vpack.c.bf16 %v1665_v21, %v1661_v2  ;;  %v974_v2 = vld [vmem:[#allocation2 + $0x11] sm:$0xff] }
 0x4b1   : > { %4847 = vmatpush1.bf16.msra.mxu1 %v4846_v20  ;;  %4273 = vmatprep.subr.bf16.mxu0 %v4272_v1  ;;  %v1624_v20 = vld [vmem:[#allocation9 + $0x11e0] sm:$0xff]  ;;  %v1622_v1 = vld [vmem:[#allocation9 + $0x11d0] sm:$0xff] }
 0x4b2   : > { %4849 = vmatprep.subr.bf16.mxu1 %v4848_v31  ;;  %2598 = vmatprep.mubr.f32.mxu0 %v3974_v33  ;;  %v1633_v31 = vld [vmem:[#allocation9 + $0x1228] sm:$0xff]  ;;  %v4294_v36 = vpack.c.bf16 %v1624_v20, %v1620_v19  ;;  %v4870_v30 = vpack.c.bf16 %v1626_v24, %v1622_v1  ;;  %v1666_v19 = vld [vmem:[#allocation9 + $0x1330] sm:$0xff]  ;;  %v1675_v24 = vld [vmem:[#allocation9 + $0x1378] sm:$0xff] }
 0x4b3   : > { %3291 = vmatprep.mubr.f32.mxu1 %v3974_v33  ;;  %v4296_v32 = vpack.c.bf16 %v1633_v31, %v1629_v27  ;;  %v1628_v33 = vld [vmem:[#allocation9 + $0x1200] sm:$0xff]  ;;  %v1669_v20 = vld [vmem:[#allocation9 + $0x1348] sm:$0xff] }
 0x4b4   : > { %4275 = vmatpush1.bf16.msra.mxu0 %v4274_v41  ;;  %v1632_v41 = vld [vmem:[#allocation9 + $0x1220] sm:$0xff]  ;;  %v1673_v1 = vld [vmem:[#allocation9 + $0x1368] sm:$0xff] }
 0x4b5   : > { %4851 = vmatpush1.bf16.msra.mxu1 %v4850_v34  ;;  %4277 = vmatprep.subr.bf16.mxu0 %v4276_v35  ;;  %v1630_v34 = vld [vmem:[#allocation9 + $0x1210] sm:$0xff]  ;;  %v4872_v35 = vpack.c.bf16 %v1635_v29, %v1631_v28  ;;  %v4298_v56 = vpack.c.bf16 %v1632_v41, %v1628_v33  ;;  %v4316_v28 = vpack.c.bf16 %v1673_v1, %v1669_v20  ;;  %v1668_v29 = vld [vmem:[#allocation9 + $0x1340] sm:$0xff]  ;;  %v1677_v41 = vld [vmem:[#allocation9 + $0x1388] sm:$0xff] }
 0x4b6   : > { %4853 = vmatprep.subr.bf16.mxu1 %v4852_v43  ;;  %v1639_v43 = vld [vmem:[#allocation9 + $0x1258] sm:$0xff]  ;;  %v4874_v6 = vpack.c.bf16 %v1634_v39, %v1630_v34  ;;  %v1674_v33 = vld [vmem:[#allocation9 + $0x1370] sm:$0xff]  ;;  %v1681_v34 = vld [vmem:[#allocation9 + $0x13a8] sm:$0xff] }
 0x4b7   : > { %v1683_v39 = vld [vmem:[#allocation9 + $0x13b8] sm:$0xff]  ;;  %v3975_v1 = vld [vmem:[%s6388_s16 + $0x21] sm:$0xff] }
 0x4b8   : > { %4279 = vmatpush1.bf16.msra.mxu0 %v4278_v47  ;;  %v1640_v47 = vld [vmem:[#allocation9 + $0x1260] sm:$0xff]  ;;  %v1715_v20 = vld [vmem:[#allocation9 + $0x14b8] sm:$0xff] }
 0x4b9   : > { %4855 = vmatpush1.bf16.msra.mxu1 %v4854_v48  ;;  %4281 = vmatprep.subr.bf16.mxu0 %v4280_v49  ;;  %v1638_v48 = vld [vmem:[#allocation9 + $0x1250] sm:$0xff]  ;;  %v4876_v49 = vpack.c.bf16 %v1643_v25, %v1639_v43  ;;  %v4302_v15 = vpack.c.bf16 %v1640_v47, %v1636_v45  ;;  %v4320_v43 = vpack.c.bf16 %v1681_v34, %v1677_v41  ;;  %v1676_v25 = vld [vmem:[#allocation9 + $0x1380] sm:$0xff]  ;;  %v1685_v47 = vld [vmem:[#allocation9 + $0x13c8] sm:$0xff] }
 0x4ba   : > { %4857 = vmatprep.subr.bf16.mxu1 %v4856_v53  ;;  %v1647_v53 = vld [vmem:[#allocation9 + $0x1298] sm:$0xff]  ;;  %v4878_v5 = vpack.c.bf16 %v1642_v50, %v1638_v48  ;;  %v1682_v45 = vld [vmem:[#allocation9 + $0x13b0] sm:$0xff]  ;;  %v1689_v48 = vld [vmem:[#allocation9 + $0x13e8] sm:$0xff] }
 0x4bb   : > { %v1691_v50 = vld [vmem:[#allocation9 + $0x13f8] sm:$0xff]  ;;  %v1721_v41 = vld [vmem:[#allocation9 + $0x14e8] sm:$0xff] }
 0x4bc   : > { %4283 = vmatpush1.bf16.msra.mxu0 %v4282_v37  ;;  %v1648_v37 = vld [vmem:[#allocation9 + $0x12a0] sm:$0xff]  ;;  %v1719_v34 = vld [vmem:[#allocation9 + $0x14d8] sm:$0xff] }
 0x4bd   : > { %4859 = vmatpush1.bf16.msra.mxu1 %v4858_v54  ;;  %4285 = vmatprep.subr.bf16.mxu0 %v4284_v46  ;;  %v1646_v54 = vld [vmem:[#allocation9 + $0x1290] sm:$0xff]  ;;  %v4880_v46 = vpack.c.bf16 %v1651_v14, %v1647_v53  ;;  %v4306_v13 = vpack.c.bf16 %v1648_v37, %v1644_v12  ;;  %v4324_v53 = vpack.c.bf16 %v1689_v48, %v1685_v47  ;;  %v1684_v14 = vld [vmem:[#allocation9 + $0x13c0] sm:$0xff]  ;;  %v1693_v37 = vld [vmem:[#allocation9 + $0x1408] sm:$0xff] }
 0x4be   : > { %4861 = vmatprep.subr.bf16.mxu1 %v4860_v60  ;;  %v1655_v60 = vld [vmem:[#allocation9 + $0x12d8] sm:$0xff]  ;;  %v4882_v38 = vpack.c.bf16 %v1650_v57, %v1646_v54  ;;  %v1690_v12 = vld [vmem:[#allocation9 + $0x13f0] sm:$0xff]  ;;  %v1697_v54 = vld [vmem:[#allocation9 + $0x1428] sm:$0xff] }
 0x4bf   : > { %v1699_v57 = vld [vmem:[#allocation9 + $0x1438] sm:$0xff]  ;;  %v1725_v47 = vld [vmem:[#allocation9 + $0x1508] sm:$0xff] }
 0x4c0   : > { %4287 = vmatpush1.bf16.msra.mxu0 %v4286_v17  ;;  %v1656_v17 = vld [vmem:[#allocation9 + $0x12e0] sm:$0xff]  ;;  %v1729_v48 = vld [vmem:[#allocation9 + $0x1528] sm:$0xff] }
 0x4c1   : > { %4863 = vmatpush1.bf16.msra.mxu1 %v4862_v0  ;;  %4289 = vmatprep.subr.bf16.mxu0 %v4288_v59  ;;  %v1654_v0 = vld [vmem:[#allocation9 + $0x12d0] sm:$0xff]  ;;  %v4884_v59 = vpack.c.bf16 %v1659_v10, %v1655_v60  ;;  %v4310_v8 = vpack.c.bf16 %v1656_v17, %v1652_v63  ;;  %v4328_v60 = vpack.c.bf16 %v1697_v54, %v1693_v37  ;;  %v1692_v10 = vld [vmem:[#allocation9 + $0x1400] sm:$0xff]  ;;  %v1701_v17 = vld [vmem:[#allocation9 + $0x1448] sm:$0xff] }
 0x4c2   : > { %4865 = vmatprep.subr.bf16.mxu1 %v4864_v4  ;;  %v1663_v4 = vld [vmem:[#allocation9 + $0x1318] sm:$0xff]  ;;  %v4886_v9 = vpack.c.bf16 %v1658_v7, %v1654_v0  ;;  %v1698_v63 = vld [vmem:[#allocation9 + $0x1430] sm:$0xff]  ;;  %v1705_v0 = vld [vmem:[#allocation9 + $0x1468] sm:$0xff] }
 0x4c3   : > { %v1707_v7 = vld [vmem:[#allocation9 + $0x1478] sm:$0xff]  ;;  %v1733_v37 = vld [vmem:[#allocation9 + $0x1548] sm:$0xff] }
 0x4c4   : > { %4291 = vmatpush1.bf16.msra.mxu0 %v4290_v16  ;;  %v1664_v16 = vld [vmem:[#allocation9 + $0x1320] sm:$0xff]  ;;  %v1737_v54 = vld [vmem:[#allocation9 + $0x1568] sm:$0xff] }
 0x4c5   : > { %4867 = vmatpush1.bf16.msra.mxu1 %v4866_v26  ;;  %4293 = vmatprep.subr.bf16.mxu0 %v4292_v3  ;;  %v1662_v26 = vld [vmem:[#allocation9 + $0x1310] sm:$0xff]  ;;  %v4888_v3 = vpack.c.bf16 %v1667_v61, %v1663_v4  ;;  %v4314_v27 = vpack.c.bf16 %v1664_v16, %v1660_v11  ;;  %v4332_v61 = vpack.c.bf16 %v1705_v0, %v1701_v17  ;;  %v1741_v17 = vld [vmem:[#allocation9 + $0x1588] sm:$0xff] }
 0x4c6   : > { %4869 = vmatprep.subr.bf16.mxu1 %v4868_v23  ;;  %v1671_v23 = vld [vmem:[#allocation9 + $0x1358] sm:$0xff]  ;;  %v4890_v31 = vpack.c.bf16 %v1666_v19, %v1662_v26  ;;  %v1706_v16 = vld [vmem:[#allocation9 + $0x1470] sm:$0xff]  ;;  %v1709_v26 = vld [vmem:[#allocation9 + $0x1488] sm:$0xff] }
 0x4c7   : > { %v1711_v19 = vld [vmem:[#allocation9 + $0x1498] sm:$0xff]  ;;  %v1745_v0 = vld [vmem:[#allocation9 + $0x15a8] sm:$0xff] }
 0x4c8   : > { %4295 = vmatpush1.bf16.msra.mxu0 %v4294_v36  ;;  %v1672_v36 = vld [vmem:[#allocation9 + $0x1360] sm:$0xff] }
 0x4c9   : > { %4871 = vmatpush1.bf16.msra.mxu1 %v4870_v30  ;;  %4297 = vmatprep.subr.bf16.mxu0 %v4296_v32  ;;  %v1670_v30 = vld [vmem:[#allocation9 + $0x1350] sm:$0xff]  ;;  %v4892_v32 = vpack.c.bf16 %v1675_v24, %v1671_v23  ;;  %v4318_v40 = vpack.c.bf16 %v1672_v36, %v1668_v29  ;;  %v975_v24 = vld [vmem:[#allocation2 + $0x21] sm:$0xff] }
 0x4ca   : > { %4873 = vmatprep.subr.bf16.mxu1 %v4872_v35  ;;  %v1679_v35 = vld [vmem:[#allocation9 + $0x1398] sm:$0xff]  ;;  %v4894_v42 = vpack.c.bf16 %v1674_v33, %v1670_v30  ;;  %v1712_v29 = vld [vmem:[#allocation9 + $0x14a0] sm:$0xff]  ;;  %v1710_v36 = vld [vmem:[#allocation9 + $0x1490] sm:$0xff]  ;;  %v4912_v30 = vpack.c.bf16 %v1715_v20, %v1711_v19 }
 0x4cb   : > { %v1717_v33 = vld [vmem:[#allocation9 + $0x14c8] sm:$0xff]  ;;  %v1755_v19 = vld [vmem:[#allocation9 + $0x15f8] sm:$0xff] }
 0x4cc   : > { %4299 = vmatpush1.bf16.msra.mxu0 %v4298_v56  ;;  %v1680_v56 = vld [vmem:[#allocation9 + $0x13a0] sm:$0xff] }
 0x4cd   : > { %4875 = vmatpush1.bf16.msra.mxu1 %v4874_v6  ;;  %4301 = vmatprep.subr.bf16.mxu0 %v4300_v44  ;;  %v1678_v6 = vld [vmem:[#allocation9 + $0x1390] sm:$0xff]  ;;  %v4896_v44 = vpack.c.bf16 %v1683_v39, %v1679_v35  ;;  %v4322_v55 = vpack.c.bf16 %v1680_v56, %v1676_v25  ;;  %v1723_v35 = vld [vmem:[#allocation9 + $0x14f8] sm:$0xff]  ;;  %v1716_v25 = vld [vmem:[#allocation9 + $0x14c0] sm:$0xff] }
 0x4ce   : > { %4877 = vmatprep.subr.bf16.mxu1 %v4876_v49  ;;  %v1687_v49 = vld [vmem:[#allocation9 + $0x13d8] sm:$0xff]  ;;  %v4898_v52 = vpack.c.bf16 %v1682_v45, %v1678_v6  ;;  %v1720_v56 = vld [vmem:[#allocation9 + $0x14e0] sm:$0xff]  ;;  %v1718_v6 = vld [vmem:[#allocation9 + $0x14d0] sm:$0xff] }
 0x4cf   : > { %v3976_v39 = vld [vmem:[%s6388_s16 + $0x12] sm:$0xff] }
 0x4d0   : > { %4303 = vmatpush1.bf16.msra.mxu0 %v4302_v15  ;;  %v1688_v15 = vld [vmem:[#allocation9 + $0x13e0] sm:$0xff]  ;;  %v1722_v45 = vld [vmem:[#allocation9 + $0x14f0] sm:$0xff] }
 0x4d1   : > { %4879 = vmatpush1.bf16.msra.mxu1 %v4878_v5  ;;  %4305 = vmatprep.subr.bf16.mxu0 %v4304_v22  ;;  %v1686_v5 = vld [vmem:[#allocation9 + $0x13d0] sm:$0xff]  ;;  %v4900_v22 = vpack.c.bf16 %v1691_v50, %v1687_v49  ;;  %v4326_v51 = vpack.c.bf16 %v1688_v15, %v1684_v14  ;;  %v1727_v49 = vld [vmem:[#allocation9 + $0x1518] sm:$0xff]  ;;  %v1724_v14 = vld [vmem:[#allocation9 + $0x1500] sm:$0xff] }
 0x4d2   : > { %4881 = vmatprep.subr.bf16.mxu1 %v4880_v46  ;;  %v1695_v46 = vld [vmem:[#allocation9 + $0x1418] sm:$0xff]  ;;  %v4902_v58 = vpack.c.bf16 %v1690_v12, %v1686_v5  ;;  %v1728_v15 = vld [vmem:[#allocation9 + $0x1520] sm:$0xff]  ;;  %v1726_v5 = vld [vmem:[#allocation9 + $0x1510] sm:$0xff] }
 0x4d3   : > { %v1731_v50 = vld [vmem:[#allocation9 + $0x1538] sm:$0xff]  ;;  %v1730_v12 = vld [vmem:[#allocation9 + $0x1530] sm:$0xff] }
 0x4d4   : > { %4307 = vmatpush1.bf16.msra.mxu0 %v4306_v13  ;;  %v1696_v13 = vld [vmem:[#allocation9 + $0x1420] sm:$0xff] }
 0x4d5   : > { %4883 = vmatpush1.bf16.msra.mxu1 %v4882_v38  ;;  %4309 = vmatprep.subr.bf16.mxu0 %v4308_v62  ;;  %v1694_v38 = vld [vmem:[#allocation9 + $0x1410] sm:$0xff]  ;;  %v4904_v62 = vpack.c.bf16 %v1699_v57, %v1695_v46  ;;  %v4330_v21 = vpack.c.bf16 %v1696_v13, %v1692_v10  ;;  %v1735_v46 = vld [vmem:[#allocation9 + $0x1558] sm:$0xff]  ;;  %v1732_v10 = vld [vmem:[#allocation9 + $0x1540] sm:$0xff] }
 0x4d6   : > { %4885 = vmatprep.subr.bf16.mxu1 %v4884_v59  ;;  %v1703_v59 = vld [vmem:[#allocation9 + $0x1458] sm:$0xff]  ;;  %v4906_v4 = vpack.c.bf16 %v1698_v63, %v1694_v38  ;;  %v1736_v13 = vld [vmem:[#allocation9 + $0x1560] sm:$0xff]  ;;  %v1734_v38 = vld [vmem:[#allocation9 + $0x1550] sm:$0xff] }
 0x4d7   : > { %v4908_v11 = vpack.c.bf16 %v1707_v7, %v1703_v59  ;;  %v1739_v57 = vld [vmem:[#allocation9 + $0x1578] sm:$0xff]  ;;  %v1738_v63 = vld [vmem:[#allocation9 + $0x1570] sm:$0xff] }
 0x4d8   : > { %4311 = vmatpush1.bf16.msra.mxu0 %v4310_v8  ;;  %v1700_v8 = vld [vmem:[#allocation9 + $0x1440] sm:$0xff]  ;;  %v1743_v59 = vld [vmem:[#allocation9 + $0x1598] sm:$0xff] }
 0x4d9   : > { %4887 = vmatpush1.bf16.msra.mxu1 %v4886_v9  ;;  %4313 = vmatprep.subr.bf16.mxu0 %v4312_v18  ;;  %v1704_v9 = vld [vmem:[#allocation9 + $0x1460] sm:$0xff]  ;;  %v1702_v18 = vld [vmem:[#allocation9 + $0x1450] sm:$0xff]  ;;  %v1747_v7 = vld [vmem:[#allocation9 + $0x15b8] sm:$0xff] }
 0x4da   : > { %4889 = vmatprep.subr.bf16.mxu1 %v4888_v3  ;;  %v1713_v3 = vld [vmem:[#allocation9 + $0x14a8] sm:$0xff]  ;;  %v4334_v23 = vpack.c.bf16 %v1704_v9, %v1700_v8  ;;  %v1744_v8 = vld [vmem:[#allocation9 + $0x15a0] sm:$0xff]  ;;  %v1742_v9 = vld [vmem:[#allocation9 + $0x1590] sm:$0xff] }
 0x4dc   : > { %4315 = vmatpush1.bf16.msra.mxu0 %v4314_v27  ;;  %v4910_v27 = vpack.c.bf16 %v1706_v16, %v1702_v18  ;;  %v4928_v18 = vpack.c.bf16 %v1747_v7, %v1743_v59  ;;  %v1749_v16 = vld [vmem:[#allocation9 + $0x15c8] sm:$0xff]  ;;  %v1780_v7 = vld [vmem:[#allocation9 + $0x16c0] sm:$0xff] }
 0x4dd   : > { %4891 = vmatpush1.bf16.msra.mxu1 %v4890_v31  ;;  %4317 = vmatprep.subr.bf16.mxu0 %v4316_v28  ;;  %v4336_v31 = vpack.c.bf16 %v1713_v3, %v1709_v26  ;;  %v1708_v28 = vld [vmem:[#allocation9 + $0x1480] sm:$0xff]  ;;  %v1753_v26 = vld [vmem:[#allocation9 + $0x15e8] sm:$0xff]  ;;  %v1751_v3 = vld [vmem:[#allocation9 + $0x15d8] sm:$0xff] }
 0x4de   : > { %4893 = vmatprep.subr.bf16.mxu1 %v4892_v32  ;;  %v1714_v32 = vld [vmem:[#allocation9 + $0x14b0] sm:$0xff] }
 0x4e0   : > { %4319 = vmatpush1.bf16.msra.mxu0 %v4318_v40  ;;  %v4338_v40 = vpack.c.bf16 %v1712_v29, %v1708_v28  ;;  %v4932_v28 = vpack.c.bf16 %v1755_v19, %v1751_v3  ;;  %v1754_v29 = vld [vmem:[#allocation9 + $0x15f0] sm:$0xff]  ;;  %v1788_v19 = vld [vmem:[#allocation9 + $0x1700] sm:$0xff] }
 0x4e1   : > { %4895 = vmatpush1.bf16.msra.mxu1 %v4894_v42  ;;  %4321 = vmatprep.subr.bf16.mxu0 %v4320_v43  ;;  %v4914_v42 = vpack.c.bf16 %v1714_v32, %v1710_v36  ;;  %v4340_v43 = vpack.c.bf16 %v1721_v41, %v1717_v33  ;;  %v1757_v36 = vld [vmem:[#allocation9 + $0x1608] sm:$0xff]  ;;  %v1759_v32 = vld [vmem:[#allocation9 + $0x1618] sm:$0xff] }
 0x4e2   : > { %4897 = vmatprep.subr.bf16.mxu1 %v4896_v44  ;;  %v4916_v44 = vpack.c.bf16 %v1723_v35, %v1719_v34  ;;  %v1763_v33 = vld [vmem:[#allocation9 + $0x1638] sm:$0xff] }
 0x4e4   : > { %4323 = vmatpush1.bf16.msra.mxu0 %v4322_v55  ;;  %v4342_v55 = vpack.c.bf16 %v1720_v56, %v1716_v25  ;;  %v1762_v25 = vld [vmem:[#allocation9 + $0x1630] sm:$0xff]  ;;  %v1765_v56 = vld [vmem:[#allocation9 + $0x1648] sm:$0xff] }
 0x4e5   : > { %4899 = vmatpush1.bf16.msra.mxu1 %v4898_v52  ;;  %4325 = vmatprep.subr.bf16.mxu0 %v4324_v53  ;;  %v4918_v52 = vpack.c.bf16 %v1722_v45, %v1718_v6  ;;  %v4344_v53 = vpack.c.bf16 %v1729_v48, %v1725_v47  ;;  %v1769_v6 = vld [vmem:[#allocation9 + $0x1668] sm:$0xff]  ;;  %v1771_v45 = vld [vmem:[#allocation9 + $0x1678] sm:$0xff] }
 0x4e6   : > { %4901 = vmatprep.subr.bf16.mxu1 %v4900_v22  ;;  %v4920_v22 = vpack.c.bf16 %v1731_v50, %v1727_v49  ;;  %v4364_v49 = vpack.c.bf16 %v1769_v6, %v1765_v56  ;;  %v1764_v50 = vld [vmem:[#allocation9 + $0x1640] sm:$0xff] }
 0x4e8   : > { %4327 = vmatpush1.bf16.msra.mxu0 %v4326_v51  ;;  %v4346_v51 = vpack.c.bf16 %v1728_v15, %v1724_v14  ;;  %v1770_v14 = vld [vmem:[#allocation9 + $0x1670] sm:$0xff]  ;;  %v1773_v15 = vld [vmem:[#allocation9 + $0x1688] sm:$0xff] }
 0x4e9   : > { %4903 = vmatpush1.bf16.msra.mxu1 %v4902_v58  ;;  %4329 = vmatprep.subr.bf16.mxu0 %v4328_v60  ;;  %v4922_v58 = vpack.c.bf16 %v1730_v12, %v1726_v5  ;;  %v4348_v60 = vpack.c.bf16 %v1737_v54, %v1733_v37  ;;  %v1777_v5 = vld [vmem:[#allocation9 + $0x16a8] sm:$0xff]  ;;  %v1779_v12 = vld [vmem:[#allocation9 + $0x16b8] sm:$0xff] }
 0x4ea   : > { %4905 = vmatprep.subr.bf16.mxu1 %v4904_v62  ;;  %v4924_v62 = vpack.c.bf16 %v1739_v57, %v1735_v46  ;;  %v4368_v46 = vpack.c.bf16 %v1777_v5, %v1773_v15  ;;  %v1772_v57 = vld [vmem:[#allocation9 + $0x1680] sm:$0xff] }
 0x4eb   : > { %2599 = vmatmul.mubr.f32.vlgmr.msra.gmra.mrb[0].mxu0 %v974_v2 }
 0x4ec   : > { %4331 = vmatpush1.bf16.msra.mxu0 %v4330_v21  ;;  %3292 = vmatmul.mubr.f32.vlgmr.msra.gmra.mrb[0].mxu1 %v974_v2  ;;  %v4350_v2 = vpack.c.bf16 %v1736_v13, %v1732_v10  ;;  %v4926_v21 = vpack.c.bf16 %v1738_v63, %v1734_v38  ;;  %v1778_v10 = vld [vmem:[#allocation9 + $0x16b0] sm:$0xff]  ;;  %v1781_v13 = vld [vmem:[#allocation9 + $0x16c8] sm:$0xff]  ;;  %v1787_v63 = vld [vmem:[#allocation9 + $0x16f8] sm:$0xff] }
 0x4ed   : > { %4907 = vmatpush1.bf16.msra.mxu1 %v4906_v4  ;;  %4333 = vmatprep.subr.bf16.mxu0 %v4332_v61  ;;  %v4352_v4 = vpack.c.bf16 %v1745_v0, %v1741_v17  ;;  %v1740_v61 = vld [vmem:[#allocation9 + $0x1580] sm:$0xff]  ;;  %v1785_v38 = vld [vmem:[#allocation9 + $0x16e8] sm:$0xff] }
 0x4ee   : > { %4909 = vmatprep.subr.bf16.mxu1 %v4908_v11  ;;  %2604 = vmatprep.mubr.f32.mxu0 %v3975_v1  ;;  %v1746_v11 = vld [vmem:[#allocation9 + $0x15b0] sm:$0xff]  ;;  %v4354_v20 = vpack.c.bf16 %v1744_v8, %v1740_v61  ;;  %v4372_v59 = vpack.c.bf16 %v1785_v38, %v1781_v13  ;;  %v1789_v8 = vld [vmem:[#allocation9 + $0x1708] sm:$0xff] }
 0x4ef   : > { %3297 = vmatprep.mubr.f32.mxu1 %v3975_v1  ;;  %2605 = vmatmul.mubr.f32.gmra.mrb[2].mxu0 %v975_v24  ;;  %v4930_v1 = vpack.c.bf16 %v1746_v11, %v1742_v9  ;;  %v1786_v61 = vld [vmem:[#allocation9 + $0x16f0] sm:$0xff]  ;;  %v1793_v9 = vld [vmem:[#allocation9 + $0x1728] sm:$0xff]  ;;  %v1795_v11 = vld [vmem:[#allocation9 + $0x1738] sm:$0xff] }
 0x4f0   : > { %4335 = vmatpush1.bf16.msra.mxu0 %v4334_v23  ;;  %3298 = vmatmul.mubr.f32.gmra.mrb[2].mxu1 %v975_v24  ;;  %v4356_v23 = vpack.c.bf16 %v1753_v26, %v1749_v16  ;;  %v1748_v24 = vld [vmem:[#allocation9 + $0x15c0] sm:$0xff]  ;;  %v4376_v3 = vpack.c.bf16 %v1793_v9, %v1789_v8  ;;  %v982_v8 = vld [vmem:[#allocation2 + $0x12] sm:$0xff] }
 0x4f1   : > { %4911 = vmatpush1.bf16.msra.mxu1 %v4910_v27  ;;  %4337 = vmatprep.subr.bf16.mxu0 %v4336_v31  ;;  %v1752_v27 = vld [vmem:[#allocation9 + $0x15e0] sm:$0xff]  ;;  %v1750_v31 = vld [vmem:[#allocation9 + $0x15d0] sm:$0xff] }
 0x4f2   : > { %4913 = vmatprep.subr.bf16.mxu1 %v4912_v30  ;;  %2675 = vmatprep.mubr.f32.mxu0 %v3976_v39  ;;  %v1761_v30 = vld [vmem:[#allocation9 + $0x1628] sm:$0xff]  ;;  %v4358_v41 = vpack.c.bf16 %v1752_v27, %v1748_v24  ;;  %v4934_v34 = vpack.c.bf16 %v1754_v29, %v1750_v31  ;;  %v1794_v24 = vld [vmem:[#allocation9 + $0x1730] sm:$0xff]  ;;  %v1803_v29 = vld [vmem:[#allocation9 + $0x1778] sm:$0xff] }
 0x4f3   : > { %3368 = vmatprep.mubr.f32.mxu1 %v3976_v39  ;;  %v4360_v35 = vpack.c.bf16 %v1761_v30, %v1757_v36  ;;  %v1756_v39 = vld [vmem:[#allocation9 + $0x1600] sm:$0xff]  ;;  %v1797_v27 = vld [vmem:[#allocation9 + $0x1748] sm:$0xff] }
 0x4f4   : > { %4339 = vmatpush1.bf16.msra.mxu0 %v4338_v40  ;;  %v1760_v40 = vld [vmem:[#allocation9 + $0x1620] sm:$0xff]  ;;  %v1801_v31 = vld [vmem:[#allocation9 + $0x1768] sm:$0xff] }
 0x4f5   : > { %4915 = vmatpush1.bf16.msra.mxu1 %v4914_v42  ;;  %4341 = vmatprep.subr.bf16.mxu0 %v4340_v43  ;;  %v1758_v42 = vld [vmem:[#allocation9 + $0x1610] sm:$0xff]  ;;  %v4936_v43 = vpack.c.bf16 %v1763_v33, %v1759_v32  ;;  %v4362_v47 = vpack.c.bf16 %v1760_v40, %v1756_v39  ;;  %v4380_v32 = vpack.c.bf16 %v1801_v31, %v1797_v27  ;;  %v1796_v33 = vld [vmem:[#allocation9 + $0x1740] sm:$0xff]  ;;  %v1805_v40 = vld [vmem:[#allocation9 + $0x1788] sm:$0xff] }
 0x4f6   : > { %4917 = vmatprep.subr.bf16.mxu1 %v4916_v44  ;;  %v1767_v44 = vld [vmem:[#allocation9 + $0x1658] sm:$0xff]  ;;  %v4938_v48 = vpack.c.bf16 %v1762_v25, %v1758_v42  ;;  %v1802_v39 = vld [vmem:[#allocation9 + $0x1770] sm:$0xff]  ;;  %v1809_v42 = vld [vmem:[#allocation9 + $0x17a8] sm:$0xff] }
 0x4f7   : > { %v1811_v25 = vld [vmem:[#allocation9 + $0x17b8] sm:$0xff]  ;;  %v3977_v31 = vld [vmem:[%s6388_s16 + $0x22] sm:$0xff] }
 0x4f8   : > { %4343 = vmatpush1.bf16.msra.mxu0 %v4342_v55  ;;  %v1768_v55 = vld [vmem:[#allocation9 + $0x1660] sm:$0xff]  ;;  %v1843_v27 = vld [vmem:[#allocation9 + $0x18b8] sm:$0xff] }
 0x4f9   : > { %4919 = vmatpush1.bf16.msra.mxu1 %v4918_v52  ;;  %4345 = vmatprep.subr.bf16.mxu0 %v4344_v53  ;;  %v1766_v52 = vld [vmem:[#allocation9 + $0x1650] sm:$0xff]  ;;  %v4940_v53 = vpack.c.bf16 %v1771_v45, %v1767_v44  ;;  %v4366_v37 = vpack.c.bf16 %v1768_v55, %v1764_v50  ;;  %v4384_v44 = vpack.c.bf16 %v1809_v42, %v1805_v40  ;;  %v1804_v45 = vld [vmem:[#allocation9 + $0x1780] sm:$0xff]  ;;  %v1813_v55 = vld [vmem:[#allocation9 + $0x17c8] sm:$0xff] }
 0x4fa   : > { %4921 = vmatprep.subr.bf16.mxu1 %v4920_v22  ;;  %v1775_v22 = vld [vmem:[#allocation9 + $0x1698] sm:$0xff]  ;;  %v4942_v54 = vpack.c.bf16 %v1770_v14, %v1766_v52  ;;  %v1810_v50 = vld [vmem:[#allocation9 + $0x17b0] sm:$0xff]  ;;  %v1817_v52 = vld [vmem:[#allocation9 + $0x17e8] sm:$0xff] }
 0x4fb   : > { %v1819_v14 = vld [vmem:[#allocation9 + $0x17f8] sm:$0xff]  ;;  %v1849_v40 = vld [vmem:[#allocation9 + $0x18e8] sm:$0xff] }
 0x4fc   : > { %4347 = vmatpush1.bf16.msra.mxu0 %v4346_v51  ;;  %v1776_v51 = vld [vmem:[#allocation9 + $0x16a0] sm:$0xff]  ;;  %v1847_v42 = vld [vmem:[#allocation9 + $0x18d8] sm:$0xff] }
 0x4fd   : > { %4923 = vmatpush1.bf16.msra.mxu1 %v4922_v58  ;;  %4349 = vmatprep.subr.bf16.mxu0 %v4348_v60  ;;  %v1774_v58 = vld [vmem:[#allocation9 + $0x1690] sm:$0xff]  ;;  %v4944_v60 = vpack.c.bf16 %v1779_v12, %v1775_v22  ;;  %v4370_v17 = vpack.c.bf16 %v1776_v51, %v1772_v57  ;;  %v4388_v22 = vpack.c.bf16 %v1817_v52, %v1813_v55  ;;  %v1812_v12 = vld [vmem:[#allocation9 + $0x17c0] sm:$0xff]  ;;  %v1821_v51 = vld [vmem:[#allocation9 + $0x1808] sm:$0xff] }
 0x4fe   : > { %4925 = vmatprep.subr.bf16.mxu1 %v4924_v62  ;;  %v1783_v62 = vld [vmem:[#allocation9 + $0x16d8] sm:$0xff]  ;;  %v4946_v0 = vpack.c.bf16 %v1778_v10, %v1774_v58  ;;  %v1818_v57 = vld [vmem:[#allocation9 + $0x17f0] sm:$0xff]  ;;  %v1825_v58 = vld [vmem:[#allocation9 + $0x1828] sm:$0xff] }
 0x4ff   : > { %v1827_v10 = vld [vmem:[#allocation9 + $0x1838] sm:$0xff]  ;;  %v1853_v55 = vld [vmem:[#allocation9 + $0x1908] sm:$0xff] }
 0x500   : > { %4351 = vmatpush1.bf16.msra.mxu0 %v4350_v2  ;;  %v1784_v2 = vld [vmem:[#allocation9 + $0x16e0] sm:$0xff]  ;;  %v1857_v52 = vld [vmem:[#allocation9 + $0x1928] sm:$0xff] }
 0x501   : > { %4927 = vmatpush1.bf16.msra.mxu1 %v4926_v21  ;;  %4353 = vmatprep.subr.bf16.mxu0 %v4352_v4  ;;  %v1782_v21 = vld [vmem:[#allocation9 + $0x16d0] sm:$0xff]  ;;  %v4948_v4 = vpack.c.bf16 %v1787_v63, %v1783_v62  ;;  %v4374_v16 = vpack.c.bf16 %v1784_v2, %v1780_v7  ;;  %v4392_v62 = vpack.c.bf16 %v1825_v58, %v1821_v51  ;;  %v1820_v63 = vld [vmem:[#allocation9 + $0x1800] sm:$0xff]  ;;  %v1829_v2 = vld [vmem:[#allocation9 + $0x1848] sm:$0xff] }
 0x502   : > { %4929 = vmatprep.subr.bf16.mxu1 %v4928_v18  ;;  %v1791_v18 = vld [vmem:[#allocation9 + $0x1718] sm:$0xff]  ;;  %v4950_v26 = vpack.c.bf16 %v1786_v61, %v1782_v21  ;;  %v1826_v7 = vld [vmem:[#allocation9 + $0x1830] sm:$0xff]  ;;  %v1833_v21 = vld [vmem:[#allocation9 + $0x1868] sm:$0xff] }
 0x503   : > { %v1835_v61 = vld [vmem:[#allocation9 + $0x1878] sm:$0xff]  ;;  %v1861_v51 = vld [vmem:[#allocation9 + $0x1948] sm:$0xff] }
 0x504   : > { %4355 = vmatpush1.bf16.msra.mxu0 %v4354_v20  ;;  %v1792_v20 = vld [vmem:[#allocation9 + $0x1720] sm:$0xff]  ;;  %v1865_v58 = vld [vmem:[#allocation9 + $0x1968] sm:$0xff] }
 0x505   : > { %4931 = vmatpush1.bf16.msra.mxu1 %v4930_v1  ;;  %4357 = vmatprep.subr.bf16.mxu0 %v4356_v23  ;;  %v1790_v1 = vld [vmem:[#allocation9 + $0x1710] sm:$0xff]  ;;  %v4952_v23 = vpack.c.bf16 %v1795_v11, %v1791_v18  ;;  %v4378_v36 = vpack.c.bf16 %v1792_v20, %v1788_v19  ;;  %v4396_v11 = vpack.c.bf16 %v1833_v21, %v1829_v2  ;;  %v1869_v2 = vld [vmem:[#allocation9 + $0x1988] sm:$0xff] }
 0x506   : > { %4933 = vmatprep.subr.bf16.mxu1 %v4932_v28  ;;  %v1799_v28 = vld [vmem:[#allocation9 + $0x1758] sm:$0xff]  ;;  %v4954_v30 = vpack.c.bf16 %v1794_v24, %v1790_v1  ;;  %v1834_v20 = vld [vmem:[#allocation9 + $0x1870] sm:$0xff]  ;;  %v1837_v1 = vld [vmem:[#allocation9 + $0x1888] sm:$0xff] }
 0x507   : > { %v1839_v24 = vld [vmem:[#allocation9 + $0x1898] sm:$0xff]  ;;  %v1873_v21 = vld [vmem:[#allocation9 + $0x19a8] sm:$0xff] }
 0x508   : > { %4359 = vmatpush1.bf16.msra.mxu0 %v4358_v41  ;;  %v1800_v41 = vld [vmem:[#allocation9 + $0x1760] sm:$0xff] }
 0x509   : > { %4935 = vmatpush1.bf16.msra.mxu1 %v4934_v34  ;;  %4361 = vmatprep.subr.bf16.mxu0 %v4360_v35  ;;  %v1798_v34 = vld [vmem:[#allocation9 + $0x1750] sm:$0xff]  ;;  %v4956_v35 = vpack.c.bf16 %v1803_v29, %v1799_v28  ;;  %v4382_v56 = vpack.c.bf16 %v1800_v41, %v1796_v33  ;;  %v983_v29 = vld [vmem:[#allocation2 + $0x22] sm:$0xff] }
 0x50a   : > { %4937 = vmatprep.subr.bf16.mxu1 %v4936_v43  ;;  %v1807_v43 = vld [vmem:[#allocation9 + $0x1798] sm:$0xff]  ;;  %v4958_v6 = vpack.c.bf16 %v1802_v39, %v1798_v34  ;;  %v1840_v33 = vld [vmem:[#allocation9 + $0x18a0] sm:$0xff]  ;;  %v1838_v41 = vld [vmem:[#allocation9 + $0x1890] sm:$0xff]  ;;  %v4976_v34 = vpack.c.bf16 %v1843_v27, %v1839_v24 }
 0x50b   : > { %v1845_v39 = vld [vmem:[#allocation9 + $0x18c8] sm:$0xff]  ;;  %v1883_v24 = vld [vmem:[#allocation9 + $0x19f8] sm:$0xff] }
 0x50c   : > { %4363 = vmatpush1.bf16.msra.mxu0 %v4362_v47  ;;  %v1808_v47 = vld [vmem:[#allocation9 + $0x17a0] sm:$0xff] }
 0x50d   : > { %4939 = vmatpush1.bf16.msra.mxu1 %v4938_v48  ;;  %4365 = vmatprep.subr.bf16.mxu0 %v4364_v49  ;;  %v1806_v48 = vld [vmem:[#allocation9 + $0x1790] sm:$0xff]  ;;  %v4960_v49 = vpack.c.bf16 %v1811_v25, %v1807_v43  ;;  %v4386_v15 = vpack.c.bf16 %v1808_v47, %v1804_v45  ;;  %v1851_v43 = vld [vmem:[#allocation9 + $0x18f8] sm:$0xff]  ;;  %v3980_v25 = vld [vmem:[%s6388_s16 + $0x20] sm:$0xff] }
 0x50e   : > { %4941 = vmatprep.subr.bf16.mxu1 %v4940_v53  ;;  %v1815_v53 = vld [vmem:[#allocation9 + $0x17d8] sm:$0xff]  ;;  %v4962_v5 = vpack.c.bf16 %v1810_v50, %v1806_v48  ;;  %v1844_v45 = vld [vmem:[#allocation9 + $0x18c0] sm:$0xff]  ;;  %v1846_v48 = vld [vmem:[#allocation9 + $0x18d0] sm:$0xff] }
 0x50f   : > { %v1848_v47 = vld [vmem:[#allocation9 + $0x18e0] sm:$0xff]  ;;  %v1850_v50 = vld [vmem:[#allocation9 + $0x18f0] sm:$0xff] }
 0x510   : > { %4367 = vmatpush1.bf16.msra.mxu0 %v4366_v37  ;;  %v1816_v37 = vld [vmem:[#allocation9 + $0x17e0] sm:$0xff] }
 0x511   : > { %4943 = vmatpush1.bf16.msra.mxu1 %v4942_v54  ;;  %4369 = vmatprep.subr.bf16.mxu0 %v4368_v46  ;;  %v1814_v54 = vld [vmem:[#allocation9 + $0x17d0] sm:$0xff]  ;;  %v4964_v46 = vpack.c.bf16 %v1819_v14, %v1815_v53  ;;  %v4390_v13 = vpack.c.bf16 %v1816_v37, %v1812_v12  ;;  %v1855_v53 = vld [vmem:[#allocation9 + $0x1918] sm:$0xff]  ;;  %v1852_v12 = vld [vmem:[#allocation9 + $0x1900] sm:$0xff] }
 0x512   : > { %4945 = vmatprep.subr.bf16.mxu1 %v4944_v60  ;;  %v1823_v60 = vld [vmem:[#allocation9 + $0x1818] sm:$0xff]  ;;  %v4966_v38 = vpack.c.bf16 %v1818_v57, %v1814_v54  ;;  %v1856_v37 = vld [vmem:[#allocation9 + $0x1920] sm:$0xff]  ;;  %v1854_v54 = vld [vmem:[#allocation9 + $0x1910] sm:$0xff] }
 0x513   : > { %v1859_v14 = vld [vmem:[#allocation9 + $0x1938] sm:$0xff]  ;;  %v1858_v57 = vld [vmem:[#allocation9 + $0x1930] sm:$0xff] }
 0x514   : > { %4371 = vmatpush1.bf16.msra.mxu0 %v4370_v17  ;;  %v1824_v17 = vld [vmem:[#allocation9 + $0x1820] sm:$0xff] }
 0x515   : > { %4947 = vmatpush1.bf16.msra.mxu1 %v4946_v0  ;;  %4373 = vmatprep.subr.bf16.mxu0 %v4372_v59  ;;  %v1822_v0 = vld [vmem:[#allocation9 + $0x1810] sm:$0xff]  ;;  %v4968_v59 = vpack.c.bf16 %v1827_v10, %v1823_v60  ;;  %v4394_v9 = vpack.c.bf16 %v1824_v17, %v1820_v63  ;;  %v1863_v60 = vld [vmem:[#allocation9 + $0x1958] sm:$0xff]  ;;  %v1860_v63 = vld [vmem:[#allocation9 + $0x1940] sm:$0xff] }
 0x516   : > { %4949 = vmatprep.subr.bf16.mxu1 %v4948_v4  ;;  %v1831_v4 = vld [vmem:[#allocation9 + $0x1858] sm:$0xff]  ;;  %v4970_v18 = vpack.c.bf16 %v1826_v7, %v1822_v0  ;;  %v1864_v17 = vld [vmem:[#allocation9 + $0x1960] sm:$0xff]  ;;  %v1862_v0 = vld [vmem:[#allocation9 + $0x1950] sm:$0xff] }
 0x517   : > { %v4972_v19 = vpack.c.bf16 %v1835_v61, %v1831_v4  ;;  %v1867_v10 = vld [vmem:[#allocation9 + $0x1978] sm:$0xff]  ;;  %v1866_v7 = vld [vmem:[#allocation9 + $0x1970] sm:$0xff] }
 0x518   : > { %4375 = vmatpush1.bf16.msra.mxu0 %v4374_v16  ;;  %v1828_v16 = vld [vmem:[#allocation9 + $0x1840] sm:$0xff]  ;;  %v1871_v4 = vld [vmem:[#allocation9 + $0x1998] sm:$0xff] }
 0x519   : > { %4951 = vmatpush1.bf16.msra.mxu1 %v4950_v26  ;;  %4377 = vmatprep.subr.bf16.mxu0 %v4376_v3  ;;  %v1832_v26 = vld [vmem:[#allocation9 + $0x1860] sm:$0xff]  ;;  %v1830_v3 = vld [vmem:[#allocation9 + $0x1850] sm:$0xff]  ;;  %v1875_v61 = vld [vmem:[#allocation9 + $0x19b8] sm:$0xff] }
 0x51a   : > { %4953 = vmatprep.subr.bf16.mxu1 %v4952_v23  ;;  %v1841_v23 = vld [vmem:[#allocation9 + $0x18a8] sm:$0xff]  ;;  %v4398_v28 = vpack.c.bf16 %v1832_v26, %v1828_v16  ;;  %v1872_v16 = vld [vmem:[#allocation9 + $0x19a0] sm:$0xff]  ;;  %v1870_v26 = vld [vmem:[#allocation9 + $0x1990] sm:$0xff] }
 0x51c   : > { %4379 = vmatpush1.bf16.msra.mxu0 %v4378_v36  ;;  %v4974_v36 = vpack.c.bf16 %v1834_v20, %v1830_v3  ;;  %v4992_v3 = vpack.c.bf16 %v1875_v61, %v1871_v4  ;;  %v1877_v20 = vld [vmem:[#allocation9 + $0x19c8] sm:$0xff]  ;;  %v1908_v61 = vld [vmem:[#allocation9 + $0x1ac0] sm:$0xff] }
 0x51d   : > { %4955 = vmatpush1.bf16.msra.mxu1 %v4954_v30  ;;  %4381 = vmatprep.subr.bf16.mxu0 %v4380_v32  ;;  %v4400_v30 = vpack.c.bf16 %v1841_v23, %v1837_v1  ;;  %v1836_v32 = vld [vmem:[#allocation9 + $0x1880] sm:$0xff]  ;;  %v1881_v1 = vld [vmem:[#allocation9 + $0x19e8] sm:$0xff]  ;;  %v1879_v23 = vld [vmem:[#allocation9 + $0x19d8] sm:$0xff] }
 0x51e   : > { %4957 = vmatprep.subr.bf16.mxu1 %v4956_v35  ;;  %v1842_v35 = vld [vmem:[#allocation9 + $0x18b0] sm:$0xff] }
 0x520   : > { %4383 = vmatpush1.bf16.msra.mxu0 %v4382_v56  ;;  %v4402_v56 = vpack.c.bf16 %v1840_v33, %v1836_v32  ;;  %v4996_v32 = vpack.c.bf16 %v1883_v24, %v1879_v23  ;;  %v1882_v33 = vld [vmem:[#allocation9 + $0x19f0] sm:$0xff]  ;;  %v1916_v24 = vld [vmem:[#allocation9 + $0x1b00] sm:$0xff] }
 0x521   : > { %4959 = vmatpush1.bf16.msra.mxu1 %v4958_v6  ;;  %4385 = vmatprep.subr.bf16.mxu0 %v4384_v44  ;;  %v4978_v6 = vpack.c.bf16 %v1842_v35, %v1838_v41  ;;  %v4404_v44 = vpack.c.bf16 %v1849_v40, %v1845_v39  ;;  %v1885_v41 = vld [vmem:[#allocation9 + $0x1a08] sm:$0xff]  ;;  %v1887_v35 = vld [vmem:[#allocation9 + $0x1a18] sm:$0xff] }
 0x522   : > { %4961 = vmatprep.subr.bf16.mxu1 %v4960_v49  ;;  %v4980_v49 = vpack.c.bf16 %v1851_v43, %v1847_v42  ;;  %v1891_v39 = vld [vmem:[#allocation9 + $0x1a38] sm:$0xff] }
 0x524   : > { %4387 = vmatpush1.bf16.msra.mxu0 %v4386_v15  ;;  %v4406_v15 = vpack.c.bf16 %v1848_v47, %v1844_v45  ;;  %v1890_v45 = vld [vmem:[#allocation9 + $0x1a30] sm:$0xff]  ;;  %v1893_v47 = vld [vmem:[#allocation9 + $0x1a48] sm:$0xff] }
 0x525   : > { %4963 = vmatpush1.bf16.msra.mxu1 %v4962_v5  ;;  %4389 = vmatprep.subr.bf16.mxu0 %v4388_v22  ;;  %v4982_v5 = vpack.c.bf16 %v1850_v50, %v1846_v48  ;;  %v4408_v22 = vpack.c.bf16 %v1857_v52, %v1853_v55  ;;  %v1897_v48 = vld [vmem:[#allocation9 + $0x1a68] sm:$0xff]  ;;  %v1899_v50 = vld [vmem:[#allocation9 + $0x1a78] sm:$0xff] }
 0x526   : > { %4965 = vmatprep.subr.bf16.mxu1 %v4964_v46  ;;  %v4984_v46 = vpack.c.bf16 %v1859_v14, %v1855_v53  ;;  %v4428_v53 = vpack.c.bf16 %v1897_v48, %v1893_v47  ;;  %v1892_v14 = vld [vmem:[#allocation9 + $0x1a40] sm:$0xff] }
 0x528   : > { %4391 = vmatpush1.bf16.msra.mxu0 %v4390_v13  ;;  %v4410_v13 = vpack.c.bf16 %v1856_v37, %v1852_v12  ;;  %v1898_v12 = vld [vmem:[#allocation9 + $0x1a70] sm:$0xff]  ;;  %v1901_v37 = vld [vmem:[#allocation9 + $0x1a88] sm:$0xff] }
 0x529   : > { %4967 = vmatpush1.bf16.msra.mxu1 %v4966_v38  ;;  %4393 = vmatprep.subr.bf16.mxu0 %v4392_v62  ;;  %v4986_v38 = vpack.c.bf16 %v1858_v57, %v1854_v54  ;;  %v4412_v62 = vpack.c.bf16 %v1865_v58, %v1861_v51  ;;  %v1905_v54 = vld [vmem:[#allocation9 + $0x1aa8] sm:$0xff]  ;;  %v1907_v57 = vld [vmem:[#allocation9 + $0x1ab8] sm:$0xff] }
 0x52a   : > { %4969 = vmatprep.subr.bf16.mxu1 %v4968_v59  ;;  %v4988_v59 = vpack.c.bf16 %v1867_v10, %v1863_v60  ;;  %v4432_v60 = vpack.c.bf16 %v1905_v54, %v1901_v37  ;;  %v1900_v10 = vld [vmem:[#allocation9 + $0x1a80] sm:$0xff] }
 0x52b   : > { %2676 = vmatmul.mubr.f32.vlgmr.msra.gmra.mrb[0].mxu0 %v982_v8 }
 0x52c   : > { %4395 = vmatpush1.bf16.msra.mxu0 %v4394_v9  ;;  %3369 = vmatmul.mubr.f32.vlgmr.msra.gmra.mrb[0].mxu1 %v982_v8  ;;  %v4414_v8 = vpack.c.bf16 %v1864_v17, %v1860_v63  ;;  %v4990_v9 = vpack.c.bf16 %v1866_v7, %v1862_v0  ;;  %v1906_v63 = vld [vmem:[#allocation9 + $0x1ab0] sm:$0xff]  ;;  %v1909_v17 = vld [vmem:[#allocation9 + $0x1ac8] sm:$0xff]  ;;  %v1915_v7 = vld [vmem:[#allocation9 + $0x1af8] sm:$0xff] }
 0x52d   : > { %4971 = vmatpush1.bf16.msra.mxu1 %v4970_v18  ;;  %4397 = vmatprep.subr.bf16.mxu0 %v4396_v11  ;;  %v4416_v18 = vpack.c.bf16 %v1873_v21, %v1869_v2  ;;  %v1868_v11 = vld [vmem:[#allocation9 + $0x1980] sm:$0xff]  ;;  %v1913_v0 = vld [vmem:[#allocation9 + $0x1ae8] sm:$0xff] }
 0x52e   : > { %4973 = vmatprep.subr.bf16.mxu1 %v4972_v19  ;;  %2681 = vmatprep.mubr.f32.mxu0 %v3977_v31  ;;  %v1874_v19 = vld [vmem:[#allocation9 + $0x19b0] sm:$0xff]  ;;  %v4418_v27 = vpack.c.bf16 %v1872_v16, %v1868_v11  ;;  %v4436_v4 = vpack.c.bf16 %v1913_v0, %v1909_v17  ;;  %v1917_v16 = vld [vmem:[#allocation9 + $0x1b08] sm:$0xff] }
 0x52f   : > { %3374 = vmatprep.mubr.f32.mxu1 %v3977_v31  ;;  %2682 = vmatmul.mubr.f32.gmra.mrb[2].mxu0 %v983_v29  ;;  %v4994_v31 = vpack.c.bf16 %v1874_v19, %v1870_v26  ;;  %v1914_v11 = vld [vmem:[#allocation9 + $0x1af0] sm:$0xff]  ;;  %v1921_v26 = vld [vmem:[#allocation9 + $0x1b28] sm:$0xff]  ;;  %v1923_v19 = vld [vmem:[#allocation9 + $0x1b38] sm:$0xff] }
 0x530   : > { %4399 = vmatpush1.bf16.msra.mxu0 %v4398_v28  ;;  %3375 = vmatmul.mubr.f32.gmra.mrb[2].mxu1 %v983_v29  ;;  %v4420_v28 = vpack.c.bf16 %v1881_v1, %v1877_v20  ;;  %v1876_v29 = vld [vmem:[#allocation9 + $0x19c0] sm:$0xff]  ;;  %v4440_v23 = vpack.c.bf16 %v1921_v26, %v1917_v16 }
 0x531   : > { %4975 = vmatpush1.bf16.msra.mxu1 %v4974_v36  ;;  %4401 = vmatprep.subr.bf16.mxu0 %v4400_v30  ;;  %v1880_v36 = vld [vmem:[#allocation9 + $0x19e0] sm:$0xff]  ;;  %v1878_v30 = vld [vmem:[#allocation9 + $0x19d0] sm:$0xff] }
 0x532   : > { %4977 = vmatprep.subr.bf16.mxu1 %v4976_v34  ;;  %2752 = vmatprep.mubr.f32.mxu0 %v3980_v25  ;;  %v1889_v34 = vld [vmem:[#allocation9 + $0x1a28] sm:$0xff]  ;;  %v4422_v40 = vpack.c.bf16 %v1880_v36, %v1876_v29  ;;  %v4998_v42 = vpack.c.bf16 %v1882_v33, %v1878_v30  ;;  %v1922_v29 = vld [vmem:[#allocation9 + $0x1b30] sm:$0xff]  ;;  %v1931_v33 = vld [vmem:[#allocation9 + $0x1b78] sm:$0xff] }
 0x533   : > { %3445 = vmatprep.mubr.f32.mxu1 %v3980_v25  ;;  %v4424_v43 = vpack.c.bf16 %v1889_v34, %v1885_v41  ;;  %v1884_v25 = vld [vmem:[#allocation9 + $0x1a00] sm:$0xff]  ;;  %v1925_v36 = vld [vmem:[#allocation9 + $0x1b48] sm:$0xff] }
 0x534   : > { %4403 = vmatpush1.bf16.msra.mxu0 %v4402_v56  ;;  %v1888_v56 = vld [vmem:[#allocation9 + $0x1a20] sm:$0xff]  ;;  %v1929_v30 = vld [vmem:[#allocation9 + $0x1b68] sm:$0xff] }
 0x535   : > { %4979 = vmatpush1.bf16.msra.mxu1 %v4978_v6  ;;  %4405 = vmatprep.subr.bf16.mxu0 %v4404_v44  ;;  %v1886_v6 = vld [vmem:[#allocation9 + $0x1a10] sm:$0xff]  ;;  %v5000_v44 = vpack.c.bf16 %v1891_v39, %v1887_v35  ;;  %v4426_v55 = vpack.c.bf16 %v1888_v56, %v1884_v25  ;;  %v4444_v35 = vpack.c.bf16 %v1929_v30, %v1925_v36  ;;  %v1924_v39 = vld [vmem:[#allocation9 + $0x1b40] sm:$0xff]  ;;  %v1933_v56 = vld [vmem:[#allocation9 + $0x1b88] sm:$0xff] }
 0x536   : > { %4981 = vmatprep.subr.bf16.mxu1 %v4980_v49  ;;  %v1895_v49 = vld [vmem:[#allocation9 + $0x1a58] sm:$0xff]  ;;  %v5002_v52 = vpack.c.bf16 %v1890_v45, %v1886_v6  ;;  %v1930_v25 = vld [vmem:[#allocation9 + $0x1b70] sm:$0xff]  ;;  %v1937_v6 = vld [vmem:[#allocation9 + $0x1ba8] sm:$0xff] }
 0x537   : > { %v1939_v45 = vld [vmem:[#allocation9 + $0x1bb8] sm:$0xff]  ;;  %v991_v16 = vld [vmem:[#allocation2 + $0x20] sm:$0xff]  ;;  %v3981_v30 = vld [vmem:[%s6388_s16 + $0x30] sm:$0xff] }
 0x538   : > { %4407 = vmatpush1.bf16.msra.mxu0 %v4406_v15  ;;  %v1896_v15 = vld [vmem:[#allocation9 + $0x1a60] sm:$0xff]  ;;  %v1971_v36 = vld [vmem:[#allocation9 + $0x1cb8] sm:$0xff] }
 0x539   : > { %4983 = vmatpush1.bf16.msra.mxu1 %v4982_v5  ;;  %4409 = vmatprep.subr.bf16.mxu0 %v4408_v22  ;;  %v1894_v5 = vld [vmem:[#allocation9 + $0x1a50] sm:$0xff]  ;;  %v5004_v22 = vpack.c.bf16 %v1899_v50, %v1895_v49  ;;  %v4430_v51 = vpack.c.bf16 %v1896_v15, %v1892_v14  ;;  %v4448_v49 = vpack.c.bf16 %v1937_v6, %v1933_v56  ;;  %v1932_v50 = vld [vmem:[#allocation9 + $0x1b80] sm:$0xff]  ;;  %v1941_v15 = vld [vmem:[#allocation9 + $0x1bc8] sm:$0xff] }
 0x53a   : > { %4985 = vmatprep.subr.bf16.mxu1 %v4984_v46  ;;  %v1903_v46 = vld [vmem:[#allocation9 + $0x1a98] sm:$0xff]  ;;  %v5006_v58 = vpack.c.bf16 %v1898_v12, %v1894_v5  ;;  %v1938_v14 = vld [vmem:[#allocation9 + $0x1bb0] sm:$0xff]  ;;  %v1945_v5 = vld [vmem:[#allocation9 + $0x1be8] sm:$0xff] }
 0x53b   : > { %v1947_v12 = vld [vmem:[#allocation9 + $0x1bf8] sm:$0xff]  ;;  %v1977_v56 = vld [vmem:[#allocation9 + $0x1ce8] sm:$0xff] }
 0x53c   : > { %4411 = vmatpush1.bf16.msra.mxu0 %v4410_v13  ;;  %v1904_v13 = vld [vmem:[#allocation9 + $0x1aa0] sm:$0xff]  ;;  %v1975_v6 = vld [vmem:[#allocation9 + $0x1cd8] sm:$0xff] }
 0x53d   : > { %4987 = vmatpush1.bf16.msra.mxu1 %v4986_v38  ;;  %4413 = vmatprep.subr.bf16.mxu0 %v4412_v62  ;;  %v1902_v38 = vld [vmem:[#allocation9 + $0x1a90] sm:$0xff]  ;;  %v5008_v62 = vpack.c.bf16 %v1907_v57, %v1903_v46  ;;  %v4434_v2 = vpack.c.bf16 %v1904_v13, %v1900_v10  ;;  %v4452_v46 = vpack.c.bf16 %v1945_v5, %v1941_v15  ;;  %v1940_v57 = vld [vmem:[#allocation9 + $0x1bc0] sm:$0xff]  ;;  %v1949_v13 = vld [vmem:[#allocation9 + $0x1c08] sm:$0xff] }
 0x53e   : > { %4989 = vmatprep.subr.bf16.mxu1 %v4988_v59  ;;  %v1911_v59 = vld [vmem:[#allocation9 + $0x1ad8] sm:$0xff]  ;;  %v5010_v21 = vpack.c.bf16 %v1906_v63, %v1902_v38  ;;  %v1946_v10 = vld [vmem:[#allocation9 + $0x1bf0] sm:$0xff]  ;;  %v1953_v38 = vld [vmem:[#allocation9 + $0x1c28] sm:$0xff] }
 0x53f   : > { %v1955_v63 = vld [vmem:[#allocation9 + $0x1c38] sm:$0xff]  ;;  %v1981_v15 = vld [vmem:[#allocation9 + $0x1d08] sm:$0xff] }
 0x540   : > { %4415 = vmatpush1.bf16.msra.mxu0 %v4414_v8  ;;  %v1912_v8 = vld [vmem:[#allocation9 + $0x1ae0] sm:$0xff]  ;;  %v1985_v5 = vld [vmem:[#allocation9 + $0x1d28] sm:$0xff] }
 0x541   : > { %4991 = vmatpush1.bf16.msra.mxu1 %v4990_v9  ;;  %4417 = vmatprep.subr.bf16.mxu0 %v4416_v18  ;;  %v1910_v9 = vld [vmem:[#allocation9 + $0x1ad0] sm:$0xff]  ;;  %v5012_v18 = vpack.c.bf16 %v1915_v7, %v1911_v59  ;;  %v4438_v20 = vpack.c.bf16 %v1912_v8, %v1908_v61  ;;  %v4456_v59 = vpack.c.bf16 %v1953_v38, %v1949_v13  ;;  %v1948_v7 = vld [vmem:[#allocation9 + $0x1c00] sm:$0xff]  ;;  %v1957_v8 = vld [vmem:[#allocation9 + $0x1c48] sm:$0xff] }
 0x542   : > { %4993 = vmatprep.subr.bf16.mxu1 %v4992_v3  ;;  %v1919_v3 = vld [vmem:[#allocation9 + $0x1b18] sm:$0xff]  ;;  %v5014_v1 = vpack.c.bf16 %v1914_v11, %v1910_v9  ;;  %v1954_v61 = vld [vmem:[#allocation9 + $0x1c30] sm:$0xff]  ;;  %v1961_v9 = vld [vmem:[#allocation9 + $0x1c68] sm:$0xff] }
 0x543   : > { %v1963_v11 = vld [vmem:[#allocation9 + $0x1c78] sm:$0xff]  ;;  %v1989_v13 = vld [vmem:[#allocation9 + $0x1d48] sm:$0xff] }
 0x544   : > { %4419 = vmatpush1.bf16.msra.mxu0 %v4418_v27  ;;  %v1920_v27 = vld [vmem:[#allocation9 + $0x1b20] sm:$0xff]  ;;  %v1993_v38 = vld [vmem:[#allocation9 + $0x1d68] sm:$0xff] }
 0x545   : > { %4995 = vmatpush1.bf16.msra.mxu1 %v4994_v31  ;;  %4421 = vmatprep.subr.bf16.mxu0 %v4420_v28  ;;  %v1918_v31 = vld [vmem:[#allocation9 + $0x1b10] sm:$0xff]  ;;  %v5016_v28 = vpack.c.bf16 %v1923_v19, %v1919_v3  ;;  %v4442_v41 = vpack.c.bf16 %v1920_v27, %v1916_v24  ;;  %v4460_v19 = vpack.c.bf16 %v1961_v9, %v1957_v8  ;;  %v1997_v8 = vld [vmem:[#allocation9 + $0x1d88] sm:$0xff] }
 0x546   : > { %4997 = vmatprep.subr.bf16.mxu1 %v4996_v32  ;;  %v1927_v32 = vld [vmem:[#allocation9 + $0x1b58] sm:$0xff]  ;;  %v5018_v34 = vpack.c.bf16 %v1922_v29, %v1918_v31  ;;  %v1962_v27 = vld [vmem:[#allocation9 + $0x1c70] sm:$0xff]  ;;  %v1965_v31 = vld [vmem:[#allocation9 + $0x1c88] sm:$0xff] }
 0x547   : > { %v1967_v29 = vld [vmem:[#allocation9 + $0x1c98] sm:$0xff]  ;;  %v2001_v9 = vld [vmem:[#allocation9 + $0x1da8] sm:$0xff] }
 0x548   : > { %4423 = vmatpush1.bf16.msra.mxu0 %v4422_v40  ;;  %v1928_v40 = vld [vmem:[#allocation9 + $0x1b60] sm:$0xff] }
 0x549   : > { %4999 = vmatpush1.bf16.msra.mxu1 %v4998_v42  ;;  %4425 = vmatprep.subr.bf16.mxu0 %v4424_v43  ;;  %v1926_v42 = vld [vmem:[#allocation9 + $0x1b50] sm:$0xff]  ;;  %v5020_v43 = vpack.c.bf16 %v1931_v33, %v1927_v32  ;;  %v4446_v47 = vpack.c.bf16 %v1928_v40, %v1924_v39  ;;  %v1968_v39 = vld [vmem:[#allocation9 + $0x1ca0] sm:$0xff] }
 0x54a   : > { %5001 = vmatprep.subr.bf16.mxu1 %v5000_v44  ;;  %v1935_v44 = vld [vmem:[#allocation9 + $0x1b98] sm:$0xff]  ;;  %v5022_v48 = vpack.c.bf16 %v1930_v25, %v1926_v42  ;;  %v992_v33 = vld [vmem:[#allocation2 + $0x30] sm:$0xff]  ;;  %v5040_v42 = vpack.c.bf16 %v1971_v36, %v1967_v29  ;;  %v1973_v25 = vld [vmem:[#allocation9 + $0x1cc8] sm:$0xff] }
 0x54b   : > { %v1966_v40 = vld [vmem:[#allocation9 + $0x1c90] sm:$0xff]  ;;  %v2011_v29 = vld [vmem:[#allocation9 + $0x1df8] sm:$0xff] }
 0x54c   : > { %4427 = vmatpush1.bf16.msra.mxu0 %v4426_v55  ;;  %v1936_v55 = vld [vmem:[#allocation9 + $0x1ba0] sm:$0xff] }
 0x54d   : > { %5003 = vmatpush1.bf16.msra.mxu1 %v5002_v52  ;;  %4429 = vmatprep.subr.bf16.mxu0 %v4428_v53  ;;  %v1934_v52 = vld [vmem:[#allocation9 + $0x1b90] sm:$0xff]  ;;  %v5024_v53 = vpack.c.bf16 %v1939_v45, %v1935_v44  ;;  %v4450_v37 = vpack.c.bf16 %v1936_v55, %v1932_v50  ;;  %v1979_v44 = vld [vmem:[#allocation9 + $0x1cf8] sm:$0xff]  ;;  %v3982_v45 = vld [vmem:[%s6388_s16 + $0x21] sm:$0xff] }
 0x54e   : > { %5005 = vmatprep.subr.bf16.mxu1 %v5004_v22  ;;  %v1943_v22 = vld [vmem:[#allocation9 + $0x1bd8] sm:$0xff]  ;;  %v5026_v54 = vpack.c.bf16 %v1938_v14, %v1934_v52  ;;  %v1972_v50 = vld [vmem:[#allocation9 + $0x1cc0] sm:$0xff]  ;;  %v1974_v52 = vld [vmem:[#allocation9 + $0x1cd0] sm:$0xff] }
 0x54f   : > { %v1976_v55 = vld [vmem:[#allocation9 + $0x1ce0] sm:$0xff]  ;;  %v1978_v14 = vld [vmem:[#allocation9 + $0x1cf0] sm:$0xff] }
 0x550   : > { %4431 = vmatpush1.bf16.msra.mxu0 %v4430_v51  ;;  %v1944_v51 = vld [vmem:[#allocation9 + $0x1be0] sm:$0xff] }
 0x551   : > { %5007 = vmatpush1.bf16.msra.mxu1 %v5006_v58  ;;  %4433 = vmatprep.subr.bf16.mxu0 %v4432_v60  ;;  %v1942_v58 = vld [vmem:[#allocation9 + $0x1bd0] sm:$0xff]  ;;  %v5028_v60 = vpack.c.bf16 %v1947_v12, %v1943_v22  ;;  %v4454_v17 = vpack.c.bf16 %v1944_v51, %v1940_v57  ;;  %v1983_v22 = vld [vmem:[#allocation9 + $0x1d18] sm:$0xff]  ;;  %v1980_v57 = vld [vmem:[#allocation9 + $0x1d00] sm:$0xff] }
 0x552   : > { %5009 = vmatprep.subr.bf16.mxu1 %v5008_v62  ;;  %v1951_v62 = vld [vmem:[#allocation9 + $0x1c18] sm:$0xff]  ;;  %v5030_v0 = vpack.c.bf16 %v1946_v10, %v1942_v58  ;;  %v1984_v51 = vld [vmem:[#allocation9 + $0x1d20] sm:$0xff]  ;;  %v1982_v58 = vld [vmem:[#allocation9 + $0x1d10] sm:$0xff] }
 0x553   : > { %v1987_v12 = vld [vmem:[#allocation9 + $0x1d38] sm:$0xff]  ;;  %v1986_v10 = vld [vmem:[#allocation9 + $0x1d30] sm:$0xff] }
 0x554   : > { %4435 = vmatpush1.bf16.msra.mxu0 %v4434_v2  ;;  %v1952_v2 = vld [vmem:[#allocation9 + $0x1c20] sm:$0xff] }
 0x555   : > { %5011 = vmatpush1.bf16.msra.mxu1 %v5010_v21  ;;  %4437 = vmatprep.subr.bf16.mxu0 %v4436_v4  ;;  %v1950_v21 = vld [vmem:[#allocation9 + $0x1c10] sm:$0xff]  ;;  %v5032_v4 = vpack.c.bf16 %v1955_v63, %v1951_v62  ;;  %v4458_v26 = vpack.c.bf16 %v1952_v2, %v1948_v7  ;;  %v1991_v62 = vld [vmem:[#allocation9 + $0x1d58] sm:$0xff]  ;;  %v1988_v7 = vld [vmem:[#allocation9 + $0x1d40] sm:$0xff] }
 0x556   : > { %5013 = vmatprep.subr.bf16.mxu1 %v5012_v18  ;;  %v1959_v18 = vld [vmem:[#allocation9 + $0x1c58] sm:$0xff]  ;;  %v5034_v3 = vpack.c.bf16 %v1954_v61, %v1950_v21  ;;  %v1992_v2 = vld [vmem:[#allocation9 + $0x1d60] sm:$0xff]  ;;  %v1990_v21 = vld [vmem:[#allocation9 + $0x1d50] sm:$0xff] }
 0x557   : > { %v5036_v24 = vpack.c.bf16 %v1963_v11, %v1959_v18  ;;  %v1995_v63 = vld [vmem:[#allocation9 + $0x1d78] sm:$0xff]  ;;  %v1994_v61 = vld [vmem:[#allocation9 + $0x1d70] sm:$0xff] }
 0x558   : > { %4439 = vmatpush1.bf16.msra.mxu0 %v4438_v20  ;;  %v1956_v20 = vld [vmem:[#allocation9 + $0x1c40] sm:$0xff]  ;;  %v1999_v18 = vld [vmem:[#allocation9 + $0x1d98] sm:$0xff] }
 0x559   : > { %5015 = vmatpush1.bf16.msra.mxu1 %v5014_v1  ;;  %4441 = vmatprep.subr.bf16.mxu0 %v4440_v23  ;;  %v1960_v1 = vld [vmem:[#allocation9 + $0x1c60] sm:$0xff]  ;;  %v1958_v23 = vld [vmem:[#allocation9 + $0x1c50] sm:$0xff]  ;;  %v2003_v11 = vld [vmem:[#allocation9 + $0x1db8] sm:$0xff] }
 0x55a   : > { %5017 = vmatprep.subr.bf16.mxu1 %v5016_v28  ;;  %v1969_v28 = vld [vmem:[#allocation9 + $0x1ca8] sm:$0xff]  ;;  %v4462_v32 = vpack.c.bf16 %v1960_v1, %v1956_v20  ;;  %v2000_v20 = vld [vmem:[#allocation9 + $0x1da0] sm:$0xff]  ;;  %v1998_v1 = vld [vmem:[#allocation9 + $0x1d90] sm:$0xff] }
 0x55c   : > { %4443 = vmatpush1.bf16.msra.mxu0 %v4442_v41  ;;  %v5038_v41 = vpack.c.bf16 %v1962_v27, %v1958_v23  ;;  %v5056_v23 = vpack.c.bf16 %v2003_v11, %v1999_v18  ;;  %v2005_v27 = vld [vmem:[#allocation9 + $0x1dc8] sm:$0xff]  ;;  %v2036_v11 = vld [vmem:[#allocation9 + $0x1ec0] sm:$0xff] }
 0x55d   : > { %5019 = vmatpush1.bf16.msra.mxu1 %v5018_v34  ;;  %4445 = vmatprep.subr.bf16.mxu0 %v4444_v35  ;;  %v4464_v34 = vpack.c.bf16 %v1969_v28, %v1965_v31  ;;  %v1964_v35 = vld [vmem:[#allocation9 + $0x1c80] sm:$0xff]  ;;  %v2009_v31 = vld [vmem:[#allocation9 + $0x1de8] sm:$0xff]  ;;  %v2007_v28 = vld [vmem:[#allocation9 + $0x1dd8] sm:$0xff] }
 0x55e   : > { %5021 = vmatprep.subr.bf16.mxu1 %v5020_v43  ;;  %v1970_v43 = vld [vmem:[#allocation9 + $0x1cb0] sm:$0xff] }
 0x560   : > { %4447 = vmatpush1.bf16.msra.mxu0 %v4446_v47  ;;  %v4466_v47 = vpack.c.bf16 %v1968_v39, %v1964_v35  ;;  %v5060_v35 = vpack.c.bf16 %v2011_v29, %v2007_v28  ;;  %v2010_v39 = vld [vmem:[#allocation9 + $0x1df0] sm:$0xff]  ;;  %v2044_v29 = vld [vmem:[#allocation9 + $0x1f00] sm:$0xff] }
 0x561   : > { %5023 = vmatpush1.bf16.msra.mxu1 %v5022_v48  ;;  %4449 = vmatprep.subr.bf16.mxu0 %v4448_v49  ;;  %v5042_v48 = vpack.c.bf16 %v1970_v43, %v1966_v40  ;;  %v4468_v49 = vpack.c.bf16 %v1977_v56, %v1973_v25  ;;  %v2013_v40 = vld [vmem:[#allocation9 + $0x1e08] sm:$0xff]  ;;  %v2015_v43 = vld [vmem:[#allocation9 + $0x1e18] sm:$0xff] }
 0x562   : > { %5025 = vmatprep.subr.bf16.mxu1 %v5024_v53  ;;  %v5044_v53 = vpack.c.bf16 %v1979_v44, %v1975_v6  ;;  %v2019_v25 = vld [vmem:[#allocation9 + $0x1e38] sm:$0xff] }
 0x564   : > { %4451 = vmatpush1.bf16.msra.mxu0 %v4450_v37  ;;  %v4470_v37 = vpack.c.bf16 %v1976_v55, %v1972_v50  ;;  %v2018_v50 = vld [vmem:[#allocation9 + $0x1e30] sm:$0xff]  ;;  %v2021_v55 = vld [vmem:[#allocation9 + $0x1e48] sm:$0xff] }
 0x565   : > { %5027 = vmatpush1.bf16.msra.mxu1 %v5026_v54  ;;  %4453 = vmatprep.subr.bf16.mxu0 %v4452_v46  ;;  %v5046_v54 = vpack.c.bf16 %v1978_v14, %v1974_v52  ;;  %v4472_v46 = vpack.c.bf16 %v1985_v5, %v1981_v15  ;;  %v2025_v52 = vld [vmem:[#allocation9 + $0x1e68] sm:$0xff]  ;;  %v2027_v14 = vld [vmem:[#allocation9 + $0x1e78] sm:$0xff] }
 0x566   : > { %5029 = vmatprep.subr.bf16.mxu1 %v5028_v60  ;;  %v5048_v60 = vpack.c.bf16 %v1987_v12, %v1983_v22  ;;  %v4492_v22 = vpack.c.bf16 %v2025_v52, %v2021_v55  ;;  %v2020_v12 = vld [vmem:[#allocation9 + $0x1e40] sm:$0xff] }
 0x568   : > { %4455 = vmatpush1.bf16.msra.mxu0 %v4454_v17  ;;  %v4474_v17 = vpack.c.bf16 %v1984_v51, %v1980_v57  ;;  %v2026_v57 = vld [vmem:[#allocation9 + $0x1e70] sm:$0xff]  ;;  %v2029_v51 = vld [vmem:[#allocation9 + $0x1e88] sm:$0xff] }
 0x569   : > { %5031 = vmatpush1.bf16.msra.mxu1 %v5030_v0  ;;  %4457 = vmatprep.subr.bf16.mxu0 %v4456_v59  ;;  %v5050_v0 = vpack.c.bf16 %v1986_v10, %v1982_v58  ;;  %v4476_v59 = vpack.c.bf16 %v1993_v38, %v1989_v13  ;;  %v2033_v58 = vld [vmem:[#allocation9 + $0x1ea8] sm:$0xff]  ;;  %v2035_v10 = vld [vmem:[#allocation9 + $0x1eb8] sm:$0xff] }
 0x56a   : > { %5033 = vmatprep.subr.bf16.mxu1 %v5032_v4  ;;  %v5052_v4 = vpack.c.bf16 %v1995_v63, %v1991_v62  ;;  %v4496_v62 = vpack.c.bf16 %v2033_v58, %v2029_v51  ;;  %v2028_v63 = vld [vmem:[#allocation9 + $0x1e80] sm:$0xff] }
 0x56b   : > { %2753 = vmatmul.mubr.f32.vlgmr.msra.gmra.mrb[0].mxu0 %v991_v16 }
 0x56c   : > { %4459 = vmatpush1.bf16.msra.mxu0 %v4458_v26  ;;  %3446 = vmatmul.mubr.f32.vlgmr.msra.gmra.mrb[0].mxu1 %v991_v16  ;;  %v4478_v16 = vpack.c.bf16 %v1992_v2, %v1988_v7  ;;  %v5054_v26 = vpack.c.bf16 %v1994_v61, %v1990_v21  ;;  %v2034_v7 = vld [vmem:[#allocation9 + $0x1eb0] sm:$0xff]  ;;  %v2037_v2 = vld [vmem:[#allocation9 + $0x1ec8] sm:$0xff]  ;;  %v2043_v61 = vld [vmem:[#allocation9 + $0x1ef8] sm:$0xff] }
 0x56d   : > { %5035 = vmatpush1.bf16.msra.mxu1 %v5034_v3  ;;  %4461 = vmatprep.subr.bf16.mxu0 %v4460_v19  ;;  %v4480_v3 = vpack.c.bf16 %v2001_v9, %v1997_v8  ;;  %v1996_v19 = vld [vmem:[#allocation9 + $0x1d80] sm:$0xff]  ;;  %v2041_v21 = vld [vmem:[#allocation9 + $0x1ee8] sm:$0xff] }
 0x56e   : > { %5037 = vmatprep.subr.bf16.mxu1 %v5036_v24  ;;  %2758 = vmatprep.mubr.f32.mxu0 %v3981_v30  ;;  %v2002_v24 = vld [vmem:[#allocation9 + $0x1db0] sm:$0xff]  ;;  %v4482_v36 = vpack.c.bf16 %v2000_v20, %v1996_v19  ;;  %v4500_v18 = vpack.c.bf16 %v2041_v21, %v2037_v2  ;;  %v2045_v20 = vld [vmem:[#allocation9 + $0x1f08] sm:$0xff] }
 0x56f   : > { %3451 = vmatprep.mubr.f32.mxu1 %v3981_v30  ;;  %2759 = vmatmul.mubr.f32.gmra.mrb[2].mxu0 %v992_v33  ;;  %v5058_v30 = vpack.c.bf16 %v2002_v24, %v1998_v1  ;;  %v2042_v19 = vld [vmem:[#allocation9 + $0x1ef0] sm:$0xff]  ;;  %v2049_v1 = vld [vmem:[#allocation9 + $0x1f28] sm:$0xff]  ;;  %v2051_v24 = vld [vmem:[#allocation9 + $0x1f38] sm:$0xff] }
 0x570   : > { %4463 = vmatpush1.bf16.msra.mxu0 %v4462_v32  ;;  %3452 = vmatmul.mubr.f32.gmra.mrb[2].mxu1 %v992_v33  ;;  %v4484_v32 = vpack.c.bf16 %v2009_v31, %v2005_v27  ;;  %v2004_v33 = vld [vmem:[#allocation9 + $0x1dc0] sm:$0xff]  ;;  %v4504_v28 = vpack.c.bf16 %v2049_v1, %v2045_v20 }
 0x571   : > { %5039 = vmatpush1.bf16.msra.mxu1 %v5038_v41  ;;  %4465 = vmatprep.subr.bf16.mxu0 %v4464_v34  ;;  %v2008_v41 = vld [vmem:[#allocation9 + $0x1de0] sm:$0xff]  ;;  %v2006_v34 = vld [vmem:[#allocation9 + $0x1dd0] sm:$0xff] }
 0x572   : > { %5041 = vmatprep.subr.bf16.mxu1 %v5040_v42  ;;  %2829 = vmatprep.mubr.f32.mxu0 %v3982_v45  ;;  %v2017_v42 = vld [vmem:[#allocation9 + $0x1e28] sm:$0xff]  ;;  %v4486_v56 = vpack.c.bf16 %v2008_v41, %v2004_v33  ;;  %v5062_v6 = vpack.c.bf16 %v2010_v39, %v2006_v34  ;;  %v2050_v33 = vld [vmem:[#allocation9 + $0x1f30] sm:$0xff]  ;;  %v2059_v39 = vld [vmem:[#allocation9 + $0x1f78] sm:$0xff] }
 0x573   : > { %3522 = vmatprep.mubr.f32.mxu1 %v3982_v45  ;;  %v4488_v44 = vpack.c.bf16 %v2017_v42, %v2013_v40  ;;  %v2012_v45 = vld [vmem:[#allocation9 + $0x1e00] sm:$0xff]  ;;  %v2053_v41 = vld [vmem:[#allocation9 + $0x1f48] sm:$0xff] }
 0x574   : > { %4467 = vmatpush1.bf16.msra.mxu0 %v4466_v47  ;;  %v2016_v47 = vld [vmem:[#allocation9 + $0x1e20] sm:$0xff]  ;;  %v2057_v34 = vld [vmem:[#allocation9 + $0x1f68] sm:$0xff] }
 0x575   : > { %5043 = vmatpush1.bf16.msra.mxu1 %v5042_v48  ;;  %4469 = vmatprep.subr.bf16.mxu0 %v4468_v49  ;;  %v2014_v48 = vld [vmem:[#allocation9 + $0x1e10] sm:$0xff]  ;;  %v5064_v49 = vpack.c.bf16 %v2019_v25, %v2015_v43  ;;  %v4490_v15 = vpack.c.bf16 %v2016_v47, %v2012_v45  ;;  %v4508_v43 = vpack.c.bf16 %v2057_v34, %v2053_v41  ;;  %v2052_v25 = vld [vmem:[#allocation9 + $0x1f40] sm:$0xff]  ;;  %v2061_v47 = vld [vmem:[#allocation9 + $0x1f88] sm:$0xff] }
 0x576   : > { %5045 = vmatprep.subr.bf16.mxu1 %v5044_v53  ;;  %v2023_v53 = vld [vmem:[#allocation9 + $0x1e58] sm:$0xff]  ;;  %v5066_v5 = vpack.c.bf16 %v2018_v50, %v2014_v48  ;;  %v2058_v45 = vld [vmem:[#allocation9 + $0x1f70] sm:$0xff]  ;;  %v2065_v48 = vld [vmem:[#allocation9 + $0x1fa8] sm:$0xff] }
 0x577   : > { %v2067_v50 = vld [vmem:[#allocation9 + $0x1fb8] sm:$0xff]  ;;  %v1000_v20 = vld [vmem:[#allocation2 + $0x21] sm:$0xff] }
 0x578   : > { %4471 = vmatpush1.bf16.msra.mxu0 %v4470_v37  ;;  %v2024_v37 = vld [vmem:[#allocation9 + $0x1e60] sm:$0xff]  ;;  %v2099_v41 = vld [vmem:[#allocation9 + $0x20b8] sm:$0xff] }
 0x579   : > { %5047 = vmatpush1.bf16.msra.mxu1 %v5046_v54  ;;  %4473 = vmatprep.subr.bf16.mxu0 %v4472_v46  ;;  %v2022_v54 = vld [vmem:[#allocation9 + $0x1e50] sm:$0xff]  ;;  %v5068_v46 = vpack.c.bf16 %v2027_v14, %v2023_v53  ;;  %v4494_v13 = vpack.c.bf16 %v2024_v37, %v2020_v12  ;;  %v4512_v53 = vpack.c.bf16 %v2065_v48, %v2061_v47  ;;  %v2060_v14 = vld [vmem:[#allocation9 + $0x1f80] sm:$0xff]  ;;  %v2069_v37 = vld [vmem:[#allocation9 + $0x1fc8] sm:$0xff] }
 0x57a   : > { %5049 = vmatprep.subr.bf16.mxu1 %v5048_v60  ;;  %v2031_v60 = vld [vmem:[#allocation9 + $0x1e98] sm:$0xff]  ;;  %v5070_v38 = vpack.c.bf16 %v2026_v57, %v2022_v54  ;;  %v2066_v12 = vld [vmem:[#allocation9 + $0x1fb0] sm:$0xff]  ;;  %v2073_v54 = vld [vmem:[#allocation9 + $0x1fe8] sm:$0xff] }
 0x57b   : > { %v2075_v57 = vld [vmem:[#allocation9 + $0x1ff8] sm:$0xff]  ;;  %v2105_v47 = vld [vmem:[#allocation9 + $0x20e8] sm:$0xff] }
 0x57c   : > { %4475 = vmatpush1.bf16.msra.mxu0 %v4474_v17  ;;  %v2032_v17 = vld [vmem:[#allocation9 + $0x1ea0] sm:$0xff]  ;;  %v3983_v34 = vld [vmem:[%s6388_s16 + $0x31] sm:$0xff] }
 0x57d   : > { %5051 = vmatpush1.bf16.msra.mxu1 %v5050_v0  ;;  %4477 = vmatprep.subr.bf16.mxu0 %v4476_v59  ;;  %v2030_v0 = vld [vmem:[#allocation9 + $0x1e90] sm:$0xff]  ;;  %v5072_v59 = vpack.c.bf16 %v2035_v10, %v2031_v60  ;;  %v4498_v8 = vpack.c.bf16 %v2032_v17, %v2028_v63  ;;  %v4516_v60 = vpack.c.bf16 %v2073_v54, %v2069_v37  ;;  %v2068_v10 = vld [vmem:[#allocation9 + $0x1fc0] sm:$0xff]  ;;  %v2077_v17 = vld [vmem:[#allocation9 + $0x2008] sm:$0xff] }
 0x57e   : > { %5053 = vmatprep.subr.bf16.mxu1 %v5052_v4  ;;  %v2039_v4 = vld [vmem:[#allocation9 + $0x1ed8] sm:$0xff]  ;;  %v5074_v9 = vpack.c.bf16 %v2034_v7, %v2030_v0  ;;  %v2074_v63 = vld [vmem:[#allocation9 + $0x1ff0] sm:$0xff]  ;;  %v2081_v0 = vld [vmem:[#allocation9 + $0x2028] sm:$0xff] }
 0x57f   : > { %v2083_v7 = vld [vmem:[#allocation9 + $0x2038] sm:$0xff]  ;;  %v2109_v37 = vld [vmem:[#allocation9 + $0x2108] sm:$0xff] }
 0x580   : > { %4479 = vmatpush1.bf16.msra.mxu0 %v4478_v16  ;;  %v2040_v16 = vld [vmem:[#allocation9 + $0x1ee0] sm:$0xff]  ;;  %v2103_v48 = vld [vmem:[#allocation9 + $0x20d8] sm:$0xff]  ;;  %v2113_v54 = vld [vmem:[#allocation9 + $0x2128] sm:$0xff] }
 0x581   : > { %5055 = vmatpush1.bf16.msra.mxu1 %v5054_v26  ;;  %4481 = vmatprep.subr.bf16.mxu0 %v4480_v3  ;;  %v2038_v26 = vld [vmem:[#allocation9 + $0x1ed0] sm:$0xff]  ;;  %v5076_v3 = vpack.c.bf16 %v2043_v61, %v2039_v4  ;;  %v4502_v27 = vpack.c.bf16 %v2040_v16, %v2036_v11  ;;  %v4520_v4 = vpack.c.bf16 %v2081_v0, %v2077_v17  ;;  %v2076_v61 = vld [vmem:[#allocation9 + $0x2000] sm:$0xff]  ;;  %v2085_v16 = vld [vmem:[#allocation9 + $0x2048] sm:$0xff] }
 0x582   : > { %5057 = vmatprep.subr.bf16.mxu1 %v5056_v23  ;;  %v2047_v23 = vld [vmem:[#allocation9 + $0x1f18] sm:$0xff]  ;;  %v5078_v31 = vpack.c.bf16 %v2042_v19, %v2038_v26  ;;  %v2082_v11 = vld [vmem:[#allocation9 + $0x2030] sm:$0xff]  ;;  %v2089_v26 = vld [vmem:[#allocation9 + $0x2068] sm:$0xff] }
 0x583   : > { %v2091_v19 = vld [vmem:[#allocation9 + $0x2078] sm:$0xff]  ;;  %v2117_v17 = vld [vmem:[#allocation9 + $0x2148] sm:$0xff] }
 0x584   : > { %4483 = vmatpush1.bf16.msra.mxu0 %v4482_v36  ;;  %v2048_v36 = vld [vmem:[#allocation9 + $0x1f20] sm:$0xff]  ;;  %v2121_v0 = vld [vmem:[#allocation9 + $0x2168] sm:$0xff] }
 0x585   : > { %5059 = vmatpush1.bf16.msra.mxu1 %v5058_v30  ;;  %4485 = vmatprep.subr.bf16.mxu0 %v4484_v32  ;;  %v2046_v30 = vld [vmem:[#allocation9 + $0x1f10] sm:$0xff]  ;;  %v5080_v32 = vpack.c.bf16 %v2051_v24, %v2047_v23  ;;  %v4506_v40 = vpack.c.bf16 %v2048_v36, %v2044_v29  ;;  %v4524_v24 = vpack.c.bf16 %v2089_v26, %v2085_v16  ;;  %v2125_v16 = vld [vmem:[#allocation9 + $0x2188] sm:$0xff] }
 0x586   : > { %5061 = vmatprep.subr.bf16.mxu1 %v5060_v35  ;;  %v2055_v35 = vld [vmem:[#allocation9 + $0x1f58] sm:$0xff]  ;;  %v5082_v42 = vpack.c.bf16 %v2050_v33, %v2046_v30  ;;  %v2090_v36 = vld [vmem:[#allocation9 + $0x2070] sm:$0xff]  ;;  %v2093_v30 = vld [vmem:[#allocation9 + $0x2088] sm:$0xff] }
 0x587   : > { %v2095_v33 = vld [vmem:[#allocation9 + $0x2098] sm:$0xff]  ;;  %v2129_v26 = vld [vmem:[#allocation9 + $0x21a8] sm:$0xff] }
 0x588   : > { %4487 = vmatpush1.bf16.msra.mxu0 %v4486_v56  ;;  %v2056_v56 = vld [vmem:[#allocation9 + $0x1f60] sm:$0xff] }
 0x589   : > { %5063 = vmatpush1.bf16.msra.mxu1 %v5062_v6  ;;  %4489 = vmatprep.subr.bf16.mxu0 %v4488_v44  ;;  %v2054_v6 = vld [vmem:[#allocation9 + $0x1f50] sm:$0xff]  ;;  %v5084_v44 = vpack.c.bf16 %v2059_v39, %v2055_v35  ;;  %v4510_v55 = vpack.c.bf16 %v2056_v56, %v2052_v25  ;;  %v2096_v25 = vld [vmem:[#allocation9 + $0x20a0] sm:$0xff] }
 0x58a   : > { %5065 = vmatprep.subr.bf16.mxu1 %v5064_v49  ;;  %v2063_v49 = vld [vmem:[#allocation9 + $0x1f98] sm:$0xff]  ;;  %v5086_v52 = vpack.c.bf16 %v2058_v45, %v2054_v6  ;;  %v2094_v56 = vld [vmem:[#allocation9 + $0x2090] sm:$0xff]  ;;  %v5104_v6 = vpack.c.bf16 %v2099_v41, %v2095_v33  ;;  %v2101_v45 = vld [vmem:[#allocation9 + $0x20c8] sm:$0xff] }
 0x58b   : > { %v1001_v39 = vld [vmem:[#allocation2 + $0x31] sm:$0xff] }
 0x58c   : > { %4491 = vmatpush1.bf16.msra.mxu0 %v4490_v15  ;;  %v2064_v15 = vld [vmem:[#allocation9 + $0x1fa0] sm:$0xff]  ;;  %v2139_v33 = vld [vmem:[#allocation9 + $0x21f8] sm:$0xff] }
 0x58d   : > { %5067 = vmatpush1.bf16.msra.mxu1 %v5066_v5  ;;  %4493 = vmatprep.subr.bf16.mxu0 %v4492_v22  ;;  %v2062_v5 = vld [vmem:[#allocation9 + $0x1f90] sm:$0xff]  ;;  %v5088_v22 = vpack.c.bf16 %v2067_v50, %v2063_v49  ;;  %v4514_v51 = vpack.c.bf16 %v2064_v15, %v2060_v14  ;;  %v2107_v49 = vld [vmem:[#allocation9 + $0x20f8] sm:$0xff]  ;;  %v3984_v50 = vld [vmem:[%s6388_s16 + $0x22] sm:$0xff] }
 0x58e   : > { %5069 = vmatprep.subr.bf16.mxu1 %v5068_v46  ;;  %v2071_v46 = vld [vmem:[#allocation9 + $0x1fd8] sm:$0xff]  ;;  %v5090_v58 = vpack.c.bf16 %v2066_v12, %v2062_v5  ;;  %v2100_v14 = vld [vmem:[#allocation9 + $0x20c0] sm:$0xff]  ;;  %v2102_v5 = vld [vmem:[#allocation9 + $0x20d0] sm:$0xff] }
 0x58f   : > { %v2104_v15 = vld [vmem:[#allocation9 + $0x20e0] sm:$0xff]  ;;  %v2106_v12 = vld [vmem:[#allocation9 + $0x20f0] sm:$0xff] }
 0x590   : > { %4495 = vmatpush1.bf16.msra.mxu0 %v4494_v13  ;;  %v2072_v13 = vld [vmem:[#allocation9 + $0x1fe0] sm:$0xff] }
 0x591   : > { %5071 = vmatpush1.bf16.msra.mxu1 %v5070_v38  ;;  %4497 = vmatprep.subr.bf16.mxu0 %v4496_v62  ;;  %v2070_v38 = vld [vmem:[#allocation9 + $0x1fd0] sm:$0xff]  ;;  %v5092_v62 = vpack.c.bf16 %v2075_v57, %v2071_v46  ;;  %v4518_v2 = vpack.c.bf16 %v2072_v13, %v2068_v10  ;;  %v2111_v46 = vld [vmem:[#allocation9 + $0x2118] sm:$0xff]  ;;  %v2108_v10 = vld [vmem:[#allocation9 + $0x2100] sm:$0xff] }
 0x592   : > { %5073 = vmatprep.subr.bf16.mxu1 %v5072_v59  ;;  %v2079_v59 = vld [vmem:[#allocation9 + $0x2018] sm:$0xff]  ;;  %v5094_v21 = vpack.c.bf16 %v2074_v63, %v2070_v38  ;;  %v2112_v13 = vld [vmem:[#allocation9 + $0x2120] sm:$0xff]  ;;  %v2110_v38 = vld [vmem:[#allocation9 + $0x2110] sm:$0xff] }
 0x593   : > { %v2115_v57 = vld [vmem:[#allocation9 + $0x2138] sm:$0xff]  ;;  %v2114_v63 = vld [vmem:[#allocation9 + $0x2130] sm:$0xff] }
 0x594   : > { %4499 = vmatpush1.bf16.msra.mxu0 %v4498_v8  ;;  %v2080_v8 = vld [vmem:[#allocation9 + $0x2020] sm:$0xff] }
 0x595   : > { %5075 = vmatpush1.bf16.msra.mxu1 %v5074_v9  ;;  %4501 = vmatprep.subr.bf16.mxu0 %v4500_v18  ;;  %v2078_v9 = vld [vmem:[#allocation9 + $0x2010] sm:$0xff]  ;;  %v5096_v18 = vpack.c.bf16 %v2083_v7, %v2079_v59  ;;  %v4522_v1 = vpack.c.bf16 %v2080_v8, %v2076_v61  ;;  %v2119_v59 = vld [vmem:[#allocation9 + $0x2158] sm:$0xff]  ;;  %v2116_v61 = vld [vmem:[#allocation9 + $0x2140] sm:$0xff] }
 0x596   : > { %5077 = vmatprep.subr.bf16.mxu1 %v5076_v3  ;;  %v2087_v3 = vld [vmem:[#allocation9 + $0x2058] sm:$0xff]  ;;  %v5098_v23 = vpack.c.bf16 %v2082_v11, %v2078_v9  ;;  %v2120_v8 = vld [vmem:[#allocation9 + $0x2160] sm:$0xff]  ;;  %v2118_v9 = vld [vmem:[#allocation9 + $0x2150] sm:$0xff] }
 0x597   : > { %v5100_v29 = vpack.c.bf16 %v2091_v19, %v2087_v3  ;;  %v2123_v7 = vld [vmem:[#allocation9 + $0x2178] sm:$0xff]  ;;  %v2122_v11 = vld [vmem:[#allocation9 + $0x2170] sm:$0xff] }
 0x598   : > { %4503 = vmatpush1.bf16.msra.mxu0 %v4502_v27  ;;  %v2084_v27 = vld [vmem:[#allocation9 + $0x2040] sm:$0xff]  ;;  %v2127_v3 = vld [vmem:[#allocation9 + $0x2198] sm:$0xff] }
 0x599   : > { %5079 = vmatpush1.bf16.msra.mxu1 %v5078_v31  ;;  %4505 = vmatprep.subr.bf16.mxu0 %v4504_v28  ;;  %v2088_v31 = vld [vmem:[#allocation9 + $0x2060] sm:$0xff]  ;;  %v2086_v28 = vld [vmem:[#allocation9 + $0x2050] sm:$0xff]  ;;  %v2131_v19 = vld [vmem:[#allocation9 + $0x21b8] sm:$0xff] }
 0x59a   : > { %5081 = vmatprep.subr.bf16.mxu1 %v5080_v32  ;;  %v2097_v32 = vld [vmem:[#allocation9 + $0x20a8] sm:$0xff]  ;;  %v4526_v35 = vpack.c.bf16 %v2088_v31, %v2084_v27  ;;  %v2128_v27 = vld [vmem:[#allocation9 + $0x21a0] sm:$0xff]  ;;  %v2126_v31 = vld [vmem:[#allocation9 + $0x2190] sm:$0xff] }
 0x59c   : > { %4507 = vmatpush1.bf16.msra.mxu0 %v4506_v40  ;;  %v5102_v40 = vpack.c.bf16 %v2090_v36, %v2086_v28  ;;  %v5120_v28 = vpack.c.bf16 %v2131_v19, %v2127_v3  ;;  %v2133_v36 = vld [vmem:[#allocation9 + $0x21c8] sm:$0xff]  ;;  %v2164_v19 = vld [vmem:[#allocation9 + $0x22c0] sm:$0xff] }
 0x59d   : > { %5083 = vmatpush1.bf16.msra.mxu1 %v5082_v42  ;;  %4509 = vmatprep.subr.bf16.mxu0 %v4508_v43  ;;  %v4528_v42 = vpack.c.bf16 %v2097_v32, %v2093_v30  ;;  %v2092_v43 = vld [vmem:[#allocation9 + $0x2080] sm:$0xff]  ;;  %v2137_v30 = vld [vmem:[#allocation9 + $0x21e8] sm:$0xff]  ;;  %v2135_v32 = vld [vmem:[#allocation9 + $0x21d8] sm:$0xff] }
 0x59e   : > { %5085 = vmatprep.subr.bf16.mxu1 %v5084_v44  ;;  %v2098_v44 = vld [vmem:[#allocation9 + $0x20b0] sm:$0xff] }
 0x5a0   : > { %4511 = vmatpush1.bf16.msra.mxu0 %v4510_v55  ;;  %v4530_v55 = vpack.c.bf16 %v2096_v25, %v2092_v43  ;;  %v5124_v43 = vpack.c.bf16 %v2139_v33, %v2135_v32  ;;  %v2138_v25 = vld [vmem:[#allocation9 + $0x21f0] sm:$0xff]  ;;  %v2172_v33 = vld [vmem:[#allocation9 + $0x2300] sm:$0xff] }
 0x5a1   : > { %5087 = vmatpush1.bf16.msra.mxu1 %v5086_v52  ;;  %4513 = vmatprep.subr.bf16.mxu0 %v4512_v53  ;;  %v5106_v52 = vpack.c.bf16 %v2098_v44, %v2094_v56  ;;  %v4532_v53 = vpack.c.bf16 %v2105_v47, %v2101_v45  ;;  %v2141_v56 = vld [vmem:[#allocation9 + $0x2208] sm:$0xff]  ;;  %v2143_v44 = vld [vmem:[#allocation9 + $0x2218] sm:$0xff] }
 0x5a2   : > { %5089 = vmatprep.subr.bf16.mxu1 %v5088_v22  ;;  %v5108_v22 = vpack.c.bf16 %v2107_v49, %v2103_v48  ;;  %v2147_v45 = vld [vmem:[#allocation9 + $0x2238] sm:$0xff] }
 0x5a4   : > { %4515 = vmatpush1.bf16.msra.mxu0 %v4514_v51  ;;  %v4534_v51 = vpack.c.bf16 %v2104_v15, %v2100_v14  ;;  %v2146_v14 = vld [vmem:[#allocation9 + $0x2230] sm:$0xff]  ;;  %v2149_v15 = vld [vmem:[#allocation9 + $0x2248] sm:$0xff] }
 0x5a5   : > { %5091 = vmatpush1.bf16.msra.mxu1 %v5090_v58  ;;  %4517 = vmatprep.subr.bf16.mxu0 %v4516_v60  ;;  %v5110_v58 = vpack.c.bf16 %v2106_v12, %v2102_v5  ;;  %v4536_v60 = vpack.c.bf16 %v2113_v54, %v2109_v37  ;;  %v2153_v5 = vld [vmem:[#allocation9 + $0x2268] sm:$0xff]  ;;  %v2155_v12 = vld [vmem:[#allocation9 + $0x2278] sm:$0xff] }
 0x5a6   : > { %5093 = vmatprep.subr.bf16.mxu1 %v5092_v62  ;;  %v5112_v62 = vpack.c.bf16 %v2115_v57, %v2111_v46  ;;  %v4556_v46 = vpack.c.bf16 %v2153_v5, %v2149_v15  ;;  %v2148_v57 = vld [vmem:[#allocation9 + $0x2240] sm:$0xff] }
 0x5a8   : > { %4519 = vmatpush1.bf16.msra.mxu0 %v4518_v2  ;;  %v4538_v2 = vpack.c.bf16 %v2112_v13, %v2108_v10  ;;  %v2154_v10 = vld [vmem:[#allocation9 + $0x2270] sm:$0xff]  ;;  %v2157_v13 = vld [vmem:[#allocation9 + $0x2288] sm:$0xff] }
 0x5a9   : > { %5095 = vmatpush1.bf16.msra.mxu1 %v5094_v21  ;;  %4521 = vmatprep.subr.bf16.mxu0 %v4520_v4  ;;  %v5114_v21 = vpack.c.bf16 %v2114_v63, %v2110_v38  ;;  %v4540_v4 = vpack.c.bf16 %v2121_v0, %v2117_v17  ;;  %v2161_v38 = vld [vmem:[#allocation9 + $0x22a8] sm:$0xff]  ;;  %v2163_v63 = vld [vmem:[#allocation9 + $0x22b8] sm:$0xff] }
 0x5aa   : > { %5097 = vmatprep.subr.bf16.mxu1 %v5096_v18  ;;  %v5116_v18 = vpack.c.bf16 %v2123_v7, %v2119_v59  ;;  %v4560_v59 = vpack.c.bf16 %v2161_v38, %v2157_v13  ;;  %v2156_v7 = vld [vmem:[#allocation9 + $0x2280] sm:$0xff] }
 0x5ab   : > { %2830 = vmatmul.mubr.f32.vlgmr.msra.gmra.mrb[0].mxu0 %v1000_v20 }
 0x5ac   : > { %4523 = vmatpush1.bf16.msra.mxu0 %v4522_v1  ;;  %3523 = vmatmul.mubr.f32.vlgmr.msra.gmra.mrb[0].mxu1 %v1000_v20  ;;  %v4542_v20 = vpack.c.bf16 %v2120_v8, %v2116_v61  ;;  %v5118_v1 = vpack.c.bf16 %v2122_v11, %v2118_v9  ;;  %v2162_v61 = vld [vmem:[#allocation9 + $0x22b0] sm:$0xff]  ;;  %v2165_v8 = vld [vmem:[#allocation9 + $0x22c8] sm:$0xff]  ;;  %v2171_v11 = vld [vmem:[#allocation9 + $0x22f8] sm:$0xff] }
 0x5ad   : > { %5099 = vmatpush1.bf16.msra.mxu1 %v5098_v23  ;;  %4525 = vmatprep.subr.bf16.mxu0 %v4524_v24  ;;  %v4544_v23 = vpack.c.bf16 %v2129_v26, %v2125_v16  ;;  %v2124_v24 = vld [vmem:[#allocation9 + $0x2180] sm:$0xff]  ;;  %v2169_v9 = vld [vmem:[#allocation9 + $0x22e8] sm:$0xff] }
 0x5ae   : > { %5101 = vmatprep.subr.bf16.mxu1 %v5100_v29  ;;  %2835 = vmatprep.mubr.f32.mxu0 %v3983_v34  ;;  %v2130_v29 = vld [vmem:[#allocation9 + $0x21b0] sm:$0xff]  ;;  %v4546_v41 = vpack.c.bf16 %v2128_v27, %v2124_v24  ;;  %v4564_v3 = vpack.c.bf16 %v2169_v9, %v2165_v8  ;;  %v2173_v27 = vld [vmem:[#allocation9 + $0x2308] sm:$0xff]  ;;  %v2206_v9 = vlaneseq }
 0x5af   : > { %3528 = vmatprep.mubr.f32.mxu1 %v3983_v34  ;;  %2836 = vmatmul.mubr.f32.gmra.mrb[2].mxu0 %v1001_v39  ;;  %v5122_v34 = vpack.c.bf16 %v2130_v29, %v2126_v31  ;;  %v2170_v24 = vld [vmem:[#allocation9 + $0x22f0] sm:$0xff]  ;;  %v2177_v31 = vld [vmem:[#allocation9 + $0x2328] sm:$0xff]  ;;  %v2179_v29 = vld [vmem:[#allocation9 + $0x2338] sm:$0xff] }
 0x5b0   : > { %4527 = vmatpush1.bf16.msra.mxu0 %v4526_v35  ;;  %3529 = vmatmul.mubr.f32.gmra.mrb[2].mxu1 %v1001_v39  ;;  %v4548_v35 = vpack.c.bf16 %v2137_v30, %v2133_v36  ;;  %v2132_v39 = vld [vmem:[#allocation9 + $0x21c0] sm:$0xff]  ;;  %v4568_v32 = vpack.c.bf16 %v2177_v31, %v2173_v27  ;;  %v1009_v8 = vld [vmem:[#allocation2 + $0x32] sm:$0xff] }
 0x5b1   : > { %5103 = vmatpush1.bf16.msra.mxu1 %v5102_v40  ;;  %4529 = vmatprep.subr.bf16.mxu0 %v4528_v42  ;;  %v2136_v40 = vld [vmem:[#allocation9 + $0x21e0] sm:$0xff]  ;;  %v2134_v42 = vld [vmem:[#allocation9 + $0x21d0] sm:$0xff] }
 0x5b2   : > { %5105 = vmatprep.subr.bf16.mxu1 %v5104_v6  ;;  %2906 = vmatprep.mubr.f32.mxu0 %v3984_v50  ;;  %v2145_v6 = vld [vmem:[#allocation9 + $0x2228] sm:$0xff]  ;;  %v4550_v47 = vpack.c.bf16 %v2136_v40, %v2132_v39  ;;  %v5126_v48 = vpack.c.bf16 %v2138_v25, %v2134_v42  ;;  %v2178_v39 = vld [vmem:[#allocation9 + $0x2330] sm:$0xff]  ;;  %v2187_v25 = vld [vmem:[#allocation9 + $0x2378] sm:$0xff] }
 0x5b3   : > { %3599 = vmatprep.mubr.f32.mxu1 %v3984_v50  ;;  %v4552_v49 = vpack.c.bf16 %v2145_v6, %v2141_v56  ;;  %v2140_v50 = vld [vmem:[#allocation9 + $0x2200] sm:$0xff]  ;;  %v2181_v40 = vld [vmem:[#allocation9 + $0x2348] sm:$0xff] }
 0x5b4   : > { %4531 = vmatpush1.bf16.msra.mxu0 %v4530_v55  ;;  %v2144_v55 = vld [vmem:[#allocation9 + $0x2220] sm:$0xff]  ;;  %v2185_v42 = vld [vmem:[#allocation9 + $0x2368] sm:$0xff] }
 0x5b5   : > { %5107 = vmatpush1.bf16.msra.mxu1 %v5106_v52  ;;  %4533 = vmatprep.subr.bf16.mxu0 %v4532_v53  ;;  %v2142_v52 = vld [vmem:[#allocation9 + $0x2210] sm:$0xff]  ;;  %v5128_v53 = vpack.c.bf16 %v2147_v45, %v2143_v44  ;;  %v4554_v37 = vpack.c.bf16 %v2144_v55, %v2140_v50  ;;  %v4572_v44 = vpack.c.bf16 %v2185_v42, %v2181_v40  ;;  %v2180_v45 = vld [vmem:[#allocation9 + $0x2340] sm:$0xff]  ;;  %v2189_v55 = vld [vmem:[#allocation9 + $0x2388] sm:$0xff] }
 0x5b6   : > { %5109 = vmatprep.subr.bf16.mxu1 %v5108_v22  ;;  %v2151_v22 = vld [vmem:[#allocation9 + $0x2258] sm:$0xff]  ;;  %v5130_v54 = vpack.c.bf16 %v2146_v14, %v2142_v52  ;;  %v2186_v50 = vld [vmem:[#allocation9 + $0x2370] sm:$0xff]  ;;  %v2193_v52 = vld [vmem:[#allocation9 + $0x23a8] sm:$0xff] }
 0x5b7   : > { %v2195_v14 = vld [vmem:[#allocation9 + $0x23b8] sm:$0xff] }
 0x5b8   : > { %4535 = vmatpush1.bf16.msra.mxu0 %v4534_v51  ;;  %v2152_v51 = vld [vmem:[#allocation9 + $0x2260] sm:$0xff] }
 0x5b9   : > { %5111 = vmatpush1.bf16.msra.mxu1 %v5110_v58  ;;  %4537 = vmatprep.subr.bf16.mxu0 %v4536_v60  ;;  %v2150_v58 = vld [vmem:[#allocation9 + $0x2250] sm:$0xff]  ;;  %v5132_v60 = vpack.c.bf16 %v2155_v12, %v2151_v22  ;;  %v4558_v17 = vpack.c.bf16 %v2152_v51, %v2148_v57  ;;  %v4576_v22 = vpack.c.bf16 %v2193_v52, %v2189_v55  ;;  %v2188_v12 = vld [vmem:[#allocation9 + $0x2380] sm:$0xff]  ;;  %v2197_v51 = vld [vmem:[#allocation9 + $0x23c8] sm:$0xff] }
 0x5ba   : > { %5113 = vmatprep.subr.bf16.mxu1 %v5112_v62  ;;  %v2159_v62 = vld [vmem:[#allocation9 + $0x2298] sm:$0xff]  ;;  %v5134_v0 = vpack.c.bf16 %v2154_v10, %v2150_v58  ;;  %v2194_v57 = vld [vmem:[#allocation9 + $0x23b0] sm:$0xff]  ;;  %v2201_v58 = vld [vmem:[#allocation9 + $0x23e8] sm:$0xff] }
 0x5bb   : > { %v2203_v10 = vld [vmem:[#allocation9 + $0x23f8] sm:$0xff] }
 0x5bc   : > { %4539 = vmatpush1.bf16.msra.mxu0 %v4538_v2  ;;  %v2160_v2 = vld [vmem:[#allocation9 + $0x22a0] sm:$0xff] }
 0x5bd   : > { %5115 = vmatpush1.bf16.msra.mxu1 %v5114_v21  ;;  %4541 = vmatprep.subr.bf16.mxu0 %v4540_v4  ;;  %v2158_v21 = vld [vmem:[#allocation9 + $0x2290] sm:$0xff]  ;;  %v5136_v4 = vpack.c.bf16 %v2163_v63, %v2159_v62  ;;  %v4562_v16 = vpack.c.bf16 %v2160_v2, %v2156_v7  ;;  %v4580_v62 = vpack.c.bf16 %v2201_v58, %v2197_v51  ;;  %v2196_v63 = vld [vmem:[#allocation9 + $0x23c0] sm:$0xff] }
 0x5be   : > { %5117 = vmatprep.subr.bf16.mxu1 %v5116_v18  ;;  %v2167_v18 = vld [vmem:[#allocation9 + $0x22d8] sm:$0xff]  ;;  %v5138_v26 = vpack.c.bf16 %v2162_v61, %v2158_v21  ;;  %v2202_v7 = vld [vmem:[#allocation9 + $0x23f0] sm:$0xff] }
 0x5bf   : > { %v3985_v61 = vld [vmem:[%s6388_s16 + $0x32] sm:$0xff] }
 0x5c0   : > { %4543 = vmatpush1.bf16.msra.mxu0 %v4542_v20  ;;  %v2168_v20 = vld [vmem:[#allocation9 + $0x22e0] sm:$0xff] }
 0x5c1   : > { %5119 = vmatpush1.bf16.msra.mxu1 %v5118_v1  ;;  %4545 = vmatprep.subr.bf16.mxu0 %v4544_v23  ;;  %v2166_v1 = vld [vmem:[#allocation9 + $0x22d0] sm:$0xff]  ;;  %v5140_v23 = vpack.c.bf16 %v2171_v11, %v2167_v18  ;;  %v4566_v36 = vpack.c.bf16 %v2168_v20, %v2164_v19  ;;  %v2207_v18 = vshrl.u32 %v2206_v9, 7 }
 0x5c2   : > { %5121 = vmatprep.subr.bf16.mxu1 %v5120_v28  ;;  %v2175_v28 = vld [vmem:[#allocation9 + $0x2318] sm:$0xff]  ;;  %v5142_v30 = vpack.c.bf16 %v2170_v24, %v2166_v1 }
 0x5c3   : > { %v2208_v11 = vsub.s32 0, %v2207_v18  ;;  %v2216_v1 = vsub.s32 2, %v2207_v18 }
 0x5c4   : > { %4547 = vmatpush1.bf16.msra.mxu0 %v4546_v41  ;;  %v2176_v41 = vld [vmem:[#allocation9 + $0x2320] sm:$0xff] }
 0x5c5   : > { %5123 = vmatpush1.bf16.msra.mxu1 %v5122_v34  ;;  %4549 = vmatprep.subr.bf16.mxu0 %v4548_v35  ;;  %v2174_v34 = vld [vmem:[#allocation9 + $0x2310] sm:$0xff]  ;;  %v5144_v35 = vpack.c.bf16 %v2179_v29, %v2175_v28  ;;  %v4570_v56 = vpack.c.bf16 %v2176_v41, %v2172_v33  ;;  %v2220_v33 = vsub.s32 3, %v2207_v18 }
 0x5c6   : > { %5125 = vmatprep.subr.bf16.mxu1 %v5124_v43  ;;  %v2183_v43 = vld [vmem:[#allocation9 + $0x2358] sm:$0xff]  ;;  %v5146_v6 = vpack.c.bf16 %v2178_v39, %v2174_v34 }
 0x5c8   : > { %4551 = vmatpush1.bf16.msra.mxu0 %v4550_v47  ;;  %v2184_v47 = vld [vmem:[#allocation9 + $0x2360] sm:$0xff] }
 0x5c9   : > { %5127 = vmatpush1.bf16.msra.mxu1 %v5126_v48  ;;  %4553 = vmatprep.subr.bf16.mxu0 %v4552_v49  ;;  %v2182_v48 = vld [vmem:[#allocation9 + $0x2350] sm:$0xff]  ;;  %v5148_v49 = vpack.c.bf16 %v2187_v25, %v2183_v43  ;;  %v4574_v15 = vpack.c.bf16 %v2184_v47, %v2180_v45 }
 0x5ca   : > { %5129 = vmatprep.subr.bf16.mxu1 %v5128_v53  ;;  %v2191_v53 = vld [vmem:[#allocation9 + $0x2398] sm:$0xff]  ;;  %v5150_v5 = vpack.c.bf16 %v2186_v50, %v2182_v48 }
 0x5cc   : > { %4555 = vmatpush1.bf16.msra.mxu0 %v4554_v37  ;;  %v2192_v37 = vld [vmem:[#allocation9 + $0x23a0] sm:$0xff] }
 0x5cd   : > { %5131 = vmatpush1.bf16.msra.mxu1 %v5130_v54  ;;  %4557 = vmatprep.subr.bf16.mxu0 %v4556_v46  ;;  %v2190_v54 = vld [vmem:[#allocation9 + $0x2390] sm:$0xff]  ;;  %v5152_v46 = vpack.c.bf16 %v2195_v14, %v2191_v53  ;;  %v4578_v13 = vpack.c.bf16 %v2192_v37, %v2188_v12 }
 0x5ce   : > { %5133 = vmatprep.subr.bf16.mxu1 %v5132_v60  ;;  %v2199_v60 = vld [vmem:[#allocation9 + $0x23d8] sm:$0xff]  ;;  %v5154_v38 = vpack.c.bf16 %v2194_v57, %v2190_v54  ;;  %v3650_v54 = vld [vmem:[%s366_s24] sm:$0xff] }
 0x5d0   : > { %4559 = vmatpush1.bf16.msra.mxu0 %v4558_v17  ;;  %v2200_v17 = vld [vmem:[#allocation9 + $0x23e0] sm:$0xff] }
 0x5d1   : > { %5135 = vmatpush1.bf16.msra.mxu1 %v5134_v0  ;;  %4561 = vmatprep.subr.bf16.mxu0 %v4560_v59  ;;  %v5156_v0 = vpack.c.bf16 %v2203_v10, %v2199_v60  ;;  %v2198_v59 = vld [vmem:[#allocation9 + $0x23d0] sm:$0xff]  ;;  %v4582_v2 = vpack.c.bf16 %v2200_v17, %v2196_v63 }
 0x5d2   : > { %5137 = vmatprep.subr.bf16.mxu1 %v5136_v4  ;;  %v5158_v21 = vpack.c.bf16 %v2202_v7, %v2198_v59  ;;  %v1008_v4 = vld [vmem:[#allocation2 + $0x22] sm:$0xff] }
 0x5d4   : > { %4563 = vmatpush1.bf16.msra.mxu0 %v4562_v16  ;;  %v2204_v16 = vld [vmem:[#allocation10] sm:$0xf] }
 0x5d5   : > { %5139 = vmatpush1.bf16.msra.mxu1 %v5138_v26  ;;  %4565 = vmatprep.subr.bf16.mxu0 %v4564_v3  ;;  %v2212_v26 = vsub.s32 1, %v2207_v18  ;;  %v2209_v3 = vrot.slane %v2204_v16, %v2208_v11 }
 0x5d6   : > { %5141 = vmatprep.subr.bf16.mxu1 %v5140_v23 }
 0x5d7   : > { %v2213_v19 = vrot.slane %v2204_v16, %v2212_v26 }
 0x5d8   : > { %4567 = vmatpush1.bf16.msra.mxu0 %v4566_v36  ;;  %v2217_v36 = vrot.slane %v2204_v16, %v2216_v1 }
 0x5d9   : > { %5143 = vmatpush1.bf16.msra.mxu1 %v5142_v30  ;;  %4569 = vmatprep.subr.bf16.mxu0 %v4568_v32 }
 0x5da   : > { %5145 = vmatprep.subr.bf16.mxu1 %v5144_v35 }
 0x5dc   : > { %4571 = vmatpush1.bf16.msra.mxu0 %v4570_v56  ;;  %v2221_v56 = vrot.slane %v2204_v16, %v2220_v33 }
 0x5dd   : > { %5147 = vmatpush1.bf16.msra.mxu1 %v5146_v6  ;;  %4573 = vmatprep.subr.bf16.mxu0 %v4572_v44 }
 0x5de   : > { %5149 = vmatprep.subr.bf16.mxu1 %v5148_v49 }
 0x5e0   : > { %4575 = vmatpush1.bf16.msra.mxu0 %v4574_v15 }
 0x5e1   : > { %5151 = vmatpush1.bf16.msra.mxu1 %v5150_v5  ;;  %4577 = vmatprep.subr.bf16.mxu0 %v4576_v22 }
 0x5e2   : > { %5153 = vmatprep.subr.bf16.mxu1 %v5152_v46 }
 0x5e4   : > { %4579 = vmatpush1.bf16.msra.mxu0 %v4578_v13 }
 0x5e5   : > { %5155 = vmatpush1.bf16.msra.mxu1 %v5154_v38  ;;  %4581 = vmatprep.subr.bf16.mxu0 %v4580_v62  ;;  %v3651_v38 = vld [vmem:[%s366_s24 + $0x8] sm:$0xff]  ;;  %s3672_s24 = scalar_lea.sflag [#allocation14], %s6091_s15 }
 0x5e6   : > { %5157 = vmatprep.subr.bf16.mxu1 %v5156_v0 }
 0x5e8   : > { %4583 = vmatpush1.bf16.msra.mxu0 %v4582_v2 }
 0x5e9   : > { %5159 = vmatpush1.bf16.msra.mxu1 %v5158_v21 }
 0x5eb   : > { %2907 = vmatmul.mubr.f32.vlgmr.msra.gmra.mrb[0].mxu0 %v1008_v4 }
 0x5ec   : > { %3600 = vmatmul.mubr.f32.vlgmr.msra.gmra.mrb[0].mxu1 %v1008_v4  ;;  %2912 = vmatprep.mubr.f32.mxu0 %v3985_v61 }
 0x5ed   : > { %3605 = vmatprep.mubr.f32.mxu1 %v3985_v61 }
 0x5ef   : > { %2913 = vmatmul.mubr.f32.gmra.mrb[2].mxu0 %v1009_v8 }
 0x5f0   : > { %3606 = vmatmul.mubr.f32.gmra.mrb[2].mxu1 %v1009_v8 }
 0x6be   : > { %v2908_v20 = vpop.f32.mrb[0].mxu0 }
 0x6bf   : > { %v5160_v23 = vadd.f32 %v2908_v20, %v2209_v3  ;;  %v3601_v24 = vpop.f32.mrb[0].mxu1  ;;  %v2910_v27 = vpop.f32.mrb[1].mxu0 }
 0x6c0   : > { %v5161_v31 = vadd.f32 %v2910_v27, %v2213_v19  ;;  %v3603_v28 = vpop.f32.mrb[1].mxu1  ;;  %v5164_v43 = vadd.f32 %v3601_v24, %v2217_v36 }
 0x6c1   : > { %v3986_v29 = vmul.f32 -1.442695, %v5160_v23  ;;  %v5165_v45 = vadd.f32 %v3603_v28, %v2221_v56 }
 0x6c2   : > { %v3987_v30 = vmul.f32 -1.442695, %v5161_v31  ;;  %v2914_v32 = vpop.f32.mrb[2].mxu0  ;;  %v3988_v44 = vmul.f32 -1.442695, %v5164_v43 }
 0x6c3   : > { %5421 = vpow2.f32 %v3986_v29  ;;  %v5162_v41 = vadd.f32 %v2914_v32, %v2209_v3  ;;  %v3607_v34 = vpop.f32.mrb[2].mxu1  ;;  %v2916_v35 = vpop.f32.mrb[3].mxu0 }
 0x6c4   : > { %v5163_v39 = vadd.f32 %v2916_v35, %v2213_v19  ;;  %v3609_v40 = vpop.f32.mrb[3].mxu1  ;;  %5423 = vpow2.f32 %v3987_v30  ;;  %v5166_v6 = vadd.f32 %v3607_v34, %v2217_v36 }
 0x6c5   : > { %v3989_v42 = vmul.f32 -1.442695, %v5162_v41  ;;  %v5167_v55 = vadd.f32 %v3609_v40, %v2221_v56 }
 0x6c6   : > { %v3990_v25 = vmul.f32 -1.442695, %v5163_v39  ;;  %v3991_v48 = vmul.f32 -1.442695, %v5166_v6 }
 0x6c7   : > { %5425 = vpow2.f32 %v3989_v42 }
 0x6c8   : > { %5427 = vpow2.f32 %v3990_v25 }
 0x6c9   : > { %5429 = vpow2.f32 %v3988_v44 }
 0x6ca   : > { %5431 = vtanh.f32 %v5165_v45 }
 0x6cd   : > { %v5422_v47 = vpop.eup %5421 }
 0x6ce   : > { %v3630_v49 = vadd.f32 1.0, %v5422_v47  ;;  %v5424_v50 = vpop.eup %5423 }
 0x6cf   : > { %v3631_v52 = vadd.f32 1.0, %v5424_v50 }
 0x6d0   : > { %5433 = vrcp.f32 %v3630_v49 }
 0x6d1   : > { %v5426_v53 = vpop.eup %5425  ;;  %5435 = vpow2.f32 %v3991_v48 }
 0x6d2   : > { %5437 = vrcp.f32 %v3631_v52  ;;  %v3633_v14 = vadd.f32 1.0, %v5426_v53  ;;  %v5428_v15 = vpop.eup %5427 }
 0x6d3   : > { %5439 = vtanh.f32 %v5167_v55  ;;  %v3634_v5 = vadd.f32 1.0, %v5428_v15  ;;  %v5430_v22 = vpop.eup %5429 }
 0x6d4   : > { %5441 = vrcp.f32 %v3633_v14  ;;  %v5432_v12 = vpop.eup %5431  ;;  %v3632_v58 = vadd.f32 1.0, %v5430_v22 }
 0x6d5   : > { %5443 = vrcp.f32 %v3634_v5 }
 0x6d6   : > { %5445 = vrcp.f32 %v3632_v58 }
 0x6da   : > { %v5434_v37 = vpop.eup %5433 }
 0x6db   : > { %v5436_v46 = vpop.eup %5435  ;;  %v3654_v57 = vmul.f32 %v5434_v37, %v5432_v12 }
 0x6dc   : > { %v5438_v51 = vpop.eup %5437  ;;  %v3635_v0 = vadd.f32 1.0, %v5436_v46 }
 0x6dd   : > { %v5440_v60 = vpop.eup %5439  ;;  %v3652_v10 = vmul.f32 %v5438_v51, %v3650_v54 }
 0x6de   : > { %v5442_v13 = vpop.eup %5441 }
 0x6df   : > { %v3656_v62 = vadd.f32 %v3654_v57, %v3652_v10  ;;  %v3655_v63 = vmul.f32 %v5442_v13, %v5440_v60  ;;  %v5444_v17 = vpop.eup %5443 }
 0x6e0   : > { %v3653_v59 = vmul.f32 %v5444_v17, %v3651_v38 }
 0x6e1   : > { %5447 = vtanh.f32 %v3656_v62  ;;  %3658 = vst [vmem:[%s6381_s14] sm:$0xff] %v3656_v62 }
 0x6e2   : > { %v3657_v7 = vadd.f32 %v3655_v63, %v3653_v59  ;;  %5449 = vrcp.f32 %v3635_v0 }
 0x6e4   : > { %5451 = vtanh.f32 %v3657_v7  ;;  %3659 = vst [vmem:[%s6381_s14 + $0x8] sm:$0xff] %v3657_v7 }
 0x6e5   : > { %5582 = shalt.err (!%p5579_p2)
}
 0x6e6   : > { %s5583_s14 = scalar_lea.hbm %s6424_s17, 256  ;;  %s5587_s22 = scalar_lea.hbm %s6606_s19, 2048 }
 0x6e7   : > { %p5584_p10 = scmp.ne.s32.totalorder %s6424_s17, %s5583_s14  ;;  %p5588_p5 = scmp.lt.u32.totalorder %s6424_s17, %s6606_s19 }
 0x6e8   : > { %p5589_p0 = scmp.lt.u32.totalorder %s5587_s22, %s5583_s14  ;;  %p5591_p1 = scmp.lt.u32.totalorder %s5583_s14, %s6424_s17 }
 0x6e9   : > { %p5585_p12 = pnand %p5584_p10, %p6011_p7 }
 0x6ea   : > { %p5590_p6 = por %p5589_p0, %p5588_p5 }
 0x6eb   : > { %p5586_p13 = pneg %p5585_p12 }
 0x6ec   : > { %p5592_p3 = por %p5591_p1, %p5590_p6 }
 0x6ee   : > { %p5593_p9 = pnand %p5592_p3, %p5586_p13 }
 0x6f0   : > { %5596 = shalt.err (!%p5593_p9)
}
 0x6f1   : > { %s5758_s8 = smov 128   ;;  %s5759_s30 = smov 8   ;;  %v5446_v2 = vpop.eup %5445 }
 0x6f2   : > { %5250 = dma.vmem_to_hbm [thread:$0]  (%p6011_p7), %s6426_s20, 256, %s6424_s17, %s3672_s24, %s5758_s8, %s5758_s8, %s5759_s30   ;;  %v5448_v21 = vpop.eup %5447 }
 0x6f3   : > { %v3662_v4 = vmul.f32 %v5448_v21, %v5446_v2  ;;  %s3687_s0 = sshll.u32 %s6378_s23, 4  ;;  %v5450_v61 = vpop.eup %5449  ;;  %s6607_s14 = sld [smem:[#allocation33_spill]]  ;;  %s6465_s0 = int_to_ptr.vmem [resolvable:$true] %s3687_s0 }
 0x6f4   : > { %v5452_v8 = vpop.eup %5451  ;;  %s3667_s20 = scalar_lea.sflag [#allocation6], %s6091_s15  ;;  %s5597_s17 = scalar_lea.vmem %s6465_s0, 256 }
 0x6f5   : > { %3664 = vst [vmem:[%s6378_s23] sm:$0xff] %v3662_v4  ;;  %v3663_v9 = vmul.f32 %v5452_v8, %v5450_v61  ;;  %p5598_p4 = scmp.ne.s32.totalorder %s6465_s0, %s5597_s17  ;;  %s5760_s24 = smov [#allocation12]  }
 0x6f6   : > { %s5601_s12 = sshll.u32 %s5760_s24, 4  ;;  %s5602_s12 = int_to_ptr.vmem [resolvable:$false] %s5601_s12 }
 0x6f7   : > { %3665 = vst [vmem:[%s6378_s23 + $0x8] sm:$0xff] %v3663_v9  ;;  %p5599_p8 = pnand %p5598_p4, %p6011_p7  ;;  %s5603_s21 = scalar_lea.vmem %s5602_s12, 512 }
 0x6f8   : > { %p5604_p2 = scmp.lt.s32.totalorder %s6465_s0, %s5602_s12  ;;  %p5605_p10 = scmp.lt.s32.totalorder %s5603_s21, %s5597_s17 }
 0x6f9   : > { %s6463_s16 = scalar_lea.hbm %s6607_s14, %s3996_s1  ;;  %p5600_p11 = pneg %p5599_p8 }
 0x6fa   : > { %p5606_p12 = por %p5605_p10, %p5604_p2 }
 0x6fc   : > { %p5607_p13 = pnand %p5606_p12, %p5600_p11 }
 0x6fe   : > { %5610 = shalt.err (!%p5607_p13)
}
 0x6ff   : > { %s5611_s23 = scalar_lea.hbm %s6463_s16, 256  ;;  %s5615_s18 = scalar_lea.hbm %s6607_s14, 2048 }
 0x700   : > { %p5612_p5 = scmp.ne.s32.totalorder %s6463_s16, %s5611_s23  ;;  %p5616_p1 = scmp.lt.u32.totalorder %s6463_s16, %s6607_s14 }
 0x701   : > { %p5617_p3 = scmp.lt.u32.totalorder %s5615_s18, %s5611_s23  ;;  %p5619_p4 = scmp.lt.u32.totalorder %s5611_s23, %s6463_s16 }
 0x702   : > { %p5613_p0 = pnand %p5612_p5, %p6011_p7 }
 0x703   : > { %p5618_p9 = por %p5617_p3, %p5616_p1 }
 0x704   : > { %p5614_p6 = pneg %p5613_p0 }
 0x705   : > { %p5620_p8 = por %p5619_p4, %p5618_p9 }
 0x707   : > { %p5621_p11 = pnand %p5620_p8, %p5614_p6 }
 0x709   : > { %5624 = shalt.err (!%p5621_p11)
}
 0x70a   : > { %5249 = dma.vmem_to_hbm [thread:$0]  (%p6011_p7), %s6465_s0, 256, %s6463_s16, %s3667_s20, %s5758_s8, %s5758_s8, %s5759_s30  }
 0x70b PF: > { %s6608_s27 = sld [smem:[#allocation21_spill]]  ;;  %s6609_s17 = sld [smem:[#allocation25_spill]] }
 0x70c   : > { %p5279_p2 = scmp.ge.s32.totalorder %s5735_s11, 2 }
 0x711   : > { %s3720_s24 = sand.u32 1, %s6608_s27   ;;  %p6610_p10 = scmp.ne.s32.totalorder %s6609_s17, 0 }
 0x712   : > { %s3721_s12 = scalar_lea.sflag [#allocation6], %s3720_s24 }
 0x713   : > { %p5268_p12 = pnand %p5279_p2, %p6610_p10 }
 0x715   : > { %5686 = dma.done.wait (!%p5268_p12), %s3721_s12, 256  }
 0x716   : > { %5688 = vsyncadd (!%p5268_p12), %s3721_s12, 4294967040  ;;  %s3730_s13 = scalar_lea.sflag [#allocation14], %s3720_s24 }
 0x717   : > { %5690 = dma.done.wait (!%p5268_p12), %s3730_s13, 256  }
 0x718   : > { %5692 = vsyncadd (!%p5268_p12), %s3730_s13, 4294967040  ;;  %s31_s11 = sadd.s32 1, %s5735_s11   ;;  %s6611_s15 = sld [smem:[#allocation26_spill]] }
 0x719   : > { %p28_p13 = scmp.ge.s32.totalorder %s31_s11, 10   ;;  %s6612_s24 = smov %s5699_s25 }
 0x71a   : > { %s6613_s25 = smov %s5703_s26  ;;  %s6614_s26 = smov %s6031_s5 }
 0x71b   : > { %s6615_s27 = smov %s5711_s28  ;;  %s6616_s28 = smov %s5715_s29 }
 0x71c   : > { %s6617_s29 = smov %s6028_s4  ;;  %s6618_s30 = smov %s5727_s9 }
 0x71d   : > { %s6619_s8 = smov %s5731_s10  ;;  %s6621_s10 = smov %s6627_s7 }
 0x71e   : > { %s6620_s9 = smov %s6611_s15  ;;  %30 = sbr.rel (!%p28_p13) target bundleno = 22 (0x16), region = 151 }
 0x725   :  { %3735 = vsyncpa [#allocation5], 1 }
 0x726   :  { %3737 = vsyncpa [#allocation5 + $0x1], 1 }
 0x727   :  { %3738 = vsyncpa [#allocation8], 1 }
 0x728   :  { %3740 = vsyncpa [#allocation8 + $0x1], 1 }
 0x729   :  { %3741 = vsyncpa [#allocation11], 1 }
 0x72a   :  { %3742 = vsyncpa [#allocation6], 1 }
 0x72b   :  { %3744 = vsyncpa [#allocation6 + $0x1], 1 }
 0x72c   :  { %3745 = vsyncpa [#allocation14], 1 }
 0x72d   :  { %3747 = vsyncpa [#allocation14 + $0x1], 1 }

</bundles_post_ra>
